<compile_context>
chip_gen: v5e
topology: v5e:2x2
jax: 0.10.0
libtpu: 0.0.40
codegen_flags: <defaults>
</compile_context>

<pallas_src>
import functools
import math

import jax
import jax.numpy as jnp
import numpy as np
from jax.experimental import pallas as pl
from jax.experimental.pallas import tpu as pltpu

_C2 = 0.03 ** 2
_EPS = 6.0 / 29.0
_LANES = 128


# -----------------------------------------------------------------------------
# small helpers
# -----------------------------------------------------------------------------
def _round_up(x, m):
    return ((x + m - 1) // m) * m


def _gaussian_1d(window_size, sigma):
    g = np.array(
        [math.exp(-((x - window_size // 2) ** 2) / float(2 * sigma ** 2))
         for x in range(window_size)], dtype=np.float32)
    return g / g.sum()


def _band_matrix(width, weights):
    """B[c_in, c_out] = w[c_in - c_out + pad]: a 'same' zero-padded 1-D conv along
    the lane axis becomes a single MXU matmul (x @ B)."""
    fs = len(weights)
    pad = fs // 2
    b = np.zeros((width, width), dtype=np.float32)
    for dx in range(fs):
        b += np.float32(weights[dx]) * np.eye(width, k=pad - dx, dtype=np.float32)
    return b


def _pick_tile_rows(h):
    """Largest multiple-of-8 divisor of H (<=128, and <=H/2 so tiling is exercised);
    falls back to a single full-height tile."""
    cap = min(max(h // 2, 8), 128)
    best = None
    for d in range(8, cap + 1, 8):
        if h % d == 0:
            best = d
    if best is None:
        return h, h          # single tile; halo blocks are fully masked anyway
    return best, 8


# -----------------------------------------------------------------------------
# Kernel 1: sRGB -> Lab on the flattened NCHW stream (torch.reshape(x,[-1,3])
# semantics: consecutive flat elements are grouped into triplets).
# -----------------------------------------------------------------------------
@functools.lru_cache(maxsize=None)
def _lab_constants():
    m = np.array([[0.412453, 0.212671, 0.019334],
                  [0.35758, 0.71516, 0.119193],
                  [0.180423, 0.072169, 0.950227]], dtype=np.float32)
    scale = np.array([1.0 / 0.950456, 1.0, 1.0 / 1.088754], dtype=np.float32)
    m_scaled = (m * scale[None, :]).astype(np.float32)
    f = np.array([[0.0, 500.0, 0.0],
                  [116.0, -500.0, 200.0],
                  [0.0, 0.0, -200.0]], dtype=np.float32)
    eye = np.eye(_LANES, dtype=np.float32)
    b1 = np.kron(eye, m_scaled).astype(np.float32)        # (384, 384) block-diag
    b2 = np.kron(eye, f).astype(np.float32)                # (384, 384) block-diag
    off = np.tile(np.array([-16.0, 0.0, 0.0], np.float32), _LANES)[None, :]
    return b1, b2, off


def _rgb_to_lab_kernel(x_ref, b1_ref, b2_ref, off_ref, o_ref):
    c = x_ref[...]                                          # (TR, 384)
    lin_mask = (c <= 0.04045).astype(jnp.float32)
    exp_mask = 1.0 - lin_mask
    base = jnp.maximum((c + 0.055) / 1.055, 1e-8)           # guard log
    powed = jnp.exp(2.4 * jnp.log(base))                    # base ** 2.4
    rgb = c / 12.92 * lin_mask + powed * exp_mask

    xyz = jnp.dot(rgb, b1_ref[...], preferred_element_type=jnp.float32)

    eps3 = _EPS ** 3
    lm = (xyz <= eps3).astype(jnp.float32)
    em = 1.0 - lm
    cbrt = jnp.exp(jnp.log(xyz + 1e-6) / 3.0)               # (t + 1e-6) ** (1/3)
    fxyz = (xyz / (3.0 * _EPS * _EPS) + 4.0 / 29.0) * lm + cbrt * em

    lab = jnp.dot(fxyz, b2_ref[...], preferred_element_type=jnp.float32)
    o_ref[...] = lab + off_ref[...]


def _rgb_to_lab(img):
    total = img.size
    flat = img.reshape(-1)
    r = -(-total // (3 * _LANES))
    tr = 512 if r >= 512 else _round_up(max(r, 1), 8)
    rp = _round_up(r, tr)
    flat = jnp.pad(flat, (0, rp * 3 * _LANES - total))
    x = flat.reshape(rp, 3 * _LANES)

    b1, b2, off = _lab_constants()
    lab = pl.pallas_call(
        _rgb_to_lab_kernel,
        out_shape=jax.ShapeDtypeStruct((rp, 3 * _LANES), jnp.float32),
        grid=(rp // tr,),
        in_specs=[
            pl.BlockSpec((tr, 3 * _LANES), lambda i: (i, 0)),
            pl.BlockSpec((3 * _LANES, 3 * _LANES), lambda i: (0, 0)),
            pl.BlockSpec((3 * _LANES, 3 * _LANES), lambda i: (0, 0)),
            pl.BlockSpec((1, 3 * _LANES), lambda i: (0, 0)),
        ],
        out_specs=pl.BlockSpec((tr, 3 * _LANES), lambda i: (i, 0)),
        compiler_params=pltpu.CompilerParams(
            dimension_semantics=("parallel",),
            vmem_limit_bytes=32 * 1024 * 1024),
    )(x, jnp.asarray(b1), jnp.asarray(b2), jnp.asarray(off))
    return lab.reshape(-1)[:total].reshape(img.shape)


# -----------------------------------------------------------------------------
# Kernel 2 (phase 1): row-tiled SSIM contrast/structure map + box-blurred Lab
# difference map.  Separable filters: vertical taps on sublanes, horizontal pass
# as a banded (W,W) MXU matmul (encodes the 'same' zero padding).
# -----------------------------------------------------------------------------
def _scdiffer_main_kernel(i1m, i1t, i1b, i2m, i2t, i2b,
                          l1m, l1t, l1b, l2m, l2t, l2b,
                          gband_ref, bband_ref,
                          cs_ref, ld_ref,
                          st1, st2, st3, st4,
                          *, TH, HALO, W, gvec, FS):
    t = pl.program_id(1)
    nt = pl.num_programs(1)
    top_s = (t > 0).astype(jnp.float32)        # zero-pad above the image
    bot_s = (t < nt - 1).astype(jnp.float32)   # zero-pad below the image

    def stitch(dst, top, main, bot):
        dst[:, 0:HALO, :] = top[0] * top_s
        dst[:, HALO:HALO + TH, :] = main[0]
        dst[:, HALO + TH:HALO + TH + HALO, :] = bot[0] * bot_s

    stitch(st1, i1t, i1m, i1b)
    stitch(st2, i2t, i2m, i2b)
    stitch(st3, l1t, l1m, l1b)
    stitch(st4, l2t, l2m, l2b)

    x1 = st1[...]
    x2 = st2[...]
    gband = gband_ref[...]
    bband = bband_ref[...]
    pad = FS // 2

    def hconv(v, band):                         # horizontal 'same' conv on MXU
        out = jnp.dot(v.reshape(3 * TH, W), band,
                      preferred_element_type=jnp.float32)
        return out.reshape(3, TH, W)

    def conv_gauss(x):                          # separable 5x5 gaussian, 'same'
        acc = gvec[0] * x[:, HALO - pad:HALO - pad + TH, :]
        for dy in range(1, FS):
            acc = acc + gvec[dy] * x[:, HALO - pad + dy:HALO - pad + dy + TH, :]
        return hconv(acc, gband)

    mu1 = conv_gauss(x1)
    mu2 = conv_gauss(x2)
    s11 = conv_gauss(x1 * x1) - mu1 * mu1
    s22 = conv_gauss(x2 * x2) - mu2 * mu2
    s12 = conv_gauss(x1 * x2) - mu1 * mu2
    con = (2.0 * s12 + _C2) / (s11 + s22 + _C2)
    cs_ref[...] = jnp.mean(1.0 - con, axis=0)[None]          # (1, TH, W)

    def conv_box(x):                            # separable 3x3 box blur, 'same'
        acc = x[:, HALO - 1:HALO - 1 + TH, :]
        for dy in range(1, 3):
            acc = acc + x[:, HALO - 1 + dy:HALO - 1 + dy + TH, :]
        return hconv(acc * np.float32(1.0 / 3.0), bband)

    d = conv_box(st3[...]) - conv_box(st4[...])
    ld_ref[...] = jnp.sqrt(jnp.sum(d * d, axis=0))[None]     # (1, TH, W)


def _structure_color_maps(img1, img2, lab1, lab2, filter_size):
    n, _, h, w = img1.shape
    th, halo = _pick_tile_rows(h)
    nt = h // th
    r = th // halo
    hb = h // halo
    s = th + 2 * halo

    g = _gaussian_1d(filter_size, 1.5)
    gband = jnp.asarray(_band_matrix(w, list(g)))
    bband = jnp.asarray(_band_matrix(w, [1.0 / 3.0] * 3))

    kern = functools.partial(_scdiffer_main_kernel, TH=th, HALO=halo, W=w,
                             gvec=[float(x) for x in g], FS=filter_size)

    main_spec = pl.BlockSpec((1, 3, th, w), lambda ni, ti: (ni, 0, ti, 0))
    top_spec = pl.BlockSpec(
        (1, 3, halo, w), lambda ni, ti: (ni, 0, jnp.maximum(ti * r - 1, 0), 0))
    bot_spec = pl.BlockSpec(
        (1, 3, halo, w), lambda ni, ti: (ni, 0, jnp.minimum((ti + 1) * r, hb - 1), 0))
    band_spec = pl.BlockSpec((w, w), lambda ni, ti: (0, 0))
    map_spec = pl.BlockSpec((1, th, w), lambda ni, ti: (ni, ti, 0))

    cs, ld = pl.pallas_call(
        kern,
        out_shape=(jax.ShapeDtypeStruct((n, h, w), jnp.float32),
                   jax.ShapeDtypeStruct((n, h, w), jnp.float32)),
        grid=(n, nt),
        in_specs=[main_spec, top_spec, bot_spec,
                  main_spec, top_spec, bot_spec,
                  main_spec, top_spec, bot_spec,
                  main_spec, top_spec, bot_spec,
                  band_spec, band_spec],
        out_specs=(map_spec, map_spec),
        scratch_shapes=[pltpu.VMEM((3, s, w), jnp.float32)] * 4,
        compiler_params=pltpu.CompilerParams(
            dimension_semantics=("parallel", "parallel"),
            vmem_limit_bytes=48 * 1024 * 1024),
    )(img1, img1, img1, img2, img2, img2,
      lab1, lab1, lab1, lab2, lab2, lab2, gband, bband)
    return cs, ld


# -----------------------------------------------------------------------------
# Kernel 3 (phase 2): standardize / combine / clip, lane-dense (rows, 128) tiles.
# -----------------------------------------------------------------------------
def _finalize_kernel(stats_ref, cs_ref, ld_ref, out_ref, *, alpha):
    sb = stats_ref[...]                                       # (1, 8, 128)
    cs = (cs_ref[...] - sb[:, 0:1, :]) * sb[:, 1:2, :]
    ld = (ld_ref[...] - sb[:, 2:3, :]) * sb[:, 3:4, :]
    occ = ld * cs + ld + cs * alpha
    occ = (occ - sb[:, 4:5, :]) * sb[:, 5:6, :]
    out_ref[...] = jnp.clip(occ, 0.0, 1.0)


def _finalize(cs, ld, stats, alpha, h, w):
    n = cs.shape[0]
    hw = h * w
    hwp = _round_up(hw, _LANES * 8)
    rows = hwp // _LANES

    def prep(v):
        vf = jnp.pad(v.reshape(n, hw), ((0, 0), (0, hwp - hw)))
        return vf.reshape(n, rows, _LANES)

    csf, ldf = prep(cs), prep(ld)
    rb = 8
    for cand in (1024, 512, 256, 128, 64, 32, 16, 8):
        if rows % cand == 0:
            rb = cand
            break
    stats_v = jnp.broadcast_to(stats[:, :, None], (n, 8, _LANES))

    occf = pl.pallas_call(
        functools.partial(_finalize_kernel, alpha=float(alpha)),
        out_shape=jax.ShapeDtypeStruct((n, rows, _LANES), jnp.float32),
        grid=(n, rows // rb),
        in_specs=[
            pl.BlockSpec((1, 8, _LANES), lambda ni, ji: (ni, 0, 0)),
            pl.BlockSpec((1, rb, _LANES), lambda ni, ji: (ni, ji, 0)),
            pl.BlockSpec((1, rb, _LANES), lambda ni, ji: (ni, ji, 0)),
        ],
        out_specs=pl.BlockSpec((1, rb, _LANES), lambda ni, ji: (ni, ji, 0)),
        compiler_params=pltpu.CompilerParams(
            dimension_semantics=("parallel", "parallel"),
            vmem_limit_bytes=32 * 1024 * 1024),
    )(stats_v, csf, ldf)
    return occf.reshape(n, hwp)[:, :hw].reshape(n, 1, h, w)


# -----------------------------------------------------------------------------
# Forward
# -----------------------------------------------------------------------------
def scdiffer_forward(img1, img2, alpha=0.33, filter_size=5):
    img1 = img1.astype(jnp.float32)
    img2 = img2.astype(jnp.float32)
    n, c, h, w = img1.shape
    assert c == 3, "SCDiffer expects RGB (N, 3, H, W) input"

    lab1 = _rgb_to_lab(img1)
    lab2 = _rgb_to_lab(img2)

    cs, ld = _structure_color_maps(img1, img2, lab1, lab2, filter_size)

    # Per-image scalar statistics (torch mean / unbiased std over dims [1,2,3]).
    # Cheap fused XLA reductions over the two single-channel maps.
    def stats2(v):
        return jnp.mean(v, axis=(1, 2)), jnp.std(v, axis=(1, 2), ddof=1)

    m_cs, s_cs = stats2(cs)
    m_ld, s_ld = stats2(ld)
    csn = (cs - m_cs[:, None, None]) / s_cs[:, None, None]
    ldn = (ld - m_ld[:, None, None]) / s_ld[:, None, None]
    occ_raw = ldn * csn + ldn + csn * alpha        # only feeds the reductions below
    m_oc, s_oc = stats2(occ_raw)

    zeros = jnp.zeros_like(m_cs)
    stats = jnp.stack([m_cs, 1.0 / s_cs, m_ld, 1.0 / s_ld,
                       m_oc, 1.0 / s_oc, zeros, zeros], axis=1)   # (N, 8)

    return _finalize(cs, ld, stats, alpha, h, w)


# -----------------------------------------------------------------------------
# Pure-JAX reference (mirrors the PyTorch module) for the self-check.
# -----------------------------------------------------------------------------
def _reference_rgb_to_lab(img):
    flat = img.reshape(-1, 3)
    lin = (flat <= 0.04045).astype(jnp.float32)
    expm = (flat > 0.04045).astype(jnp.float32)
    rgb = flat / 12.92 * lin + jnp.power((flat + 0.055) / 1.055, 2.4) * expm
    m = jnp.array([[0.412453, 0.212671, 0.019334],
                   [0.35758, 0.71516, 0.119193],
                   [0.180423, 0.072169, 0.950227]], jnp.float32)
    xyz = rgb @ m
    xyz = xyz * jnp.array([1.0 / 0.950456, 1.0, 1.0 / 1.088754], jnp.float32)
    eps3 = _EPS ** 3
    lm = (xyz <= eps3).astype(jnp.float32)
    em = (xyz > eps3).astype(jnp.float32)
    fx = (xyz / (3.0 * _EPS * _EPS) + 4.0 / 29.0) * lm + jnp.power(xyz + 1e-6, 1.0 / 3.0) * em
    f = jnp.array([[0.0, 500.0, 0.0],
                   [116.0, -500.0, 200.0],
                   [0.0, 0.0, -200.0]], jnp.float32)
    lab = fx @ f + jnp.array([-16.0, 0.0, 0.0], jnp.float32)
    return lab.reshape(img.shape)


def _reference_forward(img1, img2, alpha=0.33, filter_size=5):
    n, c, h, w = img1.shape

    def dconv(x, k):
        kh, kw = k.shape
        xp = jnp.pad(x, ((0, 0), (0, 0), (kh // 2, kh // 2), (kw // 2, kw // 2)))
        out = jnp.zeros_like(x)
        for dy in range(kh):
            for dx in range(kw):
                out = out + k[dy, dx] * xp[:, :, dy:dy + h, dx:dx + w]
        return out

    g = _gaussian_1d(filter_size, 1.5)
    w5 = jnp.asarray(np.outer(g, g).astype(np.float32))
    mu1, mu2 = dconv(img1, w5), dconv(img2, w5)
    s11 = dconv(img1 * img1, w5) - mu1 * mu1
    s22 = dconv(img2 * img2, w5) - mu2 * mu2
    s12 = dconv(img1 * img2, w5) - mu1 * mu2
    con = (2.0 * s12 + _C2) / (s11 + s22 + _C2)
    con_str = jnp.mean(1.0 - con, axis=1, keepdims=True)

    k3 = jnp.ones((3, 3), jnp.float32) / 9.0
    b1 = dconv(_reference_rgb_to_lab(img1), k3)
    b2 = dconv(_reference_rgb_to_lab(img2), k3)
    lab_diff = jnp.sqrt(jnp.sum((b1 - b2) ** 2, axis=1, keepdims=True))

    def std_(v):
        m = jnp.mean(v, axis=(1, 2, 3), keepdims=True)
        s = jnp.std(v, axis=(1, 2, 3), ddof=1, keepdims=True)
        return (v - m) / s

    cs = std_(con_str)
    ld = std_(lab_diff)
    occ = ld * cs + ld + cs * alpha
    return jnp.clip(std_(occ), 0.0, 1.0)


if __name__ == "__main__":
    key = jax.random.PRNGKey(0)
    k1, k2 = jax.random.split(key)
    N, C, H, W = 2, 3, 16, 16
    img1 = jax.random.uniform(k1, (N, C, H, W), dtype=jnp.float32)
    img2 = jax.random.uniform(k2, (N, C, H, W), dtype=jnp.float32)

    fwd = jax.jit(lambda a, b: scdiffer_forward(a, b, alpha=0.33))
    occ_map = jax.block_until_ready(fwd(img1, img2))

    assert occ_map.shape == (N, 1, H, W)
    assert bool(jnp.all(jnp.isfinite(occ_map)))
    assert bool(jnp.all(occ_map >= 0.0)) and bool(jnp.all(occ_map <= 1.0))

    ref = jax.block_until_ready(
        jax.jit(lambda a, b: _reference_forward(a, b, alpha=0.33))(img1, img2))
    max_err = float(jnp.max(jnp.abs(occ_map - ref)))
    assert max_err < 1e-2, f"mismatch vs pure-JAX reference: {max_err}"

    print("KERNEL_OK")
</pallas_src>

<mosaic_0001>
module attributes {stable_mosaic.version = 11 : i64} {
  func.func @_rgb_to_lab_kernel(%arg0: i32, %arg1: memref<8x384xf32, #tpu.memory_space<vmem>>, %arg2: memref<384x384xf32, #tpu.memory_space<vmem>>, %arg3: memref<384x384xf32, #tpu.memory_space<vmem>>, %arg4: memref<1x384xf32, #tpu.memory_space<vmem>>, %arg5: memref<8x384xf32, #tpu.memory_space<vmem>>) attributes {dimension_semantics = [#tpu.dimension_semantics<parallel>], iteration_bounds = array<i64: 1>, scalar_prefetch = 0 : i64, scratch_operands = 0 : i64, tpu.core_type = #tpu.core_type<tc>, window_params = [{transform_indices = @transform_0, window_bounds = array<i64: 8, 384>}, {pipeline_mode = #tpu.pipeline_mode<synchronous>, transform_indices = @transform_1, window_bounds = array<i64: 384, 384>}, {pipeline_mode = #tpu.pipeline_mode<synchronous>, transform_indices = @transform_2, window_bounds = array<i64: 384, 384>}, {pipeline_mode = #tpu.pipeline_mode<synchronous>, transform_indices = @transform_3, window_bounds = array<i64: 1, 384>}, {transform_indices = @transform_4, window_bounds = array<i64: 8, 384>}]} {
    %c0 = arith.constant 0 : index
    %c0_0 = arith.constant 0 : index
    %0 = vector.load %arg1[%c0, %c0_0] : memref<8x384xf32, #tpu.memory_space<vmem>>, vector<8x384xf32>
    %cst = arith.constant 4.045000e-02 : f32
    %1 = vector.broadcast %cst : f32 to vector<8x384xf32>
    %2 = arith.cmpf ole, %0, %1 : vector<8x384xf32>
    %3 = arith.extui %2 : vector<8x384xi1> to vector<8x384xi32>
    %4 = arith.sitofp %3 : vector<8x384xi32> to vector<8x384xf32>
    %cst_1 = arith.constant 1.000000e+00 : f32
    %5 = vector.broadcast %cst_1 : f32 to vector<8x384xf32>
    %6 = arith.subf %5, %4 : vector<8x384xf32>
    %cst_2 = arith.constant 5.500000e-02 : f32
    %7 = vector.broadcast %cst_2 : f32 to vector<8x384xf32>
    %8 = arith.addf %0, %7 : vector<8x384xf32>
    %cst_3 = arith.constant 1.055000e+00 : f32
    %9 = vector.broadcast %cst_3 : f32 to vector<8x384xf32>
    %10 = arith.divf %8, %9 : vector<8x384xf32>
    %cst_4 = arith.constant 9.99999993E-9 : f32
    %11 = vector.broadcast %cst_4 : f32 to vector<8x384xf32>
    %12 = arith.maximumf %10, %11 : vector<8x384xf32>
    %13 = math.log %12 : vector<8x384xf32>
    %cst_5 = arith.constant 2.400000e+00 : f32
    %14 = vector.broadcast %cst_5 : f32 to vector<8x384xf32>
    %15 = arith.mulf %14, %13 : vector<8x384xf32>
    %16 = math.exp %15 : vector<8x384xf32>
    %cst_6 = arith.constant 1.292000e+01 : f32
    %17 = vector.broadcast %cst_6 : f32 to vector<8x384xf32>
    %18 = arith.divf %0, %17 : vector<8x384xf32>
    %19 = arith.mulf %18, %4 : vector<8x384xf32>
    %20 = arith.mulf %16, %6 : vector<8x384xf32>
    %21 = arith.addf %19, %20 : vector<8x384xf32>
    %c0_7 = arith.constant 0 : index
    %c0_8 = arith.constant 0 : index
    %22 = vector.load %arg2[%c0_7, %c0_8] : memref<384x384xf32, #tpu.memory_space<vmem>>, vector<384x384xf32>
    %cst_9 = arith.constant dense<0.000000e+00> : vector<8x384xf32>
    %23 = tpu.matmul %21, %22, %cst_9 {dimension_numbers = #tpu.dot_dimension_numbers<[1], [0], [0], [1], [0, 0, 1, 1], [], []>} : vector<8x384xf32>, vector<384x384xf32>, vector<8x384xf32> -> vector<8x384xf32>
    %cst_10 = arith.constant 0.00885645207 : f32
    %24 = vector.broadcast %cst_10 : f32 to vector<8x384xf32>
    %25 = arith.cmpf ole, %23, %24 : vector<8x384xf32>
    %26 = arith.extui %25 : vector<8x384xi1> to vector<8x384xi32>
    %27 = arith.sitofp %26 : vector<8x384xi32> to vector<8x384xf32>
    %cst_11 = arith.constant 1.000000e+00 : f32
    %28 = vector.broadcast %cst_11 : f32 to vector<8x384xf32>
    %29 = arith.subf %28, %27 : vector<8x384xf32>
    %cst_12 = arith.constant 9.99999997E-7 : f32
    %30 = vector.broadcast %cst_12 : f32 to vector<8x384xf32>
    %31 = arith.addf %23, %30 : vector<8x384xf32>
    %32 = math.log %31 : vector<8x384xf32>
    %cst_13 = arith.constant 3.000000e+00 : f32
    %33 = vector.broadcast %cst_13 : f32 to vector<8x384xf32>
    %34 = arith.divf %32, %33 : vector<8x384xf32>
    %35 = math.exp %34 : vector<8x384xf32>
    %cst_14 = arith.constant 0.12841855 : f32
    %36 = vector.broadcast %cst_14 : f32 to vector<8x384xf32>
    %37 = arith.divf %23, %36 : vector<8x384xf32>
    %cst_15 = arith.constant 0.137931034 : f32
    %38 = vector.broadcast %cst_15 : f32 to vector<8x384xf32>
    %39 = arith.addf %37, %38 : vector<8x384xf32>
    %40 = arith.mulf %39, %27 : vector<8x384xf32>
    %41 = arith.mulf %35, %29 : vector<8x384xf32>
    %42 = arith.addf %40, %41 : vector<8x384xf32>
    %c0_16 = arith.constant 0 : index
    %c0_17 = arith.constant 0 : index
    %43 = vector.load %arg3[%c0_16, %c0_17] : memref<384x384xf32, #tpu.memory_space<vmem>>, vector<384x384xf32>
    %cst_18 = arith.constant dense<0.000000e+00> : vector<8x384xf32>
    %44 = tpu.matmul %42, %43, %cst_18 {dimension_numbers = #tpu.dot_dimension_numbers<[1], [0], [0], [1], [0, 0, 1, 1], [], []>} : vector<8x384xf32>, vector<384x384xf32>, vector<8x384xf32> -> vector<8x384xf32>
    %c0_19 = arith.constant 0 : index
    %c0_20 = arith.constant 0 : index
    %45 = vector.load %arg4[%c0_19, %c0_20] : memref<1x384xf32, #tpu.memory_space<vmem>>, vector<1x384xf32>
    %46 = vector.broadcast %45 : vector<1x384xf32> to vector<8x384xf32>
    %47 = arith.addf %44, %46 : vector<8x384xf32>
    %c0_21 = arith.constant 0 : index
    %c0_22 = arith.constant 0 : index
    %48 = vector.load %arg5[%c0_21, %c0_22] : memref<8x384xf32, #tpu.memory_space<vmem>>, vector<8x384xf32>
    tpu.vector_store %arg5[%c0_21, %c0_22], %47 {strides = array<i32>} : memref<8x384xf32, #tpu.memory_space<vmem>>, vector<8x384xf32>,
    return
  }
  func.func @transform_0(%arg0: i32) -> (i32, i32) {
    %c0_i32 = arith.constant 0 : i32
    %c0_i32_0 = arith.constant 0 : i32
    return %arg0, %c0_i32 : i32, i32
  }
  func.func @transform_1(%arg0: i32) -> (i32, i32) {
    %c0_i32 = arith.constant 0 : i32
    %c0_i32_0 = arith.constant 0 : i32
    %c0_i32_1 = arith.constant 0 : i32
    return %c0_i32, %c0_i32_0 : i32, i32
  }
  func.func @transform_2(%arg0: i32) -> (i32, i32) {
    %c0_i32 = arith.constant 0 : i32
    %c0_i32_0 = arith.constant 0 : i32
    %c0_i32_1 = arith.constant 0 : i32
    return %c0_i32, %c0_i32_0 : i32, i32
  }
  func.func @transform_3(%arg0: i32) -> (i32, i32) {
    %c0_i32 = arith.constant 0 : i32
    %c0_i32_0 = arith.constant 0 : i32
    %c0_i32_1 = arith.constant 0 : i32
    return %c0_i32, %c0_i32_0 : i32, i32
  }
  func.func @transform_4(%arg0: i32) -> (i32, i32) {
    %c0_i32 = arith.constant 0 : i32
    %c0_i32_0 = arith.constant 0 : i32
    return %arg0, %c0_i32 : i32, i32
  }
}

module attributes {stable_mosaic.version = 11 : i64} {
  func.func @_scdiffer_main_kernel(%arg0: i32, %arg1: i32, %arg2: memref<1x3x8x16xf32, #tpu.memory_space<vmem>>, %arg3: memref<1x3x8x16xf32, #tpu.memory_space<vmem>>, %arg4: memref<1x3x8x16xf32, #tpu.memory_space<vmem>>, %arg5: memref<1x3x8x16xf32, #tpu.memory_space<vmem>>, %arg6: memref<1x3x8x16xf32, #tpu.memory_space<vmem>>, %arg7: memref<1x3x8x16xf32, #tpu.memory_space<vmem>>, %arg8: memref<1x3x8x16xf32, #tpu.memory_space<vmem>>, %arg9: memref<1x3x8x16xf32, #tpu.memory_space<vmem>>, %arg10: memref<1x3x8x16xf32, #tpu.memory_space<vmem>>, %arg11: memref<1x3x8x16xf32, #tpu.memory_space<vmem>>, %arg12: memref<1x3x8x16xf32, #tpu.memory_space<vmem>>, %arg13: memref<1x3x8x16xf32, #tpu.memory_space<vmem>>, %arg14: memref<16x16xf32, #tpu.memory_space<vmem>>, %arg15: memref<16x16xf32, #tpu.memory_space<vmem>>, %arg16: memref<1x8x16xf32, #tpu.memory_space<vmem>>, %arg17: memref<1x8x16xf32, #tpu.memory_space<vmem>>, %arg18: memref<3x24x16xf32, #tpu.memory_space<vmem>>, %arg19: memref<3x24x16xf32, #tpu.memory_space<vmem>>, %arg20: memref<3x24x16xf32, #tpu.memory_space<vmem>>, %arg21: memref<3x24x16xf32, #tpu.memory_space<vmem>>) attributes {dimension_semantics = [#tpu.dimension_semantics<parallel>, #tpu.dimension_semantics<parallel>], iteration_bounds = array<i64: 2, 2>, scalar_prefetch = 0 : i64, scratch_operands = 4 : i64, tpu.core_type = #tpu.core_type<tc>, window_params = [{transform_indices = @transform_0, window_bounds = array<i64: 1, 3, 8, 16>}, {transform_indices = @transform_1, window_bounds = array<i64: 1, 3, 8, 16>}, {transform_indices = @transform_2, window_bounds = array<i64: 1, 3, 8, 16>}, {transform_indices = @transform_3, window_bounds = array<i64: 1, 3, 8, 16>}, {transform_indices = @transform_4, window_bounds = array<i64: 1, 3, 8, 16>}, {transform_indices = @transform_5, window_bounds = array<i64: 1, 3, 8, 16>}, {transform_indices = @transform_6, window_bounds = array<i64: 1, 3, 8, 16>}, {transform_indices = @transform_7, window_bounds = array<i64: 1, 3, 8, 16>}, {transform_indices = @transform_8, window_bounds = array<i64: 1, 3, 8, 16>}, {transform_indices = @transform_9, window_bounds = array<i64: 1, 3, 8, 16>}, {transform_indices = @transform_10, window_bounds = array<i64: 1, 3, 8, 16>}, {transform_indices = @transform_11, window_bounds = array<i64: 1, 3, 8, 16>}, {pipeline_mode = #tpu.pipeline_mode<synchronous>, transform_indices = @transform_12, window_bounds = array<i64: 16, 16>}, {pipeline_mode = #tpu.pipeline_mode<synchronous>, transform_indices = @transform_13, window_bounds = array<i64: 16, 16>}, {transform_indices = @transform_14, window_bounds = array<i64: 1, 8, 16>}, {transform_indices = @transform_15, window_bounds = array<i64: 1, 8, 16>}]} {
    %c0_i32 = arith.constant 0 : i32
    %0 = arith.cmpi sgt, %arg1, %c0_i32 : i32
    %1 = arith.extui %0 : i1 to i32
    %2 = arith.sitofp %1 : i32 to f32
    %c1_i32 = arith.constant 1 : i32
    %3 = arith.cmpi slt, %arg1, %c1_i32 : i32
    %4 = arith.extui %3 : i1 to i32
    %5 = arith.sitofp %4 : i32 to f32
    %c0 = arith.constant 0 : index
    %c0_0 = arith.constant 0 : index
    %c0_1 = arith.constant 0 : index
    %c0_2 = arith.constant 0 : index
    %6 = vector.load %arg3[%c0, %c0_0, %c0_1, %c0_2] : memref<1x3x8x16xf32, #tpu.memory_space<vmem>>, vector<1x3x8x16xf32>
    %7 = vector.shape_cast %6 : vector<1x3x8x16xf32> to vector<3x8x16xf32>
    %8 = vector.broadcast %2 : f32 to vector<3x8x16xf32>
    %9 = arith.mulf %7, %8 : vector<3x8x16xf32>
    %c0_3 = arith.constant 0 : index
    %c0_4 = arith.constant 0 : index
    %c0_5 = arith.constant 0 : index
    %10 = vector.load %arg18[%c0_3, %c0_4, %c0_5] : memref<3x24x16xf32, #tpu.memory_space<vmem>>, vector<3x8x16xf32>
    tpu.vector_store %arg18[%c0_3, %c0_4, %c0_5], %9 {strides = array<i32>} : memref<3x24x16xf32, #tpu.memory_space<vmem>>, vector<3x8x16xf32>,
    %c0_6 = arith.constant 0 : index
    %c0_7 = arith.constant 0 : index
    %c0_8 = arith.constant 0 : index
    %c0_9 = arith.constant 0 : index
    %11 = vector.load %arg2[%c0_6, %c0_7, %c0_8, %c0_9] : memref<1x3x8x16xf32, #tpu.memory_space<vmem>>, vector<1x3x8x16xf32>
    %12 = vector.shape_cast %11 : vector<1x3x8x16xf32> to vector<3x8x16xf32>
    %c0_10 = arith.constant 0 : index
    %c8 = arith.constant 8 : index
    %c0_11 = arith.constant 0 : index
    %13 = vector.load %arg18[%c0_10, %c8, %c0_11] : memref<3x24x16xf32, #tpu.memory_space<vmem>>, vector<3x8x16xf32>
    tpu.vector_store %arg18[%c0_10, %c8, %c0_11], %12 {strides = array<i32>} : memref<3x24x16xf32, #tpu.memory_space<vmem>>, vector<3x8x16xf32>,
    %c0_12 = arith.constant 0 : index
    %c0_13 = arith.constant 0 : index
    %c0_14 = arith.constant 0 : index
    %c0_15 = arith.constant 0 : index
    %14 = vector.load %arg4[%c0_12, %c0_13, %c0_14, %c0_15] : memref<1x3x8x16xf32, #tpu.memory_space<vmem>>, vector<1x3x8x16xf32>
    %15 = vector.shape_cast %14 : vector<1x3x8x16xf32> to vector<3x8x16xf32>
    %16 = vector.broadcast %5 : f32 to vector<3x8x16xf32>
    %17 = arith.mulf %15, %16 : vector<3x8x16xf32>
    %c0_16 = arith.constant 0 : index
    %c16 = arith.constant 16 : index
    %c0_17 = arith.constant 0 : index
    %18 = vector.load %arg18[%c0_16, %c16, %c0_17] : memref<3x24x16xf32, #tpu.memory_space<vmem>>, vector<3x8x16xf32>
    tpu.vector_store %arg18[%c0_16, %c16, %c0_17], %17 {strides = array<i32>} : memref<3x24x16xf32, #tpu.memory_space<vmem>>, vector<3x8x16xf32>,
    %c0_18 = arith.constant 0 : index
    %c0_19 = arith.constant 0 : index
    %c0_20 = arith.constant 0 : index
    %c0_21 = arith.constant 0 : index
    %19 = vector.load %arg6[%c0_18, %c0_19, %c0_20, %c0_21] : memref<1x3x8x16xf32, #tpu.memory_space<vmem>>, vector<1x3x8x16xf32>
    %20 = vector.shape_cast %19 : vector<1x3x8x16xf32> to vector<3x8x16xf32>
    %21 = vector.broadcast %2 : f32 to vector<3x8x16xf32>
    %22 = arith.mulf %20, %21 : vector<3x8x16xf32>
    %c0_22 = arith.constant 0 : index
    %c0_23 = arith.constant 0 : index
    %c0_24 = arith.constant 0 : index
    %23 = vector.load %arg19[%c0_22, %c0_23, %c0_24] : memref<3x24x16xf32, #tpu.memory_space<vmem>>, vector<3x8x16xf32>
    tpu.vector_store %arg19[%c0_22, %c0_23, %c0_24], %22 {strides = array<i32>} : memref<3x24x16xf32, #tpu.memory_space<vmem>>, vector<3x8x16xf32>,
    %c0_25 = arith.constant 0 : index
    %c0_26 = arith.constant 0 : index
    %c0_27 = arith.constant 0 : index
    %c0_28 = arith.constant 0 : index
    %24 = vector.load %arg5[%c0_25, %c0_26, %c0_27, %c0_28] : memref<1x3x8x16xf32, #tpu.memory_space<vmem>>, vector<1x3x8x16xf32>
    %25 = vector.shape_cast %24 : vector<1x3x8x16xf32> to vector<3x8x16xf32>
    %c0_29 = arith.constant 0 : index
    %c8_30 = arith.constant 8 : index
    %c0_31 = arith.constant 0 : index
    %26 = vector.load %arg19[%c0_29, %c8_30, %c0_31] : memref<3x24x16xf32, #tpu.memory_space<vmem>>, vector<3x8x16xf32>
    tpu.vector_store %arg19[%c0_29, %c8_30, %c0_31], %25 {strides = array<i32>} : memref<3x24x16xf32, #tpu.memory_space<vmem>>, vector<3x8x16xf32>,
    %c0_32 = arith.constant 0 : index
    %c0_33 = arith.constant 0 : index
    %c0_34 = arith.constant 0 : index
    %c0_35 = arith.constant 0 : index
    %27 = vector.load %arg7[%c0_32, %c0_33, %c0_34, %c0_35] : memref<1x3x8x16xf32, #tpu.memory_space<vmem>>, vector<1x3x8x16xf32>
    %28 = vector.shape_cast %27 : vector<1x3x8x16xf32> to vector<3x8x16xf32>
    %29 = vector.broadcast %5 : f32 to vector<3x8x16xf32>
    %30 = arith.mulf %28, %29 : vector<3x8x16xf32>
    %c0_36 = arith.constant 0 : index
    %c16_37 = arith.constant 16 : index
    %c0_38 = arith.constant 0 : index
    %31 = vector.load %arg19[%c0_36, %c16_37, %c0_38] : memref<3x24x16xf32, #tpu.memory_space<vmem>>, vector<3x8x16xf32>
    tpu.vector_store %arg19[%c0_36, %c16_37, %c0_38], %30 {strides = array<i32>} : memref<3x24x16xf32, #tpu.memory_space<vmem>>, vector<3x8x16xf32>,
    %c0_39 = arith.constant 0 : index
    %c0_40 = arith.constant 0 : index
    %c0_41 = arith.constant 0 : index
    %c0_42 = arith.constant 0 : index
    %32 = vector.load %arg9[%c0_39, %c0_40, %c0_41, %c0_42] : memref<1x3x8x16xf32, #tpu.memory_space<vmem>>, vector<1x3x8x16xf32>
    %33 = vector.shape_cast %32 : vector<1x3x8x16xf32> to vector<3x8x16xf32>
    %34 = vector.broadcast %2 : f32 to vector<3x8x16xf32>
    %35 = arith.mulf %33, %34 : vector<3x8x16xf32>
    %c0_43 = arith.constant 0 : index
    %c0_44 = arith.constant 0 : index
    %c0_45 = arith.constant 0 : index
    %36 = vector.load %arg20[%c0_43, %c0_44, %c0_45] : memref<3x24x16xf32, #tpu.memory_space<vmem>>, vector<3x8x16xf32>
    tpu.vector_store %arg20[%c0_43, %c0_44, %c0_45], %35 {strides = array<i32>} : memref<3x24x16xf32, #tpu.memory_space<vmem>>, vector<3x8x16xf32>,
    %c0_46 = arith.constant 0 : index
    %c0_47 = arith.constant 0 : index
    %c0_48 = arith.constant 0 : index
    %c0_49 = arith.constant 0 : index
    %37 = vector.load %arg8[%c0_46, %c0_47, %c0_48, %c0_49] : memref<1x3x8x16xf32, #tpu.memory_space<vmem>>, vector<1x3x8x16xf32>
    %38 = vector.shape_cast %37 : vector<1x3x8x16xf32> to vector<3x8x16xf32>
    %c0_50 = arith.constant 0 : index
    %c8_51 = arith.constant 8 : index
    %c0_52 = arith.constant 0 : index
    %39 = vector.load %arg20[%c0_50, %c8_51, %c0_52] : memref<3x24x16xf32, #tpu.memory_space<vmem>>, vector<3x8x16xf32>
    tpu.vector_store %arg20[%c0_50, %c8_51, %c0_52], %38 {strides = array<i32>} : memref<3x24x16xf32, #tpu.memory_space<vmem>>, vector<3x8x16xf32>,
    %c0_53 = arith.constant 0 : index
    %c0_54 = arith.constant 0 : index
    %c0_55 = arith.constant 0 : index
    %c0_56 = arith.constant 0 : index
    %40 = vector.load %arg10[%c0_53, %c0_54, %c0_55, %c0_56] : memref<1x3x8x16xf32, #tpu.memory_space<vmem>>, vector<1x3x8x16xf32>
    %41 = vector.shape_cast %40 : vector<1x3x8x16xf32> to vector<3x8x16xf32>
    %42 = vector.broadcast %5 : f32 to vector<3x8x16xf32>
    %43 = arith.mulf %41, %42 : vector<3x8x16xf32>
    %c0_57 = arith.constant 0 : index
    %c16_58 = arith.constant 16 : index
    %c0_59 = arith.constant 0 : index
    %44 = vector.load %arg20[%c0_57, %c16_58, %c0_59] : memref<3x24x16xf32, #tpu.memory_space<vmem>>, vector<3x8x16xf32>
    tpu.vector_store %arg20[%c0_57, %c16_58, %c0_59], %43 {strides = array<i32>} : memref<3x24x16xf32, #tpu.memory_space<vmem>>, vector<3x8x16xf32>,
    %c0_60 = arith.constant 0 : index
    %c0_61 = arith.constant 0 : index
    %c0_62 = arith.constant 0 : index
    %c0_63 = arith.constant 0 : index
    %45 = vector.load %arg12[%c0_60, %c0_61, %c0_62, %c0_63] : memref<1x3x8x16xf32, #tpu.memory_space<vmem>>, vector<1x3x8x16xf32>
    %46 = vector.shape_cast %45 : vector<1x3x8x16xf32> to vector<3x8x16xf32>
    %47 = vector.broadcast %2 : f32 to vector<3x8x16xf32>
    %48 = arith.mulf %46, %47 : vector<3x8x16xf32>
    %c0_64 = arith.constant 0 : index
    %c0_65 = arith.constant 0 : index
    %c0_66 = arith.constant 0 : index
    %49 = vector.load %arg21[%c0_64, %c0_65, %c0_66] : memref<3x24x16xf32, #tpu.memory_space<vmem>>, vector<3x8x16xf32>
    tpu.vector_store %arg21[%c0_64, %c0_65, %c0_66], %48 {strides = array<i32>} : memref<3x24x16xf32, #tpu.memory_space<vmem>>, vector<3x8x16xf32>,
    %c0_67 = arith.constant 0 : index
    %c0_68 = arith.constant 0 : index
    %c0_69 = arith.constant 0 : index
    %c0_70 = arith.constant 0 : index
    %50 = vector.load %arg11[%c0_67, %c0_68, %c0_69, %c0_70] : memref<1x3x8x16xf32, #tpu.memory_space<vmem>>, vector<1x3x8x16xf32>
    %51 = vector.shape_cast %50 : vector<1x3x8x16xf32> to vector<3x8x16xf32>
    %c0_71 = arith.constant 0 : index
    %c8_72 = arith.constant 8 : index
    %c0_73 = arith.constant 0 : index
    %52 = vector.load %arg21[%c0_71, %c8_72, %c0_73] : memref<3x24x16xf32, #tpu.memory_space<vmem>>, vector<3x8x16xf32>
    tpu.vector_store %arg21[%c0_71, %c8_72, %c0_73], %51 {strides = array<i32>} : memref<3x24x16xf32, #tpu.memory_space<vmem>>, vector<3x8x16xf32>,
    %c0_74 = arith.constant 0 : index
    %c0_75 = arith.constant 0 : index
    %c0_76 = arith.constant 0 : index
    %c0_77 = arith.constant 0 : index
    %53 = vector.load %arg13[%c0_74, %c0_75, %c0_76, %c0_77] : memref<1x3x8x16xf32, #tpu.memory_space<vmem>>, vector<1x3x8x16xf32>
    %54 = vector.shape_cast %53 : vector<1x3x8x16xf32> to vector<3x8x16xf32>
    %55 = vector.broadcast %5 : f32 to vector<3x8x16xf32>
    %56 = arith.mulf %54, %55 : vector<3x8x16xf32>
    %c0_78 = arith.constant 0 : index
    %c16_79 = arith.constant 16 : index
    %c0_80 = arith.constant 0 : index
    %57 = vector.load %arg21[%c0_78, %c16_79, %c0_80] : memref<3x24x16xf32, #tpu.memory_space<vmem>>, vector<3x8x16xf32>
    tpu.vector_store %arg21[%c0_78, %c16_79, %c0_80], %56 {strides = array<i32>} : memref<3x24x16xf32, #tpu.memory_space<vmem>>, vector<3x8x16xf32>,
    %c0_81 = arith.constant 0 : index
    %c0_82 = arith.constant 0 : index
    %c0_83 = arith.constant 0 : index
    %58 = vector.load %arg18[%c0_81, %c0_82, %c0_83] : memref<3x24x16xf32, #tpu.memory_space<vmem>>, vector<3x24x16xf32>
    %c0_84 = arith.constant 0 : index
    %c0_85 = arith.constant 0 : index
    %c0_86 = arith.constant 0 : index
    %59 = vector.load %arg19[%c0_84, %c0_85, %c0_86] : memref<3x24x16xf32, #tpu.memory_space<vmem>>, vector<3x24x16xf32>
    %c0_87 = arith.constant 0 : index
    %c0_88 = arith.constant 0 : index
    %60 = vector.load %arg14[%c0_87, %c0_88] : memref<16x16xf32, #tpu.memory_space<vmem>>, vector<16x16xf32>
    %c0_89 = arith.constant 0 : index
    %c0_90 = arith.constant 0 : index
    %61 = vector.load %arg15[%c0_89, %c0_90] : memref<16x16xf32, #tpu.memory_space<vmem>>, vector<16x16xf32>
    %62 = vector.extract_strided_slice %58 {offsets = [0, 6, 0], sizes = [3, 8, 16], strides = [1, 1, 1]} : vector<3x24x16xf32> to vector<3x8x16xf32>
    %cst = arith.constant 0.120078377 : f32
    %63 = vector.broadcast %cst : f32 to vector<3x8x16xf32>
    %64 = arith.mulf %63, %62 : vector<3x8x16xf32>
    %65 = vector.extract_strided_slice %58 {offsets = [0, 7, 0], sizes = [3, 8, 16], strides = [1, 1, 1]} : vector<3x24x16xf32> to vector<3x8x16xf32>
    %cst_91 = arith.constant 0.233880743 : f32
    %66 = vector.broadcast %cst_91 : f32 to vector<3x8x16xf32>
    %67 = arith.mulf %66, %65 : vector<3x8x16xf32>
    %68 = arith.addf %64, %67 : vector<3x8x16xf32>
    %69 = vector.extract_strided_slice %58 {offsets = [0, 8, 0], sizes = [3, 8, 16], strides = [1, 1, 1]} : vector<3x24x16xf32> to vector<3x8x16xf32>
    %cst_92 = arith.constant 0.292081714 : f32
    %70 = vector.broadcast %cst_92 : f32 to vector<3x8x16xf32>
    %71 = arith.mulf %70, %69 : vector<3x8x16xf32>
    %72 = arith.addf %68, %71 : vector<3x8x16xf32>
    %73 = vector.extract_strided_slice %58 {offsets = [0, 9, 0], sizes = [3, 8, 16], strides = [1, 1, 1]} : vector<3x24x16xf32> to vector<3x8x16xf32>
    %cst_93 = arith.constant 0.233880743 : f32
    %74 = vector.broadcast %cst_93 : f32 to vector<3x8x16xf32>
    %75 = arith.mulf %74, %73 : vector<3x8x16xf32>
    %76 = arith.addf %72, %75 : vector<3x8x16xf32>
    %77 = vector.extract_strided_slice %58 {offsets = [0, 10, 0], sizes = [3, 8, 16], strides = [1, 1, 1]} : vector<3x24x16xf32> to vector<3x8x16xf32>
    %cst_94 = arith.constant 0.120078377 : f32
    %78 = vector.broadcast %cst_94 : f32 to vector<3x8x16xf32>
    %79 = arith.mulf %78, %77 : vector<3x8x16xf32>
    %80 = arith.addf %76, %79 : vector<3x8x16xf32>
    %81 = vector.shape_cast %80 : vector<3x8x16xf32> to vector<24x16xf32>
    %cst_95 = arith.constant dense<0.000000e+00> : vector<24x16xf32>
    %82 = tpu.matmul %81, %60, %cst_95 {dimension_numbers = #tpu.dot_dimension_numbers<[1], [0], [0], [1], [0, 0, 1, 1], [], []>} : vector<24x16xf32>, vector<16x16xf32>, vector<24x16xf32> -> vector<24x16xf32>
    %83 = vector.shape_cast %82 : vector<24x16xf32> to vector<3x8x16xf32>
    %84 = vector.extract_strided_slice %59 {offsets = [0, 6, 0], sizes = [3, 8, 16], strides = [1, 1, 1]} : vector<3x24x16xf32> to vector<3x8x16xf32>
    %cst_96 = arith.constant 0.120078377 : f32
    %85 = vector.broadcast %cst_96 : f32 to vector<3x8x16xf32>
    %86 = arith.mulf %85, %84 : vector<3x8x16xf32>
    %87 = vector.extract_strided_slice %59 {offsets = [0, 7, 0], sizes = [3, 8, 16], strides = [1, 1, 1]} : vector<3x24x16xf32> to vector<3x8x16xf32>
    %cst_97 = arith.constant 0.233880743 : f32
    %88 = vector.broadcast %cst_97 : f32 to vector<3x8x16xf32>
    %89 = arith.mulf %88, %87 : vector<3x8x16xf32>
    %90 = arith.addf %86, %89 : vector<3x8x16xf32>
    %91 = vector.extract_strided_slice %59 {offsets = [0, 8, 0], sizes = [3, 8, 16], strides = [1, 1, 1]} : vector<3x24x16xf32> to vector<3x8x16xf32>
    %cst_98 = arith.constant 0.292081714 : f32
    %92 = vector.broadcast %cst_98 : f32 to vector<3x8x16xf32>
    %93 = arith.mulf %92, %91 : vector<3x8x16xf32>
    %94 = arith.addf %90, %93 : vector<3x8x16xf32>
    %95 = vector.extract_strided_slice %59 {offsets = [0, 9, 0], sizes = [3, 8, 16], strides = [1, 1, 1]} : vector<3x24x16xf32> to vector<3x8x16xf32>
    %cst_99 = arith.constant 0.233880743 : f32
    %96 = vector.broadcast %cst_99 : f32 to vector<3x8x16xf32>
    %97 = arith.mulf %96, %95 : vector<3x8x16xf32>
    %98 = arith.addf %94, %97 : vector<3x8x16xf32>
    %99 = vector.extract_strided_slice %59 {offsets = [0, 10, 0], sizes = [3, 8, 16], strides = [1, 1, 1]} : vector<3x24x16xf32> to vector<3x8x16xf32>
    %cst_100 = arith.constant 0.120078377 : f32
    %100 = vector.broadcast %cst_100 : f32 to vector<3x8x16xf32>
    %101 = arith.mulf %100, %99 : vector<3x8x16xf32>
    %102 = arith.addf %98, %101 : vector<3x8x16xf32>
    %103 = vector.shape_cast %102 : vector<3x8x16xf32> to vector<24x16xf32>
    %cst_101 = arith.constant dense<0.000000e+00> : vector<24x16xf32>
    %104 = tpu.matmul %103, %60, %cst_101 {dimension_numbers = #tpu.dot_dimension_numbers<[1], [0], [0], [1], [0, 0, 1, 1], [], []>} : vector<24x16xf32>, vector<16x16xf32>, vector<24x16xf32> -> vector<24x16xf32>
    %105 = vector.shape_cast %104 : vector<24x16xf32> to vector<3x8x16xf32>
    %106 = arith.mulf %58, %58 : vector<3x24x16xf32>
    %107 = vector.extract_strided_slice %106 {offsets = [0, 6, 0], sizes = [3, 8, 16], strides = [1, 1, 1]} : vector<3x24x16xf32> to vector<3x8x16xf32>
    %cst_102 = arith.constant 0.120078377 : f32
    %108 = vector.broadcast %cst_102 : f32 to vector<3x8x16xf32>
    %109 = arith.mulf %108, %107 : vector<3x8x16xf32>
    %110 = vector.extract_strided_slice %106 {offsets = [0, 7, 0], sizes = [3, 8, 16], strides = [1, 1, 1]} : vector<3x24x16xf32> to vector<3x8x16xf32>
    %cst_103 = arith.constant 0.233880743 : f32
    %111 = vector.broadcast %cst_103 : f32 to vector<3x8x16xf32>
    %112 = arith.mulf %111, %110 : vector<3x8x16xf32>
    %113 = arith.addf %109, %112 : vector<3x8x16xf32>
    %114 = vector.extract_strided_slice %106 {offsets = [0, 8, 0], sizes = [3, 8, 16], strides = [1, 1, 1]} : vector<3x24x16xf32> to vector<3x8x16xf32>
    %cst_104 = arith.constant 0.292081714 : f32
    %115 = vector.broadcast %cst_104 : f32 to vector<3x8x16xf32>
    %116 = arith.mulf %115, %114 : vector<3x8x16xf32>
    %117 = arith.addf %113, %116 : vector<3x8x16xf32>
    %118 = vector.extract_strided_slice %106 {offsets = [0, 9, 0], sizes = [3, 8, 16], strides = [1, 1, 1]} : vector<3x24x16xf32> to vector<3x8x16xf32>
    %cst_105 = arith.constant 0.233880743 : f32
    %119 = vector.broadcast %cst_105 : f32 to vector<3x8x16xf32>
    %120 = arith.mulf %119, %118 : vector<3x8x16xf32>
    %121 = arith.addf %117, %120 : vector<3x8x16xf32>
    %122 = vector.extract_strided_slice %106 {offsets = [0, 10, 0], sizes = [3, 8, 16], strides = [1, 1, 1]} : vector<3x24x16xf32> to vector<3x8x16xf32>
    %cst_106 = arith.constant 0.120078377 : f32
    %123 = vector.broadcast %cst_106 : f32 to vector<3x8x16xf32>
    %124 = arith.mulf %123, %122 : vector<3x8x16xf32>
    %125 = arith.addf %121, %124 : vector<3x8x16xf32>
    %126 = vector.shape_cast %125 : vector<3x8x16xf32> to vector<24x16xf32>
    %cst_107 = arith.constant dense<0.000000e+00> : vector<24x16xf32>
    %127 = tpu.matmul %126, %60, %cst_107 {dimension_numbers = #tpu.dot_dimension_numbers<[1], [0], [0], [1], [0, 0, 1, 1], [], []>} : vector<24x16xf32>, vector<16x16xf32>, vector<24x16xf32> -> vector<24x16xf32>
    %128 = vector.shape_cast %127 : vector<24x16xf32> to vector<3x8x16xf32>
    %129 = arith.mulf %83, %83 : vector<3x8x16xf32>
    %130 = arith.subf %128, %129 : vector<3x8x16xf32>
    %131 = arith.mulf %59, %59 : vector<3x24x16xf32>
    %132 = vector.extract_strided_slice %131 {offsets = [0, 6, 0], sizes = [3, 8, 16], strides = [1, 1, 1]} : vector<3x24x16xf32> to vector<3x8x16xf32>
    %cst_108 = arith.constant 0.120078377 : f32
    %133 = vector.broadcast %cst_108 : f32 to vector<3x8x16xf32>
    %134 = arith.mulf %133, %132 : vector<3x8x16xf32>
    %135 = vector.extract_strided_slice %131 {offsets = [0, 7, 0], sizes = [3, 8, 16], strides = [1, 1, 1]} : vector<3x24x16xf32> to vector<3x8x16xf32>
    %cst_109 = arith.constant 0.233880743 : f32
    %136 = vector.broadcast %cst_109 : f32 to vector<3x8x16xf32>
    %137 = arith.mulf %136, %135 : vector<3x8x16xf32>
    %138 = arith.addf %134, %137 : vector<3x8x16xf32>
    %139 = vector.extract_strided_slice %131 {offsets = [0, 8, 0], sizes = [3, 8, 16], strides = [1, 1, 1]} : vector<3x24x16xf32> to vector<3x8x16xf32>
    %cst_110 = arith.constant 0.292081714 : f32
    %140 = vector.broadcast %cst_110 : f32 to vector<3x8x16xf32>
    %141 = arith.mulf %140, %139 : vector<3x8x16xf32>
    %142 = arith.addf %138, %141 : vector<3x8x16xf32>
    %143 = vector.extract_strided_slice %131 {offsets = [0, 9, 0], sizes = [3, 8, 16], strides = [1, 1, 1]} : vector<3x24x16xf32> to vector<3x8x16xf32>
    %cst_111 = arith.constant 0.233880743 : f32
    %144 = vector.broadcast %cst_111 : f32 to vector<3x8x16xf32>
    %145 = arith.mulf %144, %143 : vector<3x8x16xf32>
    %146 = arith.addf %142, %145 : vector<3x8x16xf32>
    %147 = vector.extract_strided_slice %131 {offsets = [0, 10, 0], sizes = [3, 8, 16], strides = [1, 1, 1]} : vector<3x24x16xf32> to vector<3x8x16xf32>
    %cst_112 = arith.constant 0.120078377 : f32
    %148 = vector.broadcast %cst_112 : f32 to vector<3x8x16xf32>
    %149 = arith.mulf %148, %147 : vector<3x8x16xf32>
    %150 = arith.addf %146, %149 : vector<3x8x16xf32>
    %151 = vector.shape_cast %150 : vector<3x8x16xf32> to vector<24x16xf32>
    %cst_113 = arith.constant dense<0.000000e+00> : vector<24x16xf32>
    %152 = tpu.matmul %151, %60, %cst_113 {dimension_numbers = #tpu.dot_dimension_numbers<[1], [0], [0], [1], [0, 0, 1, 1], [], []>} : vector<24x16xf32>, vector<16x16xf32>, vector<24x16xf32> -> vector<24x16xf32>
    %153 = vector.shape_cast %152 : vector<24x16xf32> to vector<3x8x16xf32>
    %154 = arith.mulf %105, %105 : vector<3x8x16xf32>
    %155 = arith.subf %153, %154 : vector<3x8x16xf32>
    %156 = arith.mulf %58, %59 : vector<3x24x16xf32>
    %157 = vector.extract_strided_slice %156 {offsets = [0, 6, 0], sizes = [3, 8, 16], strides = [1, 1, 1]} : vector<3x24x16xf32> to vector<3x8x16xf32>
    %cst_114 = arith.constant 0.120078377 : f32
    %158 = vector.broadcast %cst_114 : f32 to vector<3x8x16xf32>
    %159 = arith.mulf %158, %157 : vector<3x8x16xf32>
    %160 = vector.extract_strided_slice %156 {offsets = [0, 7, 0], sizes = [3, 8, 16], strides = [1, 1, 1]} : vector<3x24x16xf32> to vector<3x8x16xf32>
    %cst_115 = arith.constant 0.233880743 : f32
    %161 = vector.broadcast %cst_115 : f32 to vector<3x8x16xf32>
    %162 = arith.mulf %161, %160 : vector<3x8x16xf32>
    %163 = arith.addf %159, %162 : vector<3x8x16xf32>
    %164 = vector.extract_strided_slice %156 {offsets = [0, 8, 0], sizes = [3, 8, 16], strides = [1, 1, 1]} : vector<3x24x16xf32> to vector<3x8x16xf32>
    %cst_116 = arith.constant 0.292081714 : f32
    %165 = vector.broadcast %cst_116 : f32 to vector<3x8x16xf32>
    %166 = arith.mulf %165, %164 : vector<3x8x16xf32>
    %167 = arith.addf %163, %166 : vector<3x8x16xf32>
    %168 = vector.extract_strided_slice %156 {offsets = [0, 9, 0], sizes = [3, 8, 16], strides = [1, 1, 1]} : vector<3x24x16xf32> to vector<3x8x16xf32>
    %cst_117 = arith.constant 0.233880743 : f32
    %169 = vector.broadcast %cst_117 : f32 to vector<3x8x16xf32>
    %170 = arith.mulf %169, %168 : vector<3x8x16xf32>
    %171 = arith.addf %167, %170 : vector<3x8x16xf32>
    %172 = vector.extract_strided_slice %156 {offsets = [0, 10, 0], sizes = [3, 8, 16], strides = [1, 1, 1]} : vector<3x24x16xf32> to vector<3x8x16xf32>
    %cst_118 = arith.constant 0.120078377 : f32
    %173 = vector.broadcast %cst_118 : f32 to vector<3x8x16xf32>
    %174 = arith.mulf %173, %172 : vector<3x8x16xf32>
    %175 = arith.addf %171, %174 : vector<3x8x16xf32>
    %176 = vector.shape_cast %175 : vector<3x8x16xf32> to vector<24x16xf32>
    %cst_119 = arith.constant dense<0.000000e+00> : vector<24x16xf32>
    %177 = tpu.matmul %176, %60, %cst_119 {dimension_numbers = #tpu.dot_dimension_numbers<[1], [0], [0], [1], [0, 0, 1, 1], [], []>} : vector<24x16xf32>, vector<16x16xf32>, vector<24x16xf32> -> vector<24x16xf32>
    %178 = vector.shape_cast %177 : vector<24x16xf32> to vector<3x8x16xf32>
    %179 = arith.mulf %83, %105 : vector<3x8x16xf32>
    %180 = arith.subf %178, %179 : vector<3x8x16xf32>
    %cst_120 = arith.constant 2.000000e+00 : f32
    %181 = vector.broadcast %cst_120 : f32 to vector<3x8x16xf32>
    %182 = arith.mulf %181, %180 : vector<3x8x16xf32>
    %cst_121 = arith.constant 8.99999984E-4 : f32
    %183 = vector.broadcast %cst_121 : f32 to vector<3x8x16xf32>
    %184 = arith.addf %182, %183 : vector<3x8x16xf32>
    %185 = arith.addf %130, %155 : vector<3x8x16xf32>
    %cst_122 = arith.constant 8.99999984E-4 : f32
    %186 = vector.broadcast %cst_122 : f32 to vector<3x8x16xf32>
    %187 = arith.addf %185, %186 : vector<3x8x16xf32>
    %188 = arith.divf %184, %187 : vector<3x8x16xf32>
    %cst_123 = arith.constant 1.000000e+00 : f32
    %189 = vector.broadcast %cst_123 : f32 to vector<3x8x16xf32>
    %190 = arith.subf %189, %188 : vector<3x8x16xf32>
    %cst_124 = arith.constant dense<0.000000e+00> : vector<8x16xf32>
    %191 = vector.multi_reduction <add>, %190, %cst_124 [0] : vector<3x8x16xf32> to vector<8x16xf32>
    %cst_125 = arith.constant 3.000000e+00 : f32
    %192 = vector.broadcast %cst_125 : f32 to vector<8x16xf32>
    %193 = arith.divf %191, %192 : vector<8x16xf32>
    %194 = vector.shape_cast %193 : vector<8x16xf32> to vector<1x8x16xf32>
    %c0_126 = arith.constant 0 : index
    %c0_127 = arith.constant 0 : index
    %c0_128 = arith.constant 0 : index
    %195 = vector.load %arg16[%c0_126, %c0_127, %c0_128] : memref<1x8x16xf32, #tpu.memory_space<vmem>>, vector<1x8x16xf32>
    tpu.vector_store %arg16[%c0_126, %c0_127, %c0_128], %194 {strides = array<i32>} : memref<1x8x16xf32, #tpu.memory_space<vmem>>, vector<1x8x16xf32>,
    %c0_129 = arith.constant 0 : index
    %c0_130 = arith.constant 0 : index
    %c0_131 = arith.constant 0 : index
    %196 = vector.load %arg20[%c0_129, %c0_130, %c0_131] : memref<3x24x16xf32, #tpu.memory_space<vmem>>, vector<3x24x16xf32>
    %197 = vector.extract_strided_slice %196 {offsets = [0, 7, 0], sizes = [3, 8, 16], strides = [1, 1, 1]} : vector<3x24x16xf32> to vector<3x8x16xf32>
    %198 = vector.extract_strided_slice %196 {offsets = [0, 8, 0], sizes = [3, 8, 16], strides = [1, 1, 1]} : vector<3x24x16xf32> to vector<3x8x16xf32>
    %199 = arith.addf %197, %198 : vector<3x8x16xf32>
    %200 = vector.extract_strided_slice %196 {offsets = [0, 9, 0], sizes = [3, 8, 16], strides = [1, 1, 1]} : vector<3x24x16xf32> to vector<3x8x16xf32>
    %201 = arith.addf %199, %200 : vector<3x8x16xf32>
    %cst_132 = arith.constant 0.333333343 : f32
    %202 = vector.broadcast %cst_132 : f32 to vector<3x8x16xf32>
    %203 = arith.mulf %201, %202 : vector<3x8x16xf32>
    %204 = vector.shape_cast %203 : vector<3x8x16xf32> to vector<24x16xf32>
    %cst_133 = arith.constant dense<0.000000e+00> : vector<24x16xf32>
    %205 = tpu.matmul %204, %61, %cst_133 {dimension_numbers = #tpu.dot_dimension_numbers<[1], [0], [0], [1], [0, 0, 1, 1], [], []>} : vector<24x16xf32>, vector<16x16xf32>, vector<24x16xf32> -> vector<24x16xf32>
    %206 = vector.shape_cast %205 : vector<24x16xf32> to vector<3x8x16xf32>
    %c0_134 = arith.constant 0 : index
    %c0_135 = arith.constant 0 : index
    %c0_136 = arith.constant 0 : index
    %207 = vector.load %arg21[%c0_134, %c0_135, %c0_136] : memref<3x24x16xf32, #tpu.memory_space<vmem>>, vector<3x24x16xf32>
    %208 = vector.extract_strided_slice %207 {offsets = [0, 7, 0], sizes = [3, 8, 16], strides = [1, 1, 1]} : vector<3x24x16xf32> to vector<3x8x16xf32>
    %209 = vector.extract_strided_slice %207 {offsets = [0, 8, 0], sizes = [3, 8, 16], strides = [1, 1, 1]} : vector<3x24x16xf32> to vector<3x8x16xf32>
    %210 = arith.addf %208, %209 : vector<3x8x16xf32>
    %211 = vector.extract_strided_slice %207 {offsets = [0, 9, 0], sizes = [3, 8, 16], strides = [1, 1, 1]} : vector<3x24x16xf32> to vector<3x8x16xf32>
    %212 = arith.addf %210, %211 : vector<3x8x16xf32>
    %cst_137 = arith.constant 0.333333343 : f32
    %213 = vector.broadcast %cst_137 : f32 to vector<3x8x16xf32>
    %214 = arith.mulf %212, %213 : vector<3x8x16xf32>
    %215 = vector.shape_cast %214 : vector<3x8x16xf32> to vector<24x16xf32>
    %cst_138 = arith.constant dense<0.000000e+00> : vector<24x16xf32>
    %216 = tpu.matmul %215, %61, %cst_138 {dimension_numbers = #tpu.dot_dimension_numbers<[1], [0], [0], [1], [0, 0, 1, 1], [], []>} : vector<24x16xf32>, vector<16x16xf32>, vector<24x16xf32> -> vector<24x16xf32>
    %217 = vector.shape_cast %216 : vector<24x16xf32> to vector<3x8x16xf32>
    %218 = arith.subf %206, %217 : vector<3x8x16xf32>
    %219 = arith.mulf %218, %218 : vector<3x8x16xf32>
    %cst_139 = arith.constant dense<0.000000e+00> : vector<8x16xf32>
    %220 = vector.multi_reduction <add>, %219, %cst_139 [0] : vector<3x8x16xf32> to vector<8x16xf32>
    %221 = math.sqrt %220 : vector<8x16xf32>
    %222 = vector.shape_cast %221 : vector<8x16xf32> to vector<1x8x16xf32>
    %c0_140 = arith.constant 0 : index
    %c0_141 = arith.constant 0 : index
    %c0_142 = arith.constant 0 : index
    %223 = vector.load %arg17[%c0_140, %c0_141, %c0_142] : memref<1x8x16xf32, #tpu.memory_space<vmem>>, vector<1x8x16xf32>
    tpu.vector_store %arg17[%c0_140, %c0_141, %c0_142], %222 {strides = array<i32>} : memref<1x8x16xf32, #tpu.memory_space<vmem>>, vector<1x8x16xf32>,
    return
  }
  func.func @transform_0(%arg0: i32, %arg1: i32) -> (i32, i32, i32, i32) {
    %c0_i32 = arith.constant 0 : i32
    %c0_i32_0 = arith.constant 0 : i32
    %c0_i32_1 = arith.constant 0 : i32
    return %arg0, %c0_i32, %arg1, %c0_i32_0 : i32, i32, i32, i32
  }
  func.func @transform_1(%arg0: i32, %arg1: i32) -> (i32, i32, i32, i32) {
    %c1_i32 = arith.constant 1 : i32
    %0 = arith.muli %arg1, %c1_i32 : i32
    %c1_i32_0 = arith.constant 1 : i32
    %1 = arith.subi %0, %c1_i32_0 : i32
    %c0_i32 = arith.constant 0 : i32
    %2 = arith.maxsi %1, %c0_i32 : i32
    %c0_i32_1 = arith.constant 0 : i32
    %c0_i32_2 = arith.constant 0 : i32
    %c0_i32_3 = arith.constant 0 : i32
    return %arg0, %c0_i32_1, %2, %c0_i32_2 : i32, i32, i32, i32
  }
  func.func @transform_2(%arg0: i32, %arg1: i32) -> (i32, i32, i32, i32) {
    %c1_i32 = arith.constant 1 : i32
    %0 = arith.addi %arg1, %c1_i32 : i32
    %c1_i32_0 = arith.constant 1 : i32
    %1 = arith.muli %0, %c1_i32_0 : i32
    %c1_i32_1 = arith.constant 1 : i32
    %2 = arith.minsi %1, %c1_i32_1 : i32
    %c0_i32 = arith.constant 0 : i32
    %c0_i32_2 = arith.constant 0 : i32
    %c0_i32_3 = arith.constant 0 : i32
    return %arg0, %c0_i32, %2, %c0_i32_2 : i32, i32, i32, i32
  }
  func.func @transform_3(%arg0: i32, %arg1: i32) -> (i32, i32, i32, i32) {
    %c0_i32 = arith.constant 0 : i32
    %c0_i32_0 = arith.constant 0 : i32
    %c0_i32_1 = arith.constant 0 : i32
    return %arg0, %c0_i32, %arg1, %c0_i32_0 : i32, i32, i32, i32
  }
  func.func @transform_4(%arg0: i32, %arg1: i32) -> (i32, i32, i32, i32) {
    %c1_i32 = arith.constant 1 : i32
    %0 = arith.muli %arg1, %c1_i32 : i32
    %c1_i32_0 = arith.constant 1 : i32
    %1 = arith.subi %0, %c1_i32_0 : i32
    %c0_i32 = arith.constant 0 : i32
    %2 = arith.maxsi %1, %c0_i32 : i32
    %c0_i32_1 = arith.constant 0 : i32
    %c0_i32_2 = arith.constant 0 : i32
    %c0_i32_3 = arith.constant 0 : i32
    return %arg0, %c0_i32_1, %2, %c0_i32_2 : i32, i32, i32, i32
  }
  func.func @transform_5(%arg0: i32, %arg1: i32) -> (i32, i32, i32, i32) {
    %c1_i32 = arith.constant 1 : i32
    %0 = arith.addi %arg1, %c1_i32 : i32
    %c1_i32_0 = arith.constant 1 : i32
    %1 = arith.muli %0, %c1_i32_0 : i32
    %c1_i32_1 = arith.constant 1 : i32
    %2 = arith.minsi %1, %c1_i32_1 : i32
    %c0_i32 = arith.constant 0 : i32
    %c0_i32_2 = arith.constant 0 : i32
    %c0_i32_3 = arith.constant 0 : i32
    return %arg0, %c0_i32, %2, %c0_i32_2 : i32, i32, i32, i32
  }
  func.func @transform_6(%arg0: i32, %arg1: i32) -> (i32, i32, i32, i32) {
    %c0_i32 = arith.constant 0 : i32
    %c0_i32_0 = arith.constant 0 : i32
    %c0_i32_1 = arith.constant 0 : i32
    return %arg0, %c0_i32, %arg1, %c0_i32_0 : i32, i32, i32, i32
  }
  func.func @transform_7(%arg0: i32, %arg1: i32) -> (i32, i32, i32, i32) {
    %c1_i32 = arith.constant 1 : i32
    %0 = arith.muli %arg1, %c1_i32 : i32
    %c1_i32_0 = arith.constant 1 : i32
    %1 = arith.subi %0, %c1_i32_0 : i32
    %c0_i32 = arith.constant 0 : i32
    %2 = arith.maxsi %1, %c0_i32 : i32
    %c0_i32_1 = arith.constant 0 : i32
    %c0_i32_2 = arith.constant 0 : i32
    %c0_i32_3 = arith.constant 0 : i32
    return %arg0, %c0_i32_1, %2, %c0_i32_2 : i32, i32, i32, i32
  }
  func.func @transform_8(%arg0: i32, %arg1: i32) -> (i32, i32, i32, i32) {
    %c1_i32 = arith.constant 1 : i32
    %0 = arith.addi %arg1, %c1_i32 : i32
    %c1_i32_0 = arith.constant 1 : i32
    %1 = arith.muli %0, %c1_i32_0 : i32
    %c1_i32_1 = arith.constant 1 : i32
    %2 = arith.minsi %1, %c1_i32_1 : i32
    %c0_i32 = arith.constant 0 : i32
    %c0_i32_2 = arith.constant 0 : i32
    %c0_i32_3 = arith.constant 0 : i32
    return %arg0, %c0_i32, %2, %c0_i32_2 : i32, i32, i32, i32
  }
  func.func @transform_9(%arg0: i32, %arg1: i32) -> (i32, i32, i32, i32) {
    %c0_i32 = arith.constant 0 : i32
    %c0_i32_0 = arith.constant 0 : i32
    %c0_i32_1 = arith.constant 0 : i32
    return %arg0, %c0_i32, %arg1, %c0_i32_0 : i32, i32, i32, i32
  }
  func.func @transform_10(%arg0: i32, %arg1: i32) -> (i32, i32, i32, i32) {
    %c1_i32 = arith.constant 1 : i32
    %0 = arith.muli %arg1, %c1_i32 : i32
    %c1_i32_0 = arith.constant 1 : i32
    %1 = arith.subi %0, %c1_i32_0 : i32
    %c0_i32 = arith.constant 0 : i32
    %2 = arith.maxsi %1, %c0_i32 : i32
    %c0_i32_1 = arith.constant 0 : i32
    %c0_i32_2 = arith.constant 0 : i32
    %c0_i32_3 = arith.constant 0 : i32
    return %arg0, %c0_i32_1, %2, %c0_i32_2 : i32, i32, i32, i32
  }
  func.func @transform_11(%arg0: i32, %arg1: i32) -> (i32, i32, i32, i32) {
    %c1_i32 = arith.constant 1 : i32
    %0 = arith.addi %arg1, %c1_i32 : i32
    %c1_i32_0 = arith.constant 1 : i32
    %1 = arith.muli %0, %c1_i32_0 : i32
    %c1_i32_1 = arith.constant 1 : i32
    %2 = arith.minsi %1, %c1_i32_1 : i32
    %c0_i32 = arith.constant 0 : i32
    %c0_i32_2 = arith.constant 0 : i32
    %c0_i32_3 = arith.constant 0 : i32
    return %arg0, %c0_i32, %2, %c0_i32_2 : i32, i32, i32, i32
  }
  func.func @transform_12(%arg0: i32, %arg1: i32) -> (i32, i32) {
    %c0_i32 = arith.constant 0 : i32
    %c0_i32_0 = arith.constant 0 : i32
    %c0_i32_1 = arith.constant 0 : i32
    return %c0_i32, %c0_i32_0 : i32, i32
  }
  func.func @transform_13(%arg0: i32, %arg1: i32) -> (i32, i32) {
    %c0_i32 = arith.constant 0 : i32
    %c0_i32_0 = arith.constant 0 : i32
    %c0_i32_1 = arith.constant 0 : i32
    return %c0_i32, %c0_i32_0 : i32, i32
  }
  func.func @transform_14(%arg0: i32, %arg1: i32) -> (i32, i32, i32) {
    %c0_i32 = arith.constant 0 : i32
    %c0_i32_0 = arith.constant 0 : i32
    return %arg0, %arg1, %c0_i32 : i32, i32, i32
  }
  func.func @transform_15(%arg0: i32, %arg1: i32) -> (i32, i32, i32) {
    %c0_i32 = arith.constant 0 : i32
    %c0_i32_0 = arith.constant 0 : i32
    return %arg0, %arg1, %c0_i32 : i32, i32, i32
  }
}

module attributes {stable_mosaic.version = 11 : i64} {
  func.func @_finalize_kernel(%arg0: i32, %arg1: i32, %arg2: memref<1x8x128xf32, #tpu.memory_space<vmem>>, %arg3: memref<1x8x128xf32, #tpu.memory_space<vmem>>, %arg4: memref<1x8x128xf32, #tpu.memory_space<vmem>>, %arg5: memref<1x8x128xf32, #tpu.memory_space<vmem>>) attributes {dimension_semantics = [#tpu.dimension_semantics<parallel>, #tpu.dimension_semantics<parallel>], iteration_bounds = array<i64: 2, 1>, scalar_prefetch = 0 : i64, scratch_operands = 0 : i64, tpu.core_type = #tpu.core_type<tc>, window_params = [{transform_indices = @transform_0, window_bounds = array<i64: 1, 8, 128>}, {transform_indices = @transform_1, window_bounds = array<i64: 1, 8, 128>}, {transform_indices = @transform_2, window_bounds = array<i64: 1, 8, 128>}, {transform_indices = @transform_3, window_bounds = array<i64: 1, 8, 128>}]} {
    %c0 = arith.constant 0 : index
    %c0_0 = arith.constant 0 : index
    %c0_1 = arith.constant 0 : index
    %0 = vector.load %arg2[%c0, %c0_0, %c0_1] : memref<1x8x128xf32, #tpu.memory_space<vmem>>, vector<1x8x128xf32>
    %c0_2 = arith.constant 0 : index
    %c0_3 = arith.constant 0 : index
    %c0_4 = arith.constant 0 : index
    %1 = vector.load %arg3[%c0_2, %c0_3, %c0_4] : memref<1x8x128xf32, #tpu.memory_space<vmem>>, vector<1x8x128xf32>
    %2 = vector.extract_strided_slice %0 {offsets = [0, 0, 0], sizes = [1, 1, 128], strides = [1, 1, 1]} : vector<1x8x128xf32> to vector<1x1x128xf32>
    %3 = vector.broadcast %2 : vector<1x1x128xf32> to vector<1x8x128xf32>
    %4 = arith.subf %1, %3 : vector<1x8x128xf32>
    %5 = vector.extract_strided_slice %0 {offsets = [0, 1, 0], sizes = [1, 1, 128], strides = [1, 1, 1]} : vector<1x8x128xf32> to vector<1x1x128xf32>
    %6 = vector.broadcast %5 : vector<1x1x128xf32> to vector<1x8x128xf32>
    %7 = arith.mulf %4, %6 : vector<1x8x128xf32>
    %c0_5 = arith.constant 0 : index
    %c0_6 = arith.constant 0 : index
    %c0_7 = arith.constant 0 : index
    %8 = vector.load %arg4[%c0_5, %c0_6, %c0_7] : memref<1x8x128xf32, #tpu.memory_space<vmem>>, vector<1x8x128xf32>
    %9 = vector.extract_strided_slice %0 {offsets = [0, 2, 0], sizes = [1, 1, 128], strides = [1, 1, 1]} : vector<1x8x128xf32> to vector<1x1x128xf32>
    %10 = vector.broadcast %9 : vector<1x1x128xf32> to vector<1x8x128xf32>
    %11 = arith.subf %8, %10 : vector<1x8x128xf32>
    %12 = vector.extract_strided_slice %0 {offsets = [0, 3, 0], sizes = [1, 1, 128], strides = [1, 1, 1]} : vector<1x8x128xf32> to vector<1x1x128xf32>
    %13 = vector.broadcast %12 : vector<1x1x128xf32> to vector<1x8x128xf32>
    %14 = arith.mulf %11, %13 : vector<1x8x128xf32>
    %15 = arith.mulf %14, %7 : vector<1x8x128xf32>
    %16 = arith.addf %15, %14 : vector<1x8x128xf32>
    %cst = arith.constant 3.300000e-01 : f32
    %17 = vector.broadcast %cst : f32 to vector<1x8x128xf32>
    %18 = arith.mulf %7, %17 : vector<1x8x128xf32>
    %19 = arith.addf %16, %18 : vector<1x8x128xf32>
    %20 = vector.extract_strided_slice %0 {offsets = [0, 4, 0], sizes = [1, 1, 128], strides = [1, 1, 1]} : vector<1x8x128xf32> to vector<1x1x128xf32>
    %21 = vector.broadcast %20 : vector<1x1x128xf32> to vector<1x8x128xf32>
    %22 = arith.subf %19, %21 : vector<1x8x128xf32>
    %23 = vector.extract_strided_slice %0 {offsets = [0, 5, 0], sizes = [1, 1, 128], strides = [1, 1, 1]} : vector<1x8x128xf32> to vector<1x1x128xf32>
    %24 = vector.broadcast %23 : vector<1x1x128xf32> to vector<1x8x128xf32>
    %25 = arith.mulf %22, %24 : vector<1x8x128xf32>
    %cst_8 = arith.constant 0.000000e+00 : f32
    %cst_9 = arith.constant 1.000000e+00 : f32
    %26 = vector.broadcast %cst_8 : f32 to vector<1x8x128xf32>
    %27 = arith.maximumf %26, %25 : vector<1x8x128xf32>
    %28 = vector.broadcast %cst_9 : f32 to vector<1x8x128xf32>
    %29 = arith.minimumf %28, %27 : vector<1x8x128xf32>
    %c0_10 = arith.constant 0 : index
    %c0_11 = arith.constant 0 : index
    %c0_12 = arith.constant 0 : index
    %30 = vector.load %arg5[%c0_10, %c0_11, %c0_12] : memref<1x8x128xf32, #tpu.memory_space<vmem>>, vector<1x8x128xf32>
    tpu.vector_store %arg5[%c0_10, %c0_11, %c0_12], %29 {strides = array<i32>} : memref<1x8x128xf32, #tpu.memory_space<vmem>>, vector<1x8x128xf32>,
    return
  }
  func.func @transform_0(%arg0: i32, %arg1: i32) -> (i32, i32, i32) {
    %c0_i32 = arith.constant 0 : i32
    %c0_i32_0 = arith.constant 0 : i32
    %c0_i32_1 = arith.constant 0 : i32
    return %arg0, %c0_i32, %c0_i32_0 : i32, i32, i32
  }
  func.func @transform_1(%arg0: i32, %arg1: i32) -> (i32, i32, i32) {
    %c0_i32 = arith.constant 0 : i32
    %c0_i32_0 = arith.constant 0 : i32
    return %arg0, %arg1, %c0_i32 : i32, i32, i32
  }
  func.func @transform_2(%arg0: i32, %arg1: i32) -> (i32, i32, i32) {
    %c0_i32 = arith.constant 0 : i32
    %c0_i32_0 = arith.constant 0 : i32
    return %arg0, %arg1, %c0_i32 : i32, i32, i32
  }
  func.func @transform_3(%arg0: i32, %arg1: i32) -> (i32, i32, i32) {
    %c0_i32 = arith.constant 0 : i32
    %c0_i32_0 = arith.constant 0 : i32
    return %arg0, %arg1, %c0_i32 : i32, i32, i32
  }
}

</mosaic_0001>

<bundles_post_ra>
// kernel: _lambda_.4
= control target key start
LH: loop header
LB: loop body
LE: loop exit
PB: predicated region body
PF: predicated region fallthrough
CT: control target
= control target key end

     0   :  { %9 = vsyncpa [#allocation3], 0  ;;  %s1099_s0 = inlined_call_operand.vmem [shape: f32[8,384], index: 0, kind: input, shape index: {}]   ;;  %s1100_s1 = inlined_call_operand.hbm [shape: f32[384,384], index: 1, kind: input, shape index: {}]   ;;  %s1101_s2 = inlined_call_operand.hbm [shape: f32[384,384], index: 2, kind: input, shape index: {}]   ;;  %s1102_s3 = inlined_call_operand.vmem [shape: f32[1,384], index: 3, kind: input, shape index: {}]   ;;  %s1103_s4 = inlined_call_operand.vmem [shape: f32[8,384], index: 4, kind: output, shape index: {}]  }
   0x1   :  { %s17_s17 = sshll.u32 %s1100_s1, 4  ;;  %s18_s17 = int_to_ptr.hbm [resolvable:$true] %s17_s17 }
   0x2   :  { %10 = vsyncpa [#allocation5], 0  ;;  %s937_s18 = smov [#allocation2]   ;;  %s30_s22 = sshll.u32 %s1101_s2, 4  ;;  %s31_s22 = int_to_ptr.hbm [resolvable:$true] %s30_s22 }
   0x3   :  { %s19_s19 = sshll.u32 %s937_s18, 4  ;;  %s938_s23 = smov 384   ;;  %s20_s19 = int_to_ptr.vmem [resolvable:$true] %s19_s19 }
   0x4   :  { %s939_s24 = smov 24   ;;  %s940_s25 = smov [#allocation4]  }
   0x5   :  { %25 = dma.hbm_to_vmem [thread:$0]  %s18_s17, 18432, %s20_s19, [#allocation3], %s938_s23, %s938_s23, %s939_s24  }
   0x6   :  { %s32_s26 = sshll.u32 %s940_s25, 4  ;;  %s33_s26 = int_to_ptr.vmem [resolvable:$true] %s32_s26 }
   0x7   :  { %38 = dma.hbm_to_vmem [thread:$0]  %s31_s22, 18432, %s33_s26, [#allocation5], %s938_s23, %s938_s23, %s939_s24  }
   0x8   :  { %933 = dma.done.wait [#allocation3], 18432  }
   0x9   :  { %934 = vsyncadd [#allocation3], 4294948864 }
   0xa   :  { %935 = dma.done.wait [#allocation5], 18432  }
   0xb   :  { %936 = vsyncadd [#allocation5], 4294948864  ;;  %v941_v0 = vmov 1.055   ;;  %v159_v1 = vld [vmem:[#allocation2 + $0x168] sm:$0xff]  ;;  %v156_v2 = vld [vmem:[#allocation2 + $0x150] sm:$0xff] }
   0xc   :  { %853 = vrcp.f32 %v941_v0  ;;  %v207_v3 = vld [vmem:[#allocation2 + $0x2e8] sm:$0xff]  ;;  %258 = vmatpush.msra.mxu0 %v159_v1  ;;  %v204_v4 = vld [vmem:[#allocation2 + $0x2d0] sm:$0xff]  ;;  %v153_v6 = vld [vmem:[#allocation2 + $0x138] sm:$0xff]  ;;  %v942_v33 = vmov 12.92  }
   0xd   :  { %278 = vmatpush.msra.mxu1 %v207_v3  ;;  %v201_v7 = vld [vmem:[#allocation2 + $0x2b8] sm:$0xff]  ;;  %v255_v8 = vld [vmem:[#allocation2 + $0x468] sm:$0xff]  ;;  %v252_v9 = vld [vmem:[#allocation2 + $0x450] sm:$0xff]  ;;  %855 = vrcp.f32 %v942_v33 }
   0xe   :  { %259 = vmatpush.msra.mxu0 %v156_v2  ;;  %v150_v10 = vld [vmem:[#allocation2 + $0x120] sm:$0xff]  ;;  %298 = vmatpush.msra.mxu2 %v255_v8  ;;  %v249_v12 = vld [vmem:[#allocation2 + $0x438] sm:$0xff]  ;;  %v147_v14 = vld [vmem:[#allocation2 + $0x108] sm:$0xff] }
   0xf   :  { %279 = vmatpush.msra.mxu1 %v204_v4  ;;  %v198_v11 = vld [vmem:[#allocation2 + $0x2a0] sm:$0xff]  ;;  %v195_v15 = vld [vmem:[#allocation2 + $0x288] sm:$0xff]  ;;  %v144_v17 = vld [vmem:[#allocation2 + $0xf0] sm:$0xff] }
  0x10   :  { %260 = vmatpush.msra.mxu0 %v153_v6  ;;  %299 = vmatpush.msra.mxu2 %v252_v9  ;;  %v246_v16 = vld [vmem:[#allocation2 + $0x420] sm:$0xff]  ;;  %v192_v18 = vld [vmem:[#allocation2 + $0x270] sm:$0xff]  ;;  %v243_v19 = vld [vmem:[#allocation2 + $0x408] sm:$0xff] }
  0x11   :  { %280 = vmatpush.msra.mxu1 %v201_v7  ;;  %v141_v21 = vld [vmem:[#allocation2 + $0xd8] sm:$0xff]  ;;  %v160_v23 = vld [vmem:[#allocation2 + $0x170] sm:$0xff]  ;;  %v138_v25 = vld [vmem:[#allocation2 + $0xc0] sm:$0xff] }
  0x12   :  { %v977_v5 = vpop.eup %853  ;;  %261 = vmatpush.msra.mxu0 %v150_v10  ;;  %300 = vmatpush.msra.mxu2 %v249_v12  ;;  %v189_v22 = vld [vmem:[#allocation2 + $0x258] sm:$0xff]  ;;  %v240_v24 = vld [vmem:[#allocation2 + $0x3f0] sm:$0xff]  ;;  %v186_v26 = vld [vmem:[#allocation2 + $0x240] sm:$0xff] }
  0x13   :  { %v68_v13 = vmul.f32 1.055, %v977_v5  ;;  %281 = vmatpush.msra.mxu1 %v198_v11  ;;  %318 = vmatpush.msra.mxu3 %v160_v23  ;;  %v157_v27 = vld [vmem:[#allocation2 + $0x158] sm:$0xff]  ;;  %v154_v29 = vld [vmem:[#allocation2 + $0x140] sm:$0xff]  ;;  %v135_v31 = vld [vmem:[#allocation2 + $0xa8] sm:$0xff]  ;;  %vm72_vm0 = vweird.f32 %v977_v5  ;;  %v983_v45 = vpop.eup %855 }
  0x14   :  { %262 = vmatpush.msra.mxu0 %v147_v14  ;;  %301 = vmatpush.msra.mxu2 %v246_v16  ;;  %v237_v28 = vld [vmem:[#allocation2 + $0x3d8] sm:$0xff]  ;;  %v183_v32 = vld [vmem:[#allocation2 + $0x228] sm:$0xff]  ;;  %v234_v34 = vld [vmem:[#allocation2 + $0x3c0] sm:$0xff]  ;;  %v96_v57 = vmul.f32 12.92, %v983_v45  ;;  %vm100_vm1 = vweird.f32 %v983_v45 }
  0x15   :  { %282 = vmatpush.msra.mxu1 %v195_v15  ;;  %v69_v20 = vsub.f32 1.0, %v68_v13  ;;  %319 = vmatpush.msra.mxu3 %v157_v27  ;;  %v151_v35 = vld [vmem:[#allocation2 + $0x128] sm:$0xff]  ;;  %v132_v36 = vld [vmem:[#allocation2 + $0x90] sm:$0xff]  ;;  %v129_v41 = vld [vmem:[#allocation2 + $0x78] sm:$0xff] }
  0x16   :  { %263 = vmatpush.msra.mxu0 %v144_v17  ;;  %302 = vmatpush.msra.mxu2 %v243_v19  ;;  %v180_v37 = vld [vmem:[#allocation2 + $0x210] sm:$0xff]  ;;  %v231_v38 = vld [vmem:[#allocation2 + $0x3a8] sm:$0xff]  ;;  %v177_v42 = vld [vmem:[#allocation2 + $0x1f8] sm:$0xff]  ;;  %v97_v7 = vsub.f32 1.0, %v96_v57 }
  0x17   :  { %283 = vmatpush.msra.mxu1 %v192_v18  ;;  %v70_v30 = vmul.f32 %v977_v5, %v69_v20  ;;  %320 = vmatpush.msra.mxu3 %v154_v29  ;;  %v148_v39 = vld [vmem:[#allocation2 + $0x110] sm:$0xff]  ;;  %v145_v44 = vld [vmem:[#allocation2 + $0xf8] sm:$0xff]  ;;  %v126_v46 = vld [vmem:[#allocation2 + $0x60] sm:$0xff] }
  0x18   :  { %264 = vmatpush.msra.mxu0 %v141_v21  ;;  %303 = vmatpush.msra.mxu2 %v240_v24  ;;  %v228_v43 = vld [vmem:[#allocation2 + $0x390] sm:$0xff]  ;;  %v174_v47 = vld [vmem:[#allocation2 + $0x1e0] sm:$0xff]  ;;  %v225_v48 = vld [vmem:[#allocation2 + $0x378] sm:$0xff]  ;;  %v98_v21 = vmul.f32 %v983_v45, %v97_v7 }
  0x19   :  { %284 = vmatpush.msra.mxu1 %v189_v22  ;;  %v71_v40 = vadd.f32 %v977_v5, %v70_v30  ;;  %321 = vmatpush.msra.mxu3 %v151_v35  ;;  %v142_v49 = vld [vmem:[#allocation2 + $0xe0] sm:$0xff]  ;;  %v988_v50 = vld [vmem:[%s1099_s0 + $0x10] sm:$0xff]  ;;  %v123_v52 = vld [vmem:[#allocation2 + $0x48] sm:$0xff] }
  0x1a   :  { %265 = vmatpush.msra.mxu0 %v138_v25  ;;  %304 = vmatpush.msra.mxu2 %v237_v28  ;;  %v171_v53 = vld [vmem:[#allocation2 + $0x1c8] sm:$0xff]  ;;  %v66_v54 = vadd.f32 0.055, %v988_v50  ;;  %v222_v55 = vld [vmem:[#allocation2 + $0x360] sm:$0xff]  ;;  %v120_v59 = vld [vmem:[#allocation2 + $0x30] sm:$0xff] }
  0x1b   :  { %285 = vmatpush.msra.mxu1 %v186_v26  ;;  %322 = vmatpush.msra.mxu3 %v148_v39  ;;  %v73_v51 = vsel %vm72_vm0, %v977_v5, %v71_v40  ;;  %v139_v56 = vld [vmem:[#allocation2 + $0xc8] sm:$0xff]  ;;  %v996_v58 = vld [vmem:[%s1099_s0] sm:$0xff]  ;;  %v168_v60 = vld [vmem:[#allocation2 + $0x1b0] sm:$0xff]  ;;  %vm54_vm2 = vcmp.le.f32.partialorder %v988_v50, 0.04045 }
  0x1c   :  { %266 = vmatpush.msra.mxu0 %v135_v31  ;;  %305 = vmatpush.msra.mxu2 %v234_v34  ;;  %v76_v61 = vmul.f32 %v73_v51, %v66_v54  ;;  %v1001_v62 = vld [vmem:[%s1099_s0 + $0x8] sm:$0xff]  ;;  %v136_v0 = vld [vmem:[#allocation2 + $0xb0] sm:$0xff]  ;;  %v64_v1 = vadd.f32 0.055, %v996_v58  ;;  %v117_v2 = vld [vmem:[#allocation2 + $0x18] sm:$0xff]  ;;  %v99_v31 = vadd.f32 %v983_v45, %v98_v21 }
  0x1d   :  { %286 = vmatpush.msra.mxu1 %v183_v32  ;;  %323 = vmatpush.msra.mxu3 %v145_v44  ;;  %v219_v63 = vld [vmem:[#allocation2 + $0x348] sm:$0xff]  ;;  %v165_v3 = vld [vmem:[#allocation2 + $0x198] sm:$0xff]  ;;  %v65_v5 = vadd.f32 0.055, %v1001_v62  ;;  %v216_v6 = vld [vmem:[#allocation2 + $0x330] sm:$0xff] }
  0x1e   :  { %267 = vmatpush.msra.mxu0 %v132_v36  ;;  %306 = vmatpush.msra.mxu2 %v231_v38  ;;  %v79_v4 = vmax.f32 %v76_v61, 1e-08  ;;  %v133_v8 = vld [vmem:[#allocation2 + $0x98] sm:$0xff]  ;;  %v74_v9 = vmul.f32 %v73_v51, %v64_v1  ;;  %v114_v10 = vld [vmem:[#allocation2] sm:$0xff]  ;;  %v208_v13 = vld [vmem:[#allocation2 + $0x2f0] sm:$0xff]  ;;  %v101_v44 = vsel %vm100_vm1, %v983_v45, %v99_v31 }
  0x1f   :  { %287 = vmatpush.msra.mxu1 %v180_v37  ;;  %324 = vmatpush.msra.mxu3 %v142_v49  ;;  %v162_v11 = vld [vmem:[#allocation2 + $0x180] sm:$0xff]  ;;  %v75_v12 = vmul.f32 %v73_v51, %v65_v5  ;;  %v256_v14 = vld [vmem:[#allocation2 + $0x470] sm:$0xff]  ;;  %v213_v16 = vld [vmem:[#allocation2 + $0x318] sm:$0xff]  ;;  %v943_v49 = vmov 0.0   ;;  %vm52_vm3 = vcmp.le.f32.partialorder %v996_v58, 0.04045  ;;  %v104_v57 = vmul.f32 %v101_v44, %v988_v50 }
  0x20   :  { %268 = vmatpush.msra.mxu0 %v129_v41  ;;  %307 = vmatpush.msra.mxu2 %v228_v43  ;;  %857 = vlog2.f32 %v79_v4  ;;  %v77_v15 = vmax.f32 %v74_v9, 1e-08  ;;  %v130_v18 = vld [vmem:[#allocation2 + $0x80] sm:$0xff]  ;;  %v205_v19 = vld [vmem:[#allocation2 + $0x2d8] sm:$0xff]  ;;  %v127_v23 = vld [vmem:[#allocation2 + $0x68] sm:$0xff]  ;;  %v840_v51 = vsel %vm54_vm2, 1.0, %v943_v49  ;;  %v102_v5 = vmul.f32 %v101_v44, %v996_v58 }
  0x21   :  { %288 = vmatpush.msra.mxu1 %v177_v42  ;;  %325 = vmatpush.msra.mxu3 %v139_v56  ;;  %v78_v17 = vmax.f32 %v75_v12, 1e-08  ;;  %v253_v20 = vld [vmem:[#allocation2 + $0x458] sm:$0xff]  ;;  %v210_v22 = vld [vmem:[#allocation2 + $0x300] sm:$0xff]  ;;  %v124_v27 = vld [vmem:[#allocation2 + $0x50] sm:$0xff]  ;;  %v107_v9 = vmul.f32 %v840_v51, %v104_v57 }
  0x22   :  { %269 = vmatpush.msra.mxu0 %v126_v46  ;;  %308 = vmatpush.msra.mxu2 %v225_v48  ;;  %859 = vlog2.f32 %v77_v15  ;;  %v202_v24 = vld [vmem:[#allocation2 + $0x2c0] sm:$0xff]  ;;  %v161_v28 = vld [vmem:[#allocation2 + $0x178] sm:$0xff]  ;;  %v199_v29 = vld [vmem:[#allocation2 + $0x2a8] sm:$0xff]  ;;  %vm53_vm4 = vcmp.le.f32.partialorder %v1001_v62, 0.04045 }
  0x23   :  { %289 = vmatpush.msra.mxu1 %v174_v47  ;;  %326 = vmatpush.msra.mxu3 %v136_v0  ;;  %861 = vlog2.f32 %v78_v17  ;;  %v250_v25 = vld [vmem:[#allocation2 + $0x440] sm:$0xff]  ;;  %v247_v32 = vld [vmem:[#allocation2 + $0x428] sm:$0xff]  ;;  %v121_v33 = vld [vmem:[#allocation2 + $0x38] sm:$0xff] }
  0x24   :  { %270 = vmatpush.msra.mxu0 %v123_v52  ;;  %309 = vmatpush.msra.mxu2 %v222_v55  ;;  %v158_v34 = vld [vmem:[#allocation2 + $0x160] sm:$0xff]  ;;  %v196_v37 = vld [vmem:[#allocation2 + $0x290] sm:$0xff]  ;;  %v155_v42 = vld [vmem:[#allocation2 + $0x148] sm:$0xff] }
  0x25   :  { %290 = vmatpush.msra.mxu1 %v171_v53  ;;  %327 = vmatpush.msra.mxu3 %v133_v8  ;;  %v244_v38 = vld [vmem:[#allocation2 + $0x410] sm:$0xff]  ;;  %v118_v41 = vld [vmem:[#allocation2 + $0x20] sm:$0xff]  ;;  %v193_v46 = vld [vmem:[#allocation2 + $0x278] sm:$0xff] }
  0x26   :  { %271 = vmatpush.msra.mxu0 %v120_v59  ;;  %310 = vmatpush.msra.mxu2 %v219_v63  ;;  %v858_v26 = vpop.eup %857  ;;  %v241_v48 = vld [vmem:[#allocation2 + $0x3f8] sm:$0xff]  ;;  %v115_v53 = vld [vmem:[#allocation2 + $0x8] sm:$0xff]  ;;  %v152_v54 = vld [vmem:[#allocation2 + $0x130] sm:$0xff] }
  0x27   :  { %291 = vmatpush.msra.mxu1 %v168_v60  ;;  %328 = vmatpush.msra.mxu3 %v130_v18  ;;  %v85_v30 = vmul.f32 0.6931472, %v858_v26  ;;  %v190_v45 = vld [vmem:[#allocation2 + $0x260] sm:$0xff]  ;;  %v209_v60 = vld [vmem:[#allocation2 + $0x2f8] sm:$0xff]  ;;  %v187_v0 = vld [vmem:[#allocation2 + $0x248] sm:$0xff] }
  0x28   :  { %272 = vmatpush.msra.mxu0 %v117_v2  ;;  %311 = vmatpush.msra.mxu2 %v216_v6  ;;  %v860_v35 = vpop.eup %859  ;;  %v238_v56 = vld [vmem:[#allocation2 + $0x3e0] sm:$0xff]  ;;  %v149_v61 = vld [vmem:[#allocation2 + $0x118] sm:$0xff]  ;;  %v235_v1 = vld [vmem:[#allocation2 + $0x3c8] sm:$0xff]  ;;  %v63_v2 = vsub.f32 1.0, %v840_v51  ;;  %v839_v6 = vsel %vm53_vm4, 1.0, %v943_v49 }
  0x29   :  { %292 = vmatpush.msra.mxu1 %v165_v3  ;;  %329 = vmatpush.msra.mxu3 %v127_v23  ;;  %v88_v36 = vmul.f32 2.4, %v85_v30  ;;  %v862_v39 = vpop.eup %861  ;;  %v81_v40 = vmul.f32 0.6931472, %v860_v35  ;;  %v838_v3 = vsel %vm52_vm3, 1.0, %v943_v49  ;;  %v206_v50 = vld [vmem:[#allocation2 + $0x2e0] sm:$0xff] }
  0x2a   :  { %273 = vmatpush.msra.mxu0 %v114_v10  ;;  %312 = vmatpush.msra.mxu2 %v213_v16  ;;  %v83_v47 = vmul.f32 0.6931472, %v862_v39  ;;  %v146_v4 = vld [vmem:[#allocation2 + $0x100] sm:$0xff]  ;;  %v184_v7 = vld [vmem:[#allocation2 + $0x230] sm:$0xff]  ;;  %v103_v10 = vmul.f32 %v101_v44, %v1001_v62  ;;  %v143_v12 = vld [vmem:[#allocation2 + $0xe8] sm:$0xff]  ;;  %v62_v17 = vsub.f32 1.0, %v839_v6 }
  0x2b   :  { %293 = vmatpush.msra.mxu1 %v162_v11  ;;  %330 = vmatpush.msra.mxu3 %v124_v27  ;;  %v93_v43 = vmul.f32 1.442695, %v88_v36  ;;  %v86_v52 = vmul.f32 2.4, %v81_v40  ;;  %v232_v8 = vld [vmem:[#allocation2 + $0x3b0] sm:$0xff]  ;;  %v203_v11 = vld [vmem:[#allocation2 + $0x2c8] sm:$0xff] }
  0x2c   :  { %338 = vmatpush.msrb.mxu0 %v208_v13  ;;  %313 = vmatpush.msra.mxu2 %v210_v22  ;;  %v87_v55 = vmul.f32 2.4, %v83_v47  ;;  %v181_v15 = vld [vmem:[#allocation2 + $0x218] sm:$0xff]  ;;  %v200_v18 = vld [vmem:[#allocation2 + $0x2b0] sm:$0xff]  ;;  %v178_v21 = vld [vmem:[#allocation2 + $0x200] sm:$0xff]  ;;  %v106_v23 = vmul.f32 %v839_v6, %v103_v10 }
  0x2d   :  { %358 = vmatpush.msrb.mxu1 %v256_v14  ;;  %331 = vmatpush.msra.mxu3 %v121_v33  ;;  %863 = vpow2.f32 %v93_v43  ;;  %v89_v59 = vmul.f32 1.442695, %v86_v52  ;;  %v61_v14 = vsub.f32 1.0, %v838_v3  ;;  %v229_v58 = vld [vmem:[#allocation2 + $0x398] sm:$0xff]  ;;  %v223_v31 = vld [vmem:[#allocation2 + $0x368] sm:$0xff]  ;;  %v172_v33 = vld [vmem:[#allocation2 + $0x1d0] sm:$0xff] }
  0x2e   :  { %339 = vmatpush.msrb.mxu0 %v205_v19  ;;  %378 = vmatpush.msrb.mxu2 %v161_v28  ;;  %v91_v63 = vmul.f32 1.442695, %v87_v55  ;;  %v140_v19 = vld [vmem:[#allocation2 + $0xd0] sm:$0xff]  ;;  %v175_v28 = vld [vmem:[#allocation2 + $0x1e8] sm:$0xff]  ;;  %v169_v36 = vld [vmem:[#allocation2 + $0x1b8] sm:$0xff] }
  0x2f   :  { %359 = vmatpush.msrb.mxu1 %v253_v20  ;;  %332 = vmatpush.msra.mxu3 %v118_v41  ;;  %865 = vpow2.f32 %v89_v59  ;;  %v105_v20 = vmul.f32 %v838_v3, %v102_v5  ;;  %v220_v35 = vld [vmem:[#allocation2 + $0x350] sm:$0xff]  ;;  %v134_v39 = vld [vmem:[#allocation2 + $0xa0] sm:$0xff]  ;;  %v191_v41 = vld [vmem:[#allocation2 + $0x268] sm:$0xff] }
  0x30   :  { %340 = vmatpush.msrb.mxu0 %v202_v24  ;;  %379 = vmatpush.msrb.mxu2 %v158_v34  ;;  %867 = vpow2.f32 %v91_v63  ;;  %v226_v24 = vld [vmem:[#allocation2 + $0x380] sm:$0xff]  ;;  %v131_v43 = vld [vmem:[#allocation2 + $0x88] sm:$0xff]  ;;  %v185_v51 = vld [vmem:[#allocation2 + $0x238] sm:$0xff] }
  0x31   :  { %360 = vmatpush.msrb.mxu1 %v250_v25  ;;  %333 = vmatpush.msra.mxu3 %v115_v53  ;;  %v197_v25 = vld [vmem:[#allocation2 + $0x298] sm:$0xff]  ;;  %v166_v40 = vld [vmem:[#allocation2 + $0x1a0] sm:$0xff]  ;;  %v163_v44 = vld [vmem:[#allocation2 + $0x188] sm:$0xff] }
  0x32   :  { %341 = vmatpush.msrb.mxu0 %v199_v29  ;;  %380 = vmatpush.msrb.mxu2 %v155_v42  ;;  %v137_v29 = vld [vmem:[#allocation2 + $0xb8] sm:$0xff]  ;;  %v214_v42 = vld [vmem:[#allocation2 + $0x320] sm:$0xff]  ;;  %v211_v47 = vld [vmem:[#allocation2 + $0x308] sm:$0xff] }
  0x33   :  { %361 = vmatpush.msrb.mxu1 %v247_v32  ;;  %398 = vmatpush.msrb.mxu3 %v209_v60  ;;  %v864_v13 = vpop.eup %863  ;;  %v128_v52 = vld [vmem:[#allocation2 + $0x70] sm:$0xff]  ;;  %v254_v53 = vld [vmem:[#allocation2 + $0x460] sm:$0xff]  ;;  %v179_v59 = vld [vmem:[#allocation2 + $0x208] sm:$0xff] }
  0x34   :  { %342 = vmatpush.msrb.mxu0 %v196_v37  ;;  %381 = vmatpush.msrb.mxu2 %v152_v54  ;;  %v110_v16 = vmul.f32 %v864_v13, %v63_v2  ;;  %v194_v37 = vld [vmem:[#allocation2 + $0x280] sm:$0xff]  ;;  %v542_v54 = vld [vmem:[#allocation4 + $0x168] sm:$0xff]  ;;  %v539_v57 = vld [vmem:[#allocation4 + $0x150] sm:$0xff] }
  0x35   :  { %362 = vmatpush.msrb.mxu1 %v244_v38  ;;  %399 = vmatpush.msrb.mxu3 %v206_v50  ;;  %v866_v62 = vpop.eup %865  ;;  %v217_v38 = vld [vmem:[#allocation2 + $0x338] sm:$0xff]  ;;  %v182_v55 = vld [vmem:[#allocation2 + $0x220] sm:$0xff]  ;;  %v527_v10 = vld [vmem:[#allocation4 + $0xf0] sm:$0xff] }
  0x36   :  { %343 = vmatpush.msrb.mxu0 %v193_v46  ;;  %382 = vmatpush.msrb.mxu2 %v149_v61  ;;  %v1026_v22 = vadd.f32 %v110_v16, %v107_v9  ;;  %v868_v26 = vpop.eup %867  ;;  %v108_v27 = vmul.f32 %v866_v62, %v61_v14  ;;  %v188_v46 = vld [vmem:[#allocation2 + $0x250] sm:$0xff]  ;;  %v122_v60 = vld [vmem:[#allocation2 + $0x40] sm:$0xff]  ;;  %v536_v63 = vld [vmem:[#allocation4 + $0x138] sm:$0xff] }
  0x37   :  { %363 = vmatpush.msrb.mxu1 %v241_v48  ;;  %400 = vmatpush.msrb.mxu3 %v203_v11  ;;  %v109_v30 = vmul.f32 %v868_v26, %v62_v17  ;;  %v257_v48 = vld [vmem:[#allocation2 + $0x478] sm:$0xff]  ;;  %v248_v61 = vld [vmem:[#allocation2 + $0x430] sm:$0xff]  ;;  %v533_v3 = vld [vmem:[#allocation4 + $0x120] sm:$0xff] }
  0x38   :  { %344 = vmatpush.msrb.mxu0 %v190_v45  ;;  %383 = vmatpush.msrb.mxu2 %v146_v4  ;;  %v1029_v32 = vadd.f32 %v108_v27, %v105_v20  ;;  %v125_v45 = vld [vmem:[#allocation2 + $0x58] sm:$0xff]  ;;  %v116_v4 = vld [vmem:[#allocation2 + $0x10] sm:$0xff]  ;;  %v242_v5 = vld [vmem:[#allocation2 + $0x400] sm:$0xff] }
  0x39   :  { %364 = vmatpush.msrb.mxu1 %v238_v56  ;;  %401 = vmatpush.msrb.mxu3 %v200_v18  ;;  %v1031_v34 = vadd.f32 %v109_v30, %v106_v23  ;;  %v251_v56 = vld [vmem:[#allocation2 + $0x448] sm:$0xff]  ;;  %v245_v2 = vld [vmem:[#allocation2 + $0x418] sm:$0xff]  ;;  %v170_v6 = vld [vmem:[#allocation2 + $0x1c0] sm:$0xff] }
  0x3a   :  { %345 = vmatpush.msrb.mxu0 %v187_v0  ;;  %384 = vmatpush.msrb.mxu2 %v143_v12  ;;  %v176_v0 = vld [vmem:[#allocation2 + $0x1f0] sm:$0xff]  ;;  %v173_v50 = vld [vmem:[#allocation2 + $0x1d8] sm:$0xff]  ;;  %v167_v9 = vld [vmem:[#allocation2 + $0x1a8] sm:$0xff] }
  0x3b   :  { %365 = vmatpush.msrb.mxu1 %v235_v1  ;;  %314 = vmatmul.f32.vlgmr.msra.gmra.mxu2 %v1026_v22  ;;  %v119_v1 = vld [vmem:[#allocation2 + $0x28] sm:$0xff]  ;;  %v236_v11 = vld [vmem:[#allocation2 + $0x3d0] sm:$0xff]  ;;  %v524_v13 = vld [vmem:[#allocation4 + $0xd8] sm:$0xff] }
  0x3c   :  { %346 = vmatpush.msrb.mxu0 %v184_v7  ;;  %385 = vmatpush.msrb.mxu2 %v140_v19  ;;  %v530_v7 = vld [vmem:[#allocation4 + $0x108] sm:$0xff]  ;;  %v164_v12 = vld [vmem:[#allocation2 + $0x190] sm:$0xff]  ;;  %v233_v14 = vld [vmem:[#allocation2 + $0x3b8] sm:$0xff] }
  0x3d   :  { %366 = vmatpush.msrb.mxu1 %v232_v8  ;;  %402 = vmatpush.msrb.mxu3 %v197_v25  ;;  %v239_v8 = vld [vmem:[#allocation2 + $0x3e8] sm:$0xff]  ;;  %v224_v16 = vld [vmem:[#allocation2 + $0x370] sm:$0xff]  ;;  %v221_v17 = vld [vmem:[#allocation2 + $0x358] sm:$0xff] }
  0x3e   :  { %347 = vmatpush.msrb.mxu0 %v181_v15  ;;  %386 = vmatpush.msrb.mxu2 %v137_v29  ;;  %v230_v15 = vld [vmem:[#allocation2 + $0x3a0] sm:$0xff]  ;;  %v215_v19 = vld [vmem:[#allocation2 + $0x328] sm:$0xff]  ;;  %v212_v20 = vld [vmem:[#allocation2 + $0x310] sm:$0xff] }
  0x3f   :  { %367 = vmatpush.msrb.mxu1 %v229_v58  ;;  %274 = vmatmul.f32.vlgmr.msra.gmra.mxu0 %v1029_v32  ;;  %v227_v58 = vld [vmem:[#allocation2 + $0x388] sm:$0xff]  ;;  %v218_v18 = vld [vmem:[#allocation2 + $0x340] sm:$0xff]  ;;  %v540_v62 = vld [vmem:[#allocation4 + $0x158] sm:$0xff] }
  0x40   :  { %348 = vmatpush.msrb.mxu0 %v178_v21  ;;  %294 = vmatmul.f32.vlgmr.msra.gmra.mxu1 %v1031_v34  ;;  %v543_v21 = vld [vmem:[#allocation4 + $0x170] sm:$0xff]  ;;  %v537_v23 = vld [vmem:[#allocation4 + $0x140] sm:$0xff]  ;;  %v528_v26 = vld [vmem:[#allocation4 + $0xf8] sm:$0xff] }
  0x41   :  { %368 = vmatpush.msrb.mxu1 %v226_v24  ;;  %334 = vmatmul.f32.vlgmr.msra.gmra.mxu3 %v1029_v32  ;;  %v534_v24 = vld [vmem:[#allocation4 + $0x128] sm:$0xff]  ;;  %v531_v25 = vld [vmem:[#allocation4 + $0x110] sm:$0xff]  ;;  %v521_v27 = vld [vmem:[#allocation4 + $0xc0] sm:$0xff] }
  0x42   :  { %349 = vmatpush.msrb.mxu0 %v175_v28  ;;  %403 = vmatpush.msrb.mxu3 %v194_v37  ;;  %v525_v28 = vld [vmem:[#allocation4 + $0xe0] sm:$0xff]  ;;  %v518_v29 = vld [vmem:[#allocation4 + $0xa8] sm:$0xff] }
  0x43   :  { %369 = vmatpush.msrb.mxu1 %v223_v31  ;;  %387 = vmatpush.msrb.mxu2 %v134_v39  ;;  %v522_v30 = vld [vmem:[#allocation4 + $0xc8] sm:$0xff]  ;;  %v519_v31 = vld [vmem:[#allocation4 + $0xb0] sm:$0xff] }
  0x44   :  { %350 = vmatpush.msrb.mxu0 %v172_v33  ;;  %404 = vmatpush.msrb.mxu3 %v191_v41  ;;  %v516_v33 = vld [vmem:[#allocation4 + $0x98] sm:$0xff]  ;;  %v510_v37 = vld [vmem:[#allocation4 + $0x68] sm:$0xff]  ;;  %v507_v39 = vld [vmem:[#allocation4 + $0x50] sm:$0xff] }
  0x45   :  { %370 = vmatpush.msrb.mxu1 %v220_v35  ;;  %388 = vmatpush.msrb.mxu2 %v131_v43  ;;  %v513_v35 = vld [vmem:[#allocation4 + $0x80] sm:$0xff]  ;;  %v504_v41 = vld [vmem:[#allocation4 + $0x38] sm:$0xff]  ;;  %v590_v43 = vld [vmem:[#allocation4 + $0x2e8] sm:$0xff] }
  0x46   :  { %351 = vmatpush.msrb.mxu0 %v169_v36  ;;  %405 = vmatpush.msrb.mxu3 %v188_v46  ;;  %v506_v36 = vld [vmem:[#allocation4 + $0x48] sm:$0xff]  ;;  %v591_v46 = vld [vmem:[#allocation4 + $0x2f0] sm:$0xff] }
  0x47   :  { %371 = vmatpush.msrb.mxu1 %v217_v38  ;;  %389 = vmatpush.msrb.mxu2 %v128_v52  ;;  %v503_v38 = vld [vmem:[#allocation4 + $0x30] sm:$0xff]  ;;  %v944_v52 = vmov 3.0  }
  0x48   :  { %352 = vmatpush.msrb.mxu0 %v166_v40  ;;  %406 = vmatpush.msrb.mxu3 %v185_v51  ;;  %v500_v40 = vld [vmem:[#allocation4 + $0x18] sm:$0xff]  ;;  %869 = vrcp.f32 %v944_v52 }
  0x49   :  { %372 = vmatpush.msrb.mxu1 %v214_v42  ;;  %390 = vmatpush.msrb.mxu2 %v125_v45  ;;  %v497_v42 = vld [vmem:[#allocation4] sm:$0xff]  ;;  %v588_v51 = vld [vmem:[#allocation4 + $0x2d8] sm:$0xff] }
  0x4a   :  { %353 = vmatpush.msrb.mxu0 %v163_v44  ;;  %407 = vmatpush.msrb.mxu3 %v182_v55  ;;  %v501_v44 = vld [vmem:[#allocation4 + $0x20] sm:$0xff]  ;;  %v584_v55 = vld [vmem:[#allocation4 + $0x2b8] sm:$0xff] }
  0x4b   :  { %354 = vmatmul.f32.vlgmr.msrb.gmra.mxu0 %v1031_v34  ;;  %373 = vmatpush.msrb.mxu1 %v211_v47  ;;  %v587_v47 = vld [vmem:[#allocation4 + $0x2d0] sm:$0xff]  ;;  %v585_v45 = vld [vmem:[#allocation4 + $0x2c0] sm:$0xff] }
  0x4c   :  { %418 = vmatpush.msra.mxu0 %v257_v48  ;;  %374 = vmatmul.f32.vlgmr.msrb.gmra.mxu1 %v1026_v22  ;;  %v498_v48 = vld [vmem:[#allocation4 + $0x8] sm:$0xff] }
  0x4d   :  { %649 = vmatpush.msra.mxu1 %v542_v54  ;;  %408 = vmatpush.msrb.mxu3 %v179_v59  ;;  %v945_v54 = vmov 0.12841855   ;;  %v582_v59 = vld [vmem:[#allocation4 + $0x2a8] sm:$0xff] }
  0x4e   :  { %419 = vmatpush.msra.mxu0 %v254_v53  ;;  %391 = vmatpush.msrb.mxu2 %v122_v60  ;;  %v592_v53 = vld [vmem:[#allocation4 + $0x2f8] sm:$0xff]  ;;  %871 = vrcp.f32 %v945_v54  ;;  %v586_v60 = vld [vmem:[#allocation4 + $0x2c8] sm:$0xff]  ;;  %v611_v54 = vld [vmem:[#allocation4 + $0x390] sm:$0xff] }
  0x4f   :  { %650 = vmatpush.msra.mxu1 %v539_v57  ;;  %409 = vmatpush.msrb.mxu3 %v176_v0  ;;  %v581_v57 = vld [vmem:[#allocation4 + $0x2a0] sm:$0xff]  ;;  %v579_v0 = vld [vmem:[#allocation4 + $0x290] sm:$0xff] }
  0x50   :  { %420 = vmatpush.msra.mxu0 %v251_v56  ;;  %392 = vmatpush.msrb.mxu2 %v119_v1  ;;  %v589_v56 = vld [vmem:[#allocation4 + $0x2e0] sm:$0xff]  ;;  %v1041_v1 = vpop.eup %869 }
  0x51   :  { %651 = vmatpush.msra.mxu1 %v536_v63  ;;  %410 = vmatpush.msrb.mxu3 %v173_v50  ;;  %v638_v63 = vld [vmem:[#allocation4 + $0x468] sm:$0xff]  ;;  %v575_v50 = vld [vmem:[#allocation4 + $0x270] sm:$0xff]  ;;  %vm464_vm5 = vweird.f32 %v1041_v1 }
  0x52   :  { %421 = vmatpush.msra.mxu0 %v248_v61  ;;  %393 = vmatpush.msrb.mxu2 %v116_v4  ;;  %v578_v61 = vld [vmem:[#allocation4 + $0x288] sm:$0xff]  ;;  %v635_v4 = vld [vmem:[#allocation4 + $0x450] sm:$0xff] }
  0x53   :  { %652 = vmatpush.msra.mxu1 %v533_v3  ;;  %394 = vmatmul.f32.vlgmr.msrb.gmra.mxu2 %v1029_v32  ;;  %v512_v32 = vld [vmem:[#allocation4 + $0x78] sm:$0xff] }
  0x54   :  { %422 = vmatpush.msra.mxu0 %v245_v2  ;;  %411 = vmatpush.msrb.mxu3 %v170_v6  ;;  %v583_v2 = vld [vmem:[#allocation4 + $0x2b0] sm:$0xff]  ;;  %v1043_v3 = vpop.eup %871  ;;  %v580_v6 = vld [vmem:[#allocation4 + $0x298] sm:$0xff] }
  0x55   :  { %653 = vmatpush.msra.mxu1 %v530_v7  ;;  %669 = vmatpush.msra.mxu2 %v590_v43  ;;  %v460_v7 = vmul.f32 3.0, %v1041_v1  ;;  %v554_v43 = vld [vmem:[#allocation4 + $0x1c8] sm:$0xff]  ;;  %vm480_vm6 = vweird.f32 %v1043_v3 }
  0x56   :  { %423 = vmatpush.msra.mxu0 %v242_v5  ;;  %412 = vmatpush.msrb.mxu3 %v167_v9  ;;  %v576_v5 = vld [vmem:[#allocation4 + $0x278] sm:$0xff] }
  0x57   :  { %654 = vmatpush.msra.mxu1 %v527_v10  ;;  %670 = vmatpush.msra.mxu2 %v587_v47  ;;  %v632_v9 = vld [vmem:[#allocation4 + $0x438] sm:$0xff]  ;;  %v573_v10 = vld [vmem:[#allocation4 + $0x260] sm:$0xff] }
  0x58   :  { %424 = vmatpush.msra.mxu0 %v239_v8  ;;  %413 = vmatpush.msrb.mxu3 %v164_v12  ;;  %v572_v8 = vld [vmem:[#allocation4 + $0x258] sm:$0xff]  ;;  %v577_v12 = vld [vmem:[#allocation4 + $0x280] sm:$0xff] }
  0x59   :  { %655 = vmatpush.msra.mxu1 %v524_v13  ;;  %414 = vmatmul.f32.vlgmr.msrb.gmra.mxu3 %v1031_v34  ;;  %v509_v34 = vld [vmem:[#allocation4 + $0x60] sm:$0xff] }
  0x5a   :  { %425 = vmatpush.msra.mxu0 %v236_v11  ;;  %671 = vmatpush.msra.mxu2 %v584_v55  ;;  %v476_v11 = vmul.f32 0.12841855, %v1043_v3 }
  0x5b   :  { %656 = vmatpush.msra.mxu1 %v521_v27  ;;  %689 = vmatpush.msra.mxu3 %v638_v63  ;;  %v623_v27 = vld [vmem:[#allocation4 + $0x3f0] sm:$0xff]  ;;  %v549_v63 = vld [vmem:[#allocation4 + $0x1a0] sm:$0xff] }
  0x5c   :  { %426 = vmatpush.msra.mxu0 %v233_v14  ;;  %672 = vmatpush.msra.mxu2 %v581_v57  ;;  %v569_v14 = vld [vmem:[#allocation4 + $0x240] sm:$0xff]  ;;  %v556_v57 = vld [vmem:[#allocation4 + $0x1d8] sm:$0xff] }
  0x5d   :  { %657 = vmatpush.msra.mxu1 %v518_v29  ;;  %690 = vmatpush.msra.mxu3 %v635_v4  ;;  %v564_v29 = vld [vmem:[#allocation4 + $0x218] sm:$0xff]  ;;  %v545_v4 = vld [vmem:[#allocation4 + $0x180] sm:$0xff] }
  0x5e   :  { %427 = vmatpush.msra.mxu0 %v230_v15  ;;  %673 = vmatpush.msra.mxu2 %v578_v61  ;;  %v629_v15 = vld [vmem:[#allocation4 + $0x420] sm:$0xff] }
  0x5f   :  { %691 = vmatpush.msra.mxu3 %v632_v9  ;;  %v639_v9 = vld [vmem:[#allocation4 + $0x470] sm:$0xff] }
  0x60   :  { %428 = vmatpush.msra.mxu0 %v227_v58  ;;  %674 = vmatpush.msra.mxu2 %v575_v50  ;;  %v570_v58 = vld [vmem:[#allocation4 + $0x248] sm:$0xff] }
  0x61   :  { %692 = vmatpush.msra.mxu3 %v629_v15  ;;  %v599_v15 = vld [vmem:[#allocation4 + $0x330] sm:$0xff] }
  0x62   :  { %429 = vmatpush.msra.mxu0 %v224_v16  ;;  %675 = vmatpush.msra.mxu2 %v572_v8  ;;  %v546_v8 = vld [vmem:[#allocation4 + $0x188] sm:$0xff] }
  0x64   :  { %430 = vmatpush.msra.mxu0 %v221_v17  ;;  %676 = vmatpush.msra.mxu2 %v569_v14  ;;  %v574_v17 = vld [vmem:[#allocation4 + $0x268] sm:$0xff]  ;;  %v547_v14 = vld [vmem:[#allocation4 + $0x190] sm:$0xff] }
  0x66   :  { %431 = vmatpush.msra.mxu0 %v218_v18 }
  0x68   :  { %432 = vmatpush.msra.mxu0 %v215_v19  ;;  %v461_v19 = vsub.f32 1.0, %v460_v7 }
  0x6a   :  { %433 = vmatpush.msra.mxu0 %v212_v20  ;;  %v566_v20 = vld [vmem:[#allocation4 + $0x228] sm:$0xff] }
  0x6b   :  { %434 = vmatmul.f32.vlgmr.msra.gmra.mxu0 %v1026_v22  ;;  %v515_v22 = vld [vmem:[#allocation4 + $0x90] sm:$0xff]  ;;  %677 = vmatpush.msra.mxu2 %v566_v20  ;;  %v596_v20 = vld [vmem:[#allocation4 + $0x318] sm:$0xff] }
  0x6c   :  { %709 = vmatpush.msrb.mxu0 %v543_v21  ;;  %658 = vmatpush.msra.mxu1 %v515_v22  ;;  %v626_v21 = vld [vmem:[#allocation4 + $0x408] sm:$0xff]  ;;  %v560_v22 = vld [vmem:[#allocation4 + $0x1f8] sm:$0xff] }
  0x6d   :  { %693 = vmatpush.msra.mxu3 %v626_v21  ;;  %v630_v21 = vld [vmem:[#allocation4 + $0x428] sm:$0xff] }
  0x6e   :  { %710 = vmatpush.msrb.mxu0 %v540_v62  ;;  %659 = vmatpush.msra.mxu1 %v512_v32  ;;  %v567_v62 = vld [vmem:[#allocation4 + $0x230] sm:$0xff]  ;;  %v561_v32 = vld [vmem:[#allocation4 + $0x200] sm:$0xff] }
  0x6f   :  { %694 = vmatpush.msra.mxu3 %v623_v27  ;;  %v544_v27 = vld [vmem:[#allocation4 + $0x178] sm:$0xff] }
  0x70   :  { %711 = vmatpush.msrb.mxu0 %v537_v23  ;;  %660 = vmatpush.msra.mxu1 %v509_v34 }
  0x72   :  { %712 = vmatpush.msrb.mxu0 %v534_v24  ;;  %661 = vmatpush.msra.mxu1 %v506_v36  ;;  %v477_v24 = vsub.f32 1.0, %v476_v11  ;;  %v557_v36 = vld [vmem:[#allocation4 + $0x1e0] sm:$0xff] }
  0x74   :  { %713 = vmatpush.msrb.mxu0 %v531_v25  ;;  %662 = vmatpush.msra.mxu1 %v503_v38  ;;  %v571_v25 = vld [vmem:[#allocation4 + $0x250] sm:$0xff]  ;;  %v478_v38 = vmul.f32 %v1043_v3, %v477_v24  ;;  %v593_v24 = vld [vmem:[#allocation4 + $0x300] sm:$0xff] }
  0x76   :  { %714 = vmatpush.msrb.mxu0 %v528_v26  ;;  %663 = vmatpush.msra.mxu1 %v500_v40  ;;  %v563_v26 = vld [vmem:[#allocation4 + $0x210] sm:$0xff]  ;;  %v562_v40 = vld [vmem:[#allocation4 + $0x208] sm:$0xff]  ;;  %v479_v55 = vadd.f32 %v1043_v3, %v478_v38  ;;  %v640_v38 = vld [vmem:[#allocation4 + $0x478] sm:$0xff] }
  0x77   :  { %678 = vmatpush.msra.mxu2 %v563_v26  ;;  %v627_v26 = vld [vmem:[#allocation4 + $0x410] sm:$0xff] }
  0x78   :  { %715 = vmatpush.msrb.mxu0 %v525_v28  ;;  %664 = vmatpush.msra.mxu1 %v497_v42  ;;  %v1067_v7 = vsel %vm480_vm6, %v1043_v3, %v479_v55  ;;  %v529_v55 = vld [vmem:[#allocation4 + $0x100] sm:$0xff] }
  0x79   :  { %679 = vmatpush.msra.mxu2 %v560_v22  ;;  %v624_v22 = vld [vmem:[#allocation4 + $0x3f8] sm:$0xff] }
  0x7a   :  { %716 = vmatpush.msrb.mxu0 %v522_v30  ;;  %729 = vmatpush.msrb.mxu1 %v591_v46  ;;  %v568_v30 = vld [vmem:[#allocation4 + $0x238] sm:$0xff] }
  0x7b   :  { %680 = vmatpush.msra.mxu2 %v557_v36  ;;  %v538_v36 = vld [vmem:[#allocation4 + $0x148] sm:$0xff] }
  0x7c   :  { %717 = vmatpush.msrb.mxu0 %v519_v31  ;;  %730 = vmatpush.msrb.mxu1 %v588_v51  ;;  %v620_v31 = vld [vmem:[#allocation4 + $0x3d8] sm:$0xff]  ;;  %v559_v51 = vld [vmem:[#allocation4 + $0x1f0] sm:$0xff] }
  0x7d   :  { %695 = vmatpush.msra.mxu3 %v620_v31  ;;  %681 = vmatpush.msra.mxu2 %v554_v43  ;;  %v541_v31 = vld [vmem:[#allocation4 + $0x160] sm:$0xff] }
  0x7e   :  { %718 = vmatpush.msrb.mxu0 %v516_v33  ;;  %731 = vmatpush.msrb.mxu1 %v585_v45  ;;  %v565_v33 = vld [vmem:[#allocation4 + $0x220] sm:$0xff] }
  0x80   :  { %719 = vmatpush.msrb.mxu0 %v513_v35  ;;  %732 = vmatpush.msrb.mxu1 %v582_v59  ;;  %v462_v35 = vmul.f32 %v1041_v1, %v461_v19  ;;  %v548_v59 = vld [vmem:[#allocation4 + $0x198] sm:$0xff] }
  0x82   :  { %720 = vmatpush.msrb.mxu0 %v510_v37  ;;  %733 = vmatpush.msrb.mxu1 %v579_v0  ;;  %v617_v37 = vld [vmem:[#allocation4 + $0x3c0] sm:$0xff]  ;;  %v463_v52 = vadd.f32 %v1041_v1, %v462_v35 }
  0x83   :  { %696 = vmatpush.msra.mxu3 %v617_v37  ;;  %v553_v0 = vld [vmem:[#allocation4 + $0x1c0] sm:$0xff] }
  0x84   :  { %721 = vmatpush.msrb.mxu0 %v507_v39  ;;  %734 = vmatpush.msrb.mxu1 %v576_v5  ;;  %v558_v39 = vld [vmem:[#allocation4 + $0x1e8] sm:$0xff]  ;;  %v1062_v50 = vsel %vm464_vm5, %v1041_v1, %v463_v52  ;;  %v605_v5 = vld [vmem:[#allocation4 + $0x360] sm:$0xff] }
  0x85   :  { %v602_v1 = vld [vmem:[#allocation4 + $0x348] sm:$0xff]  ;;  %v621_v35 = vld [vmem:[#allocation4 + $0x3e0] sm:$0xff] }
  0x86   :  { %722 = vmatpush.msrb.mxu0 %v504_v41  ;;  %735 = vmatpush.msrb.mxu1 %v573_v10  ;;  %v550_v10 = vld [vmem:[#allocation4 + $0x1a8] sm:$0xff] }
  0x87   :  { %v634_v52 = vld [vmem:[#allocation4 + $0x448] sm:$0xff] }
  0x88   :  { %723 = vmatpush.msrb.mxu0 %v501_v44  ;;  %736 = vmatpush.msrb.mxu1 %v570_v58  ;;  %v614_v44 = vld [vmem:[#allocation4 + $0x3a8] sm:$0xff] }
  0x89   :  { %697 = vmatpush.msra.mxu3 %v614_v44  ;;  %v615_v44 = vld [vmem:[#allocation4 + $0x3b0] sm:$0xff] }
  0x8a   :  { %724 = vmatpush.msrb.mxu0 %v498_v48  ;;  %737 = vmatpush.msrb.mxu1 %v567_v62  ;;  %v555_v48 = vld [vmem:[#allocation4 + $0x1d0] sm:$0xff] }
  0x8b   :  { %698 = vmatpush.msra.mxu3 %v611_v54 }
  0x8c   :  { %789 = vmatpush.msra.mxu0 %v592_v53  ;;  %738 = vmatpush.msrb.mxu1 %v564_v29  ;;  %v551_v53 = vld [vmem:[#allocation4 + $0x1b0] sm:$0xff] }
  0x8d   :  { %682 = vmatpush.msra.mxu2 %v551_v53  ;;  %v612_v53 = vld [vmem:[#allocation4 + $0x398] sm:$0xff] }
  0x8e   :  { %790 = vmatpush.msra.mxu0 %v589_v56  ;;  %739 = vmatpush.msrb.mxu1 %v561_v32  ;;  %v552_v56 = vld [vmem:[#allocation4 + $0x1b8] sm:$0xff] }
  0x8f   :  { %683 = vmatpush.msra.mxu2 %v548_v59  ;;  %v628_v59 = vld [vmem:[#allocation4 + $0x418] sm:$0xff] }
  0x90   :  { %791 = vmatpush.msra.mxu0 %v586_v60  ;;  %740 = vmatpush.msrb.mxu1 %v558_v39  ;;  %v608_v60 = vld [vmem:[#allocation4 + $0x378] sm:$0xff] }
  0x91   :  { %699 = vmatpush.msra.mxu3 %v608_v60  ;;  %684 = vmatpush.msra.mxu2 %v545_v4  ;;  %v609_v60 = vld [vmem:[#allocation4 + $0x380] sm:$0xff] }
  0x92   :  { %792 = vmatpush.msra.mxu0 %v583_v2  ;;  %741 = vmatpush.msrb.mxu1 %v555_v48 }
  0x93   :  { %700 = vmatpush.msra.mxu3 %v605_v5  ;;  %749 = vmatpush.msrb.mxu2 %v639_v9  ;;  %v523_v5 = vld [vmem:[#allocation4 + $0xd0] sm:$0xff] }
  0x94   :  { %793 = vmatpush.msra.mxu0 %v580_v6  ;;  %742 = vmatpush.msrb.mxu1 %v552_v56 }
  0x95   :  { %701 = vmatpush.msra.mxu3 %v602_v1  ;;  %v619_v1 = vld [vmem:[#allocation4 + $0x3d0] sm:$0xff] }
  0x96   :  { %794 = vmatpush.msra.mxu0 %v577_v12  ;;  %743 = vmatpush.msrb.mxu1 %v549_v63 }
  0x97   :  { %702 = vmatpush.msra.mxu3 %v599_v15  ;;  %v613_v15 = vld [vmem:[#allocation4 + $0x3a0] sm:$0xff] }
  0x98   :  { %795 = vmatpush.msra.mxu0 %v574_v17  ;;  %744 = vmatpush.msrb.mxu1 %v546_v8  ;;  %v633_v17 = vld [vmem:[#allocation4 + $0x440] sm:$0xff]  ;;  %v603_v8 = vld [vmem:[#allocation4 + $0x350] sm:$0xff] }
  0x99   :  { %703 = vmatpush.msra.mxu3 %v596_v20 }
  0x9a   :  { %796 = vmatpush.msra.mxu0 %v571_v25 }
  0x9b   :  { %704 = vmatpush.msra.mxu3 %v593_v24  ;;  %v604_v24 = vld [vmem:[#allocation4 + $0x358] sm:$0xff] }
  0x9c   :  { %797 = vmatpush.msra.mxu0 %v568_v30 }
  0x9d   :  { %769 = vmatpush.msrb.mxu3 %v544_v27  ;;  %v601_v27 = vld [vmem:[#allocation4 + $0x340] sm:$0xff] }
  0x9e   :  { %798 = vmatpush.msra.mxu0 %v565_v33 }
  0x9f   :  { %770 = vmatpush.msrb.mxu3 %v541_v31  ;;  %v595_v31 = vld [vmem:[#allocation4 + $0x310] sm:$0xff] }
  0xa0   :  { %799 = vmatpush.msra.mxu0 %v562_v40  ;;  %v618_v40 = vld [vmem:[#allocation4 + $0x3c8] sm:$0xff] }
  0xa1   :  { %771 = vmatpush.msrb.mxu3 %v538_v36 }
  0xa2   :  { %800 = vmatpush.msra.mxu0 %v559_v51 }
  0xa4   :  { %801 = vmatpush.msra.mxu0 %v556_v57 }
  0xa6   :  { %802 = vmatpush.msra.mxu0 %v553_v0  ;;  %v625_v0 = vld [vmem:[#allocation4 + $0x400] sm:$0xff] }
  0xa8   :  { %803 = vmatpush.msra.mxu0 %v550_v10  ;;  %v520_v10 = vld [vmem:[#allocation4 + $0xb8] sm:$0xff] }
  0xaa   :  { %804 = vmatpush.msra.mxu0 %v547_v14  ;;  %v514_v14 = vld [vmem:[#allocation4 + $0x88] sm:$0xff] }
  0xbc   :  { %v275_v13 = vpop.f32.mrf.mxu0 }
  0xbd   :  { %v295_v16 = vpop.f32.mrf.mxu1 }
  0xbe   :  { %v296_v18 = vadd.f32 %v295_v16, %v275_v13  ;;  %v315_v23 = vpop.f32.mrf.mxu2  ;;  %v636_v13 = vld [vmem:[#allocation4 + $0x458] sm:$0xff] }
  0xbf   :  { %750 = vmatpush.msrb.mxu2 %v636_v13  ;;  %v597_v13 = vld [vmem:[#allocation4 + $0x320] sm:$0xff] }
  0xc0   :  { %v1047_v28 = vadd.f32 %v315_v23, %v296_v18 }
  0xc1   :  { %751 = vmatpush.msrb.mxu2 %v633_v17  ;;  %v610_v17 = vld [vmem:[#allocation4 + $0x388] sm:$0xff] }
  0xc2   :  { %v450_v34 = vadd.f32 1e-06, %v1047_v28  ;;  %vm438_vm7 = vcmp.le.f32.partialorder %v1047_v28, 0.008856452  ;;  %v482_v12 = vmul.f32 %v1067_v7, %v1047_v28 }
  0xc3   :  { %v841_v16 = vsel %vm438_vm7, 1.0, %v943_v49  ;;  %752 = vmatpush.msrb.mxu2 %v630_v21  ;;  %v607_v21 = vld [vmem:[#allocation4 + $0x370] sm:$0xff] }
  0xc4   :  { %873 = vlog2.f32 %v450_v34  ;;  %v335_v41 = vpop.f32.mrf.mxu3  ;;  %v485_v18 = vadd.f32 0.13793103, %v482_v12  ;;  %v447_v62 = vsub.f32 1.0, %v841_v16  ;;  %v517_v12 = vld [vmem:[#allocation4 + $0xa0] sm:$0xff] }
  0xc5   :  { %753 = vmatpush.msrb.mxu2 %v627_v26 }
  0xc6   :  { %v488_v28 = vmul.f32 %v841_v16, %v485_v18  ;;  %v511_v16 = vld [vmem:[#allocation4 + $0x70] sm:$0xff] }
  0xc7   :  { %754 = vmatpush.msrb.mxu2 %v624_v22 }
  0xc8   :  { %v355_v42 = vpop.f32.mrf.mxu0 }
  0xc9   :  { %v356_v46 = vadd.f32 %v355_v42, %v335_v41  ;;  %v375_v47 = vpop.f32.mrf.mxu1  ;;  %755 = vmatpush.msrb.mxu2 %v621_v35  ;;  %v535_v41 = vld [vmem:[#allocation4 + $0x130] sm:$0xff]  ;;  %v637_v42 = vld [vmem:[#allocation4 + $0x460] sm:$0xff] }
  0xca   :  { %v874_v2 = vpop.eup %873  ;;  %772 = vmatpush.msrb.mxu3 %v535_v41 }
  0xcb   :  { %v1055_v45 = vadd.f32 %v375_v47, %v356_v46  ;;  %v454_v6 = vmul.f32 0.6931472, %v874_v2  ;;  %756 = vmatpush.msrb.mxu2 %v618_v40  ;;  %v532_v46 = vld [vmem:[#allocation4 + $0x118] sm:$0xff]  ;;  %v606_v2 = vld [vmem:[#allocation4 + $0x368] sm:$0xff] }
  0xcc   :  { %773 = vmatpush.msrb.mxu3 %v532_v46 }
  0xcd   :  { %v451_v61 = vadd.f32 1e-06, %v1055_v45  ;;  %v466_v11 = vmul.f32 %v1062_v50, %v454_v6  ;;  %vm439_vm8 = vcmp.le.f32.partialorder %v1055_v45, 0.008856452  ;;  %v483_v25 = vmul.f32 %v1067_v7, %v1055_v45  ;;  %757 = vmatpush.msrb.mxu2 %v615_v44  ;;  %v631_v45 = vld [vmem:[#allocation4 + $0x430] sm:$0xff]  ;;  %v622_v6 = vld [vmem:[#allocation4 + $0x3e8] sm:$0xff] }
  0xce   :  { %v842_v33 = vsel %vm439_vm8, 1.0, %v943_v49  ;;  %774 = vmatpush.msrb.mxu3 %v529_v55 }
  0xcf   :  { %875 = vlog2.f32 %v451_v61  ;;  %v469_v3 = vmul.f32 1.442695, %v466_v11  ;;  %v486_v34 = vadd.f32 0.13793103, %v483_v25  ;;  %v448_v39 = vsub.f32 1.0, %v842_v33  ;;  %758 = vmatpush.msrb.mxu2 %v612_v53  ;;  %v526_v61 = vld [vmem:[#allocation4 + $0xe8] sm:$0xff] }
  0xd0   :  { %775 = vmatpush.msrb.mxu3 %v526_v61  ;;  %v600_v11 = vld [vmem:[#allocation4 + $0x338] sm:$0xff]  ;;  %v502_v25 = vld [vmem:[#allocation4 + $0x28] sm:$0xff] }
  0xd1   :  { %877 = vpow2.f32 %v469_v3  ;;  %v489_v43 = vmul.f32 %v842_v33, %v486_v34  ;;  %759 = vmatpush.msrb.mxu2 %v609_v60  ;;  %v616_v3 = vld [vmem:[#allocation4 + $0x3b8] sm:$0xff] }
  0xd2   :  { %776 = vmatpush.msrb.mxu3 %v523_v5 }
  0xd3   :  { %760 = vmatpush.msrb.mxu2 %v606_v2 }
  0xd4   :  { %777 = vmatpush.msrb.mxu3 %v520_v10 }
  0xd5   :  { %v876_v58 = vpop.eup %875  ;;  %761 = vmatpush.msrb.mxu2 %v603_v8 }
  0xd6   :  { %v456_v19 = vmul.f32 0.6931472, %v876_v58  ;;  %v395_v48 = vpop.f32.mrf.mxu2  ;;  %778 = vmatpush.msrb.mxu3 %v517_v12  ;;  %v594_v58 = vld [vmem:[#allocation4 + $0x308] sm:$0xff] }
  0xd7   :  { %v878_v30 = vpop.eup %877  ;;  %762 = vmatpush.msrb.mxu2 %v600_v11 }
  0xd8   :  { %v467_v23 = vmul.f32 %v1062_v50, %v456_v19  ;;  %v491_v32 = vmul.f32 %v878_v30, %v447_v62  ;;  %779 = vmatpush.msrb.mxu3 %v514_v14  ;;  %v508_v19 = vld [vmem:[#allocation4 + $0x58] sm:$0xff]  ;;  %v505_v62 = vld [vmem:[#allocation4 + $0x40] sm:$0xff]  ;;  %v598_v30 = vld [vmem:[#allocation4 + $0x328] sm:$0xff] }
  0xd9   :  { %763 = vmatpush.msrb.mxu2 %v597_v13 }
  0xda   :  { %v471_v29 = vmul.f32 1.442695, %v467_v23  ;;  %v1079_v37 = vadd.f32 %v491_v32, %v488_v28  ;;  %780 = vmatpush.msrb.mxu3 %v511_v16 }
  0xdb   :  { %764 = vmatpush.msrb.mxu2 %v594_v58 }
  0xdc   :  { %879 = vpow2.f32 %v471_v29  ;;  %665 = vmatmul.f32.vlgmr.msra.gmra.mxu1 %v1079_v37  ;;  %725 = vmatmul.f32.vlgmr.msrb.gmra.mxu0 %v1079_v37  ;;  %v415_v51 = vpop.f32.mrf.mxu3  ;;  %v499_v29 = vld [vmem:[#allocation4 + $0x10] sm:$0xff] }
  0xdd   :  { %809 = vmatpush.msra.mxu1 %v640_v38  ;;  %v416_v56 = vadd.f32 %v415_v51, %v395_v48  ;;  %781 = vmatpush.msrb.mxu3 %v508_v19 }
  0xdf   :  { %810 = vmatpush.msra.mxu1 %v637_v42  ;;  %782 = vmatpush.msrb.mxu3 %v505_v62 }
  0xe1   :  { %811 = vmatpush.msra.mxu1 %v634_v52  ;;  %783 = vmatpush.msrb.mxu3 %v502_v25 }
  0xe2   :  { %v880_v47 = vpop.eup %879 }
  0xe3   :  { %v492_v54 = vmul.f32 %v880_v47, %v448_v39  ;;  %812 = vmatpush.msra.mxu1 %v631_v45  ;;  %784 = vmatpush.msrb.mxu3 %v499_v29 }
  0xe5   :  { %v495_v57 = vadd.f32 %v492_v54, %v489_v43  ;;  %813 = vmatpush.msra.mxu1 %v628_v59 }
  0xe7   :  { %685 = vmatmul.f32.vlgmr.msra.gmra.mxu2 %v495_v57  ;;  %745 = vmatmul.f32.vlgmr.msrb.gmra.mxu1 %v495_v57 }
  0xe8   :  { %v435_v63 = vpop.f32.mrf.mxu0  ;;  %805 = vmatmul.f32.vlgmr.msra.gmra.mxu0 %v495_v57  ;;  %814 = vmatpush.msra.mxu1 %v625_v0 }
  0xe9   :  { %v436_v4 = vadd.f32 %v435_v63, %v416_v56 }
  0xea   :  { %815 = vmatpush.msra.mxu1 %v622_v6 }
  0xeb   :  { %v452_v9 = vadd.f32 1e-06, %v436_v4  ;;  %vm440_vm9 = vcmp.le.f32.partialorder %v436_v4, 0.008856452  ;;  %v484_v28 = vmul.f32 %v1067_v7, %v436_v4 }
  0xec   :  { %816 = vmatpush.msra.mxu1 %v619_v1  ;;  %v843_v22 = vsel %vm440_vm9, 1.0, %v943_v49  ;;  %v641_v49 = vld [vmem:[%s1102_s3] sm:$0x7] }
  0xed   :  { %881 = vlog2.f32 %v452_v9  ;;  %v449_v32 = vsub.f32 1.0, %v843_v22  ;;  %v643_v39 = vperm.slane %v641_v49, 0  ;;  %v644_v40 = vperm.slane %v641_v49, 1 }
  0xee   :  { %817 = vmatpush.msra.mxu1 %v616_v3 }
  0xf0   :  { %818 = vmatpush.msra.mxu1 %v613_v15 }
  0xf2   :  { %819 = vmatpush.msra.mxu1 %v610_v17 }
  0xf3   :  { %v882_v18 = vpop.eup %881 }
  0xf4   :  { %v458_v20 = vmul.f32 0.6931472, %v882_v18  ;;  %820 = vmatpush.msra.mxu1 %v607_v21 }
  0xf6   :  { %v468_v23 = vmul.f32 %v1062_v50, %v458_v20  ;;  %821 = vmatpush.msra.mxu1 %v604_v24  ;;  %v487_v50 = vadd.f32 0.13793103, %v484_v28 }
  0xf8   :  { %v473_v26 = vmul.f32 1.442695, %v468_v23  ;;  %822 = vmatpush.msra.mxu1 %v601_v27  ;;  %v490_v34 = vmul.f32 %v843_v22, %v487_v50 }
  0xfa   :  { %883 = vpow2.f32 %v473_v26  ;;  %823 = vmatpush.msra.mxu1 %v598_v30 }
  0xfc   :  { %824 = vmatpush.msra.mxu1 %v595_v31 }
 0x100   :  { %v884_v33 = vpop.eup %883 }
 0x101   :  { %v493_v35 = vmul.f32 %v884_v33, %v449_v32 }
 0x103   :  { %v496_v36 = vadd.f32 %v493_v35, %v490_v34 }
 0x105   :  { %705 = vmatmul.f32.vlgmr.msra.gmra.mxu3 %v496_v36  ;;  %765 = vmatmul.f32.vlgmr.msrb.gmra.mxu2 %v496_v36 }
 0x106   :  { %825 = vmatmul.f32.vlgmr.msra.gmra.mxu1 %v496_v36 }
 0x10d   :  { %785 = vmatmul.f32.vlgmr.msrb.gmra.mxu3 %v1079_v37  ;;  %v645_v37 = vperm.slane %v641_v49, 2 }
 0x159   :  { %v666_v7 = vpop.f32.mrf.mxu1  ;;  %v726_v41 = vpop.f32.mrf.mxu0 }
 0x15a   :  { %v667_v43 = vadd.f32 %v666_v7, %v643_v39  ;;  %v727_v44 = vadd.f32 %v726_v41, %v644_v40 }
 0x164   :  { %v746_v42 = vpop.f32.mrf.mxu1 }
 0x165   :  { %v747_v46 = vadd.f32 %v746_v42, %v727_v44  ;;  %v806_v45 = vpop.f32.mrf.mxu0 }
 0x16a   :  { %v686_v38 = vpop.f32.mrf.mxu2 }
 0x16b   :  { %v687_v47 = vadd.f32 %v686_v38, %v667_v43 }
 0x183   :  { %v826_v57 = vpop.f32.mrf.mxu1 }
 0x188   :  { %v706_v48 = vpop.f32.mrf.mxu3  ;;  %v766_v51 = vpop.f32.mrf.mxu2 }
 0x189   :  { %v707_v52 = vadd.f32 %v706_v48, %v687_v47  ;;  %v767_v53 = vadd.f32 %v766_v51, %v747_v46 }
 0x18b   :  { %829 = vst [vmem:[%s1103_s4] sm:$0xff] %v707_v52 }
 0x18c   :  { %830 = vst [vmem:[%s1103_s4 + $0x8] sm:$0xff] %v767_v53 }
 0x190   :  { %v786_v54 = vpop.f32.mrf.mxu3 }
 0x191   :  { %v787_v55 = vadd.f32 %v786_v54, %v645_v37 }
 0x193   :  { %v807_v56 = vadd.f32 %v806_v45, %v787_v55 }
 0x195   :  { %v827_v59 = vadd.f32 %v826_v57, %v807_v56 }
 0x197   :  { %831 = vst [vmem:[%s1103_s4 + $0x10] sm:$0xff] %v827_v59 }
 0x198   :  { %836 = vsyncpa [#allocation3], 1 }
 0x199   :  { %837 = vsyncpa [#allocation5], 1 }

// kernel: _lambda_.7
= control target key start
LH: loop header
LB: loop body
LE: loop exit
PB: predicated region body
PF: predicated region fallthrough
CT: control target
= control target key end

     0   :  { %s444_s12 = smov 0   ;;  %s446_s13 = smov 0   ;;  %s483_s0 = inlined_call_operand.vmem [shape: f32[2,8,128], index: 0, kind: input, shape index: {}]   ;;  %s484_s1 = inlined_call_operand.vmem [shape: f32[2,8,128], index: 1, kind: input, shape index: {}]   ;;  %s485_s2 = inlined_call_operand.vmem [shape: f32[2,8,128], index: 2, kind: input, shape index: {}]   ;;  %s486_s3 = inlined_call_operand.vmem [shape: f32[2,8,128], index: 3, kind: output, shape index: {}]  }
   0x1   :  { %s448_s14 = smov 0  }
   0x2 LB: > { %s25_s15 = sadd.s32 1, %s418_s13  ;;  %p369_p0 = scmp.ge.s32.totalorder %s422_s14, 1  ;;  %s422_s14 = sphi %s448_s14, %s13_s14   ;;  %s418_s13 = sphi %s446_s13, %s488_s13   ;;  %s414_s12 = sphi %s444_s12, %s487_s12  }
   0x3   : > { %p27_p1 = scmp.ge.s32.totalorder %s25_s15, 2  ;;  %p178_p2 = scmp.lt.s32.totalorder %s422_s14, 3 }
   0x5   : > { %s490_s15 = smov (%p27_p1, %s25_s15), 0  ;;  %p179_p3 = pnand %p369_p0, %p178_p2 }
   0x6   : > { %p217_p4 = scmp.lt.s32.totalorder (!%p179_p3), %s414_s12, 1 }
   0x7   : > { %182 = sbr.rel (%p179_p3) target bundleno = 37 (0x25), region = 32 }
   0xc   : > { %s492_s12 = smov (!%p217_p4, %s414_s12), 1 }
   0xd   : > { %s370_s16 = sshll.u32 %s492_s12, 3 }
   0xe   : > { %s220_s19 = scalar_lea.vmem %s483_s0, %s370_s16  ;;  %s227_s22 = scalar_lea.vmem %s484_s1, %s370_s16 }
   0xf   : > { %s234_s25 = scalar_lea.vmem %s485_s2, %s370_s16  ;;  %v242_v0 = vld [vmem:[%s220_s19] sm:$0xff]  ;;  %s241_s28 = scalar_lea.vmem %s486_s3, %s370_s16 }
  0x10   : > { %v243_v1 = vld [vmem:[%s227_s22] sm:$0xff]  ;;  %v244_v2 = vperm.slane %v242_v0, 0  ;;  %v246_v3 = vperm.slane %v242_v0, 1  ;;  %v249_v5 = vperm.slane %v242_v0, 2  ;;  %v251_v6 = vperm.slane %v242_v0, 3 }
  0x11   : > { %v248_v4 = vld [vmem:[%s234_s25] sm:$0xff]  ;;  %v257_v14 = vperm.slane %v242_v0, 4  ;;  %v259_v16 = vperm.slane %v242_v0, 5 }
  0x12   : > { %v245_v7 = vsub.f32 %v243_v1, %v244_v2  ;;  %v250_v8 = vsub.f32 %v248_v4, %v249_v5 }
  0x14   : > { %v247_v9 = vmul.f32 %v246_v3, %v245_v7  ;;  %v252_v10 = vmul.f32 %v251_v6, %v250_v8 }
  0x16   : > { %v253_v11 = vmul.f32 %v252_v10, %v247_v9  ;;  %v255_v12 = vmul.f32 0.33, %v247_v9 }
  0x18   : > { %v254_v13 = vadd.f32 %v253_v11, %v252_v10 }
  0x1a   : > { %v256_v15 = vadd.f32 %v255_v12, %v254_v13 }
  0x1c   : > { %v258_v17 = vsub.f32 %v256_v15, %v257_v14 }
  0x1e   : > { %v260_v18 = vmul.f32 %v259_v16, %v258_v17 }
  0x20   : > { %v261_v19 = vmax.f32 %v260_v18, 0.0 }
  0x22   : > { %v262_v20 = vmin.f32 %v261_v19, 1.0 }
  0x24   : > { %263 = vst [vmem:[%s241_s28] sm:$0xff] %v262_v20 }
  0x25 PF: > { %s13_s14 = sadd.s32 1, %s422_s14   ;;  %s487_s12 = smov %s418_s13 }
  0x26   : > { %p10_p5 = scmp.ge.s32.totalorder %s13_s14, 4   ;;  %s488_s13 = smov %s490_s15 }
  0x28   :  { %12 = sbr.rel (!%p10_p5) target bundleno = 2 (0x2), region = 68 }

// kernel: _lambda_.6
= control target key start
LH: loop header
LB: loop body
LE: loop exit
PB: predicated region body
PF: predicated region fallthrough
CT: control target
= control target key end

     0   :  { %s4174_s0 = inlined_call_operand.vmem [shape: f32[2,3,16,16], index: 0, kind: input, shape index: {}, may-alias: {0,1,2}]   ;;  %s4175_s1 = inlined_call_operand.vmem [shape: f32[2,3,16,16], index: 1, kind: input, shape index: {}, may-alias: {0,1,2}]   ;;  %s4176_s2 = inlined_call_operand.vmem [shape: f32[2,3,16,16], index: 2, kind: input, shape index: {}, may-alias: {0,1,2}]   ;;  %s4177_s3 = inlined_call_operand.vmem [shape: f32[2,3,16,16], index: 3, kind: input, shape index: {}, may-alias: {3,4,5}]   ;;  %s4178_s4 = inlined_call_operand.vmem [shape: f32[2,3,16,16], index: 4, kind: input, shape index: {}, may-alias: {3,4,5}]   ;;  %s4179_s5 = inlined_call_operand.vmem [shape: f32[2,3,16,16], index: 5, kind: input, shape index: {}, may-alias: {3,4,5}]   ;;  %s4180_s6 = inlined_call_operand.vmem [shape: f32[2,3,16,16], index: 6, kind: input, shape index: {}, may-alias: {6,7,8}]   ;;  %s4181_s7 = inlined_call_operand.vmem [shape: f32[2,3,16,16], index: 7, kind: input, shape index: {}, may-alias: {6,7,8}]   ;;  %s4182_s8 = inlined_call_operand.vmem [shape: f32[2,3,16,16], index: 8, kind: input, shape index: {}, may-alias: {6,7,8}]   ;;  %s4183_s9 = inlined_call_operand.vmem [shape: f32[2,3,16,16], index: 9, kind: input, shape index: {}, may-alias: {9,10,11}]   ;;  %s4184_s10 = inlined_call_operand.vmem [shape: f32[2,3,16,16], index: 10, kind: input, shape index: {}, may-alias: {9,10,11}]   ;;  %s4185_s11 = inlined_call_operand.vmem [shape: f32[2,3,16,16], index: 11, kind: input, shape index: {}, may-alias: {9,10,11}]   ;;  %s4186_s12 = inlined_call_operand.vmem [shape: f32[16,16], index: 12, kind: input, shape index: {}]   ;;  %s4187_s13 = inlined_call_operand.vmem [shape: f32[16,16], index: 13, kind: input, shape index: {}]   ;;  %s4188_s14 = inlined_call_operand.vmem [shape: f32[2,16,16], index: 14, kind: output, shape index: {0}]   ;;  %s4189_s15 = inlined_call_operand.vmem [shape: f32[2,16,16], index: 15, kind: output, shape index: {1}]  }
   0x1   :  { %4201 = sst [smem:[#allocation29_spill]] %s4174_s0 }
   0x2   :  { %4202 = sst [smem:[#allocation30_spill]] %s4175_s1 }
   0x3   :  { %4203 = sst [smem:[#allocation31_spill]] %s4186_s12 }
   0x4   :  { %4204 = sst [smem:[#allocation32_spill]] %s4187_s13 }
   0x5   :  { %4205 = sst [smem:[#allocation33_spill]] %s4188_s14 }
   0x6   :  { %4206 = sst [smem:[#allocation34_spill]] %s4189_s15 }
   0x7   :  { %s3423_s18 = smov 0   ;;  %s3425_s19 = smov 0  }
   0x8   :  { %s3427_s20 = smov 0   ;;  %s3429_s21 = smov 0  }
   0x9   :  { %s3431_s22 = smov 0   ;;  %s3433_s23 = smov 0  }
   0xa   :  { %s3435_s24 = smov 0   ;;  %s3437_s25 = smov 0  }
   0xb   :  { %s3439_s26 = smov 0   ;;  %s3441_s27 = smov 0  }
   0xc   :  { %s3443_s28 = smov 0  }
   0xd LB: > { %4207 = sst [smem:[#allocation18_spill]] %s3300_s18  ;;  %s35_s29 = sadd.s32 1, %s3332_s26  ;;  %s3340_s28 = sphi %s3443_s28, %s26_s28   ;;  %s3336_s27 = sphi %s3441_s27, %s4253_s27   ;;  %s3332_s26 = sphi %s3439_s26, %s4252_s26   ;;  %s3328_s25 = sphi %s3437_s25, %s4251_s25   ;;  %s3324_s24 = sphi %s3435_s24, %s4250_s24   ;;  %s3320_s23 = sphi %s3433_s23, %s4249_s23   ;;  %s3316_s22 = sphi %s3431_s22, %s4248_s22   ;;  %s3312_s21 = sphi %s3429_s21, %s4247_s21   ;;  %s3308_s20 = sphi %s3427_s20, %s4246_s20   ;;  %s3304_s19 = sphi %s3425_s19, %s4245_s19   ;;  %s3300_s18 = sphi %s3423_s18, %s4244_s18  }
   0xe   : > { %4208 = sst [smem:[#allocation19_spill]] %s3308_s20  ;;  %s38_s30 = sadd.s32 1, %s3336_s27 }
   0xf   : > { %4209 = sst [smem:[#allocation20_spill]] %s3316_s22  ;;  %p36_p0 = scmp.ge.s32.totalorder %s35_s29, 2 }
  0x10   : > { %4210 = sst [smem:[#allocation21_spill]] %s3324_s24  ;;  %s47_s16 = sadd.s32 1, %s3320_s23 }
  0x11   : > { %4211 = sst [smem:[#allocation22_spill]] %s3328_s25  ;;  %p54_p1 = scmp.ne.s32.totalorder %s3320_s23, %s3316_s22 }
  0x12   : > { %4212 = sst [smem:[#allocation23_spill]] %s3340_s28  ;;  %p55_p2 = scmp.eq.s32.totalorder %s3340_s28, 0 }
  0x13   : > { %s4255_s29 = smov (%p36_p0, %s35_s29), 0  ;;  %s4257_s30 = smov (!%p36_p0, %s38_s30), %s3336_s27 }
  0x14   : > { %4213 = sst [smem:[#allocation24_spill]] %s4255_s29  ;;  %s43_s17 = ssub.s32 %s3332_s26, %s4255_s29 }
  0x15   : > { %p3491_p3 = por %p55_p2, %p54_p1  ;;  %p40_p4 = scmp.ge.s32.totalorder %s4257_s30, 2 }
  0x16   : > { %s81_s13 = sadd.s32 1, %s3312_s21  ;;  %p88_p6 = scmp.ne.s32.totalorder %s3312_s21, %s3308_s20 }
  0x17   : > { %s4259_s30 = smov (%p40_p4, %s4257_s30), 0  ;;  %p122_p9 = scmp.ne.s32.totalorder %s3304_s19, %s3300_s18 }
  0x18   : > { %4215 = sst [smem:[#allocation25_spill]] %s4259_s30  ;;  %s42_s14 = ssub.s32 %s3336_s27, %s4259_s30 }
  0x19   : > { %s44_s25 = sor.u32 %s43_s17, %s42_s14  ;;  %p3507_p7 = por %p88_p6, %p55_p2 }
  0x1a   : > { %p45_p5 = scmp.eq.s32.totalorder %s44_s25, 0  ;;  %p79_p8 = scmp.eq.s32.totalorder %s42_s14, 0 }
  0x1b   : > { %p3518_p10 = por %p122_p9, %p55_p2  ;;  %s115_s17 = sadd.s32 1, %s3304_s19 }
  0x1c   : > { %s3503_s24 = scalar_select %p45_p5, %s3320_s23, %s47_s16  }
  0x1d   : > { %s3512_s22 = scalar_select %p79_p8, %s3312_s21, %s81_s13  }
  0x1e   : > { %4216 = sst [smem:[#allocation26_spill]] %s3503_s24  ;;  %p3065_p11 = scmp.ge.s32.totalorder %s3340_s28, 4 }
  0x1f   : > { %4218 = sst [smem:[#allocation27_spill]] %s3512_s22 }
  0x20   : > { %s3524_s30 = scalar_select %p79_p8, %s3304_s19, %s115_s17  }
  0x21   : > { %540 = sbr.rel (%p3065_p11) target bundleno = 159 (0x9f), region = 24 }
  0x22   : > { %4220 = sst [smem:[#allocation28_spill]] %s3524_s30 }
  0x26   : > { %543 = sbr.rel (!%p3491_p3) target bundleno = 50 (0x32), region = 28  ;;  %s545_s13 = sand.u32 (%p3491_p3), 1, %s3320_s23  }
  0x27   : > { %s3113_s14 = smul.u32 (%p3491_p3), 6, %s3336_s27  ;;  %s4221_s0 = sld [smem:[#allocation29_spill]] (%p3491_p3) }
  0x28   : > { %s3112_s25 = smul.u32 (%p3491_p3), 24, %s545_s13 }
  0x29   : > { %s549_s16 = sadd.s32 (%p3491_p3), %s3332_s26, %s3113_s14 }
  0x2a   : > { %s3066_s24 = sshll.u32 (%p3491_p3), %s549_s16, 3  ;;  %s547_s17 = scalar_lea.vmem (%p3491_p3), [#allocation6], %s3112_s25 }
  0x2d   : > { %s551_s20 = scalar_lea.vmem %s4221_s0, %s3066_s24 }
  0x2e   : > { %v584_v0 = vld [vmem:[%s551_s20] sm:$0xff]  ;;  %v586_v1 = vld [vmem:[%s551_s20 + $0x10] sm:$0xff] }
  0x2f   : > { %v588_v2 = vld [vmem:[%s551_s20 + $0x20] sm:$0xff]  ;;  %585 = vst [vmem:[%s547_s17] sm:$0xff] %v584_v0 }
  0x30   : > { %587 = vst [vmem:[%s547_s17 + $0x8] sm:$0xff] %v586_v1 }
  0x31   : > { %589 = vst [vmem:[%s547_s17 + $0x10] sm:$0xff] %v588_v2 }
  0x32 PF: > { %595 = sbr.rel (!%p3507_p7) target bundleno = 62 (0x3e), region = 66  ;;  %s597_s13 = sand.u32 (%p3507_p7), 1, %s3312_s21  }
  0x33   : > { %s3114_s14 = smul.u32 (%p3507_p7), 24, %s597_s13  ;;  %s4222_s1 = sld [smem:[#allocation30_spill]] (%p3507_p7) }
  0x34   : > { %s3282_s16 = smul.u32 (%p3507_p7), 48, %s3336_s27 }
  0x35   : > { %s599_s20 = scalar_lea.vmem (%p3507_p7), [#allocation7], %s3114_s14 }
  0x39   : > { %s606_s18 = scalar_lea.vmem %s4222_s1, %s3282_s16 }
  0x3a   : > { %v639_v3 = vld [vmem:[%s606_s18] sm:$0xff]  ;;  %v641_v4 = vld [vmem:[%s606_s18 + $0x10] sm:$0xff] }
  0x3b   : > { %v643_v5 = vld [vmem:[%s606_s18 + $0x20] sm:$0xff]  ;;  %640 = vst [vmem:[%s599_s20] sm:$0xff] %v639_v3 }
  0x3c   : > { %642 = vst [vmem:[%s599_s20 + $0x8] sm:$0xff] %v641_v4 }
  0x3d   : > { %644 = vst [vmem:[%s599_s20 + $0x10] sm:$0xff] %v643_v5 }
  0x3e PF: > { %650 = sbr.rel (!%p3518_p10) target bundleno = 72 (0x48), region = 104  ;;  %s652_s22 = sand.u32 (%p3518_p10), 1, %s3304_s19  }
  0x3f   : > { %s3116_s24 = smul.u32 (%p3518_p10), 24, %s652_s22 }
  0x40   : > { %s3294_s25 = smul.u32 (%p3518_p10), 48, %s3336_s27 }
  0x41   : > { %s654_s14 = scalar_lea.vmem (%p3518_p10), [#allocation8], %s3116_s24 }
  0x42   : > { %s3284_s17 = sadd.s32 (%p3518_p10), 8, %s3294_s25 }
  0x43   : > { %s661_s30 = scalar_lea.vmem %s4176_s2, %s3284_s17 }
  0x44   : > { %v694_v6 = vld [vmem:[%s661_s30] sm:$0xff]  ;;  %v696_v7 = vld [vmem:[%s661_s30 + $0x10] sm:$0xff] }
  0x45   : > { %v698_v8 = vld [vmem:[%s661_s30 + $0x20] sm:$0xff]  ;;  %695 = vst [vmem:[%s654_s14] sm:$0xff] %v694_v6 }
  0x46   : > { %697 = vst [vmem:[%s654_s14 + $0x8] sm:$0xff] %v696_v7 }
  0x47   : > { %699 = vst [vmem:[%s654_s14 + $0x10] sm:$0xff] %v698_v8 }
  0x48 PF: > { %705 = sbr.rel (!%p3491_p3) target bundleno = 82 (0x52), region = 142  ;;  %s707_s16 = sand.u32 (%p3491_p3), 1, %s3320_s23  }
  0x49   : > { %s3119_s18 = smul.u32 (%p3491_p3), 6, %s3336_s27 }
  0x4a   : > { %s3118_s20 = smul.u32 (%p3491_p3), 24, %s707_s16 }
  0x4b   : > { %s711_s22 = sadd.s32 (%p3491_p3), %s3332_s26, %s3119_s18 }
  0x4c   : > { %s3070_s25 = sshll.u32 (%p3491_p3), %s711_s22, 3  ;;  %s709_s24 = scalar_lea.vmem (%p3491_p3), [#allocation9], %s3118_s20 }
  0x4d   : > { %s713_s28 = scalar_lea.vmem %s4177_s3, %s3070_s25 }
  0x4e   : > { %v746_v9 = vld [vmem:[%s713_s28] sm:$0xff]  ;;  %v748_v10 = vld [vmem:[%s713_s28 + $0x10] sm:$0xff] }
  0x4f   : > { %v750_v11 = vld [vmem:[%s713_s28 + $0x20] sm:$0xff]  ;;  %747 = vst [vmem:[%s709_s24] sm:$0xff] %v746_v9 }
  0x50   : > { %749 = vst [vmem:[%s709_s24 + $0x8] sm:$0xff] %v748_v10 }
  0x51   : > { %751 = vst [vmem:[%s709_s24 + $0x10] sm:$0xff] %v750_v11 }
  0x52 PF: > { %757 = sbr.rel (!%p3507_p7) target bundleno = 91 (0x5b), region = 180  ;;  %s759_s30 = sand.u32 (%p3507_p7), 1, %s3312_s21  }
  0x53   : > { %s3120_s14 = smul.u32 (%p3507_p7), 24, %s759_s30 }
  0x54   : > { %s3285_s16 = smul.u32 (%p3507_p7), 48, %s3336_s27 }
  0x55   : > { %s761_s20 = scalar_lea.vmem (%p3507_p7), [#allocation10], %s3120_s14 }
  0x56   : > { %s768_s25 = scalar_lea.vmem (%p3507_p7), %s4178_s4, %s3285_s16 }
  0x57   : > { %v801_v12 = vld [vmem:[%s768_s25] sm:$0xff]  ;;  %v803_v13 = vld [vmem:[%s768_s25 + $0x10] sm:$0xff] }
  0x58   : > { %v805_v14 = vld [vmem:[%s768_s25 + $0x20] sm:$0xff]  ;;  %802 = vst [vmem:[%s761_s20] sm:$0xff] %v801_v12 }
  0x59   : > { %804 = vst [vmem:[%s761_s20 + $0x8] sm:$0xff] %v803_v13 }
  0x5a   : > { %806 = vst [vmem:[%s761_s20 + $0x10] sm:$0xff] %v805_v14 }
  0x5b PF: > { %812 = sbr.rel (!%p3518_p10) target bundleno = 101 (0x65), region = 218  ;;  %s814_s17 = sand.u32 (%p3518_p10), 1, %s3304_s19  }
  0x5c   : > { %s3122_s13 = smul.u32 (%p3518_p10), 24, %s814_s17 }
  0x5d   : > { %s3295_s28 = smul.u32 (%p3518_p10), 48, %s3336_s27 }
  0x5e   : > { %s816_s14 = scalar_lea.vmem (%p3518_p10), [#allocation11], %s3122_s13 }
  0x5f   : > { %s3287_s24 = sadd.s32 (%p3518_p10), 8, %s3295_s28 }
  0x60   : > { %s823_s16 = scalar_lea.vmem %s4179_s5, %s3287_s24 }
  0x61   : > { %v856_v15 = vld [vmem:[%s823_s16] sm:$0xff]  ;;  %v858_v16 = vld [vmem:[%s823_s16 + $0x10] sm:$0xff] }
  0x62   : > { %v860_v17 = vld [vmem:[%s823_s16 + $0x20] sm:$0xff]  ;;  %857 = vst [vmem:[%s816_s14] sm:$0xff] %v856_v15 }
  0x63   : > { %859 = vst [vmem:[%s816_s14 + $0x8] sm:$0xff] %v858_v16 }
  0x64   : > { %861 = vst [vmem:[%s816_s14 + $0x10] sm:$0xff] %v860_v17 }
  0x65 PF: > { %867 = sbr.rel (!%p3491_p3) target bundleno = 111 (0x6f), region = 256  ;;  %s869_s22 = sand.u32 (%p3491_p3), 1, %s3320_s23  }
  0x66   : > { %s3125_s25 = smul.u32 (%p3491_p3), 6, %s3336_s27 }
  0x67   : > { %s3124_s20 = smul.u32 (%p3491_p3), 24, %s869_s22 }
  0x68   : > { %s873_s17 = sadd.s32 (%p3491_p3), %s3332_s26, %s3125_s25 }
  0x69   : > { %s3074_s28 = sshll.u32 (%p3491_p3), %s873_s17, 3  ;;  %s871_s13 = scalar_lea.vmem (%p3491_p3), [#allocation12], %s3124_s20 }
  0x6a   : > { %s875_s18 = scalar_lea.vmem %s4180_s6, %s3074_s28 }
  0x6b   : > { %v908_v18 = vld [vmem:[%s875_s18] sm:$0xff]  ;;  %v910_v19 = vld [vmem:[%s875_s18 + $0x10] sm:$0xff] }
  0x6c   : > { %v912_v20 = vld [vmem:[%s875_s18 + $0x20] sm:$0xff]  ;;  %909 = vst [vmem:[%s871_s13] sm:$0xff] %v908_v18 }
  0x6d   : > { %911 = vst [vmem:[%s871_s13 + $0x8] sm:$0xff] %v910_v19 }
  0x6e   : > { %913 = vst [vmem:[%s871_s13 + $0x10] sm:$0xff] %v912_v20 }
  0x6f PF: > { %919 = sbr.rel (!%p3507_p7) target bundleno = 120 (0x78), region = 294  ;;  %s921_s16 = sand.u32 (%p3507_p7), 1, %s3312_s21  }
  0x70   : > { %s3126_s14 = smul.u32 (%p3507_p7), 24, %s921_s16 }
  0x71   : > { %s3288_s22 = smul.u32 (%p3507_p7), 48, %s3336_s27 }
  0x72   : > { %s923_s20 = scalar_lea.vmem (%p3507_p7), [#allocation13], %s3126_s14 }
  0x73   : > { %s930_s28 = scalar_lea.vmem (%p3507_p7), %s4181_s7, %s3288_s22 }
  0x74   : > { %v963_v21 = vld [vmem:[%s930_s28] sm:$0xff]  ;;  %v965_v22 = vld [vmem:[%s930_s28 + $0x10] sm:$0xff] }
  0x75   : > { %v967_v23 = vld [vmem:[%s930_s28 + $0x20] sm:$0xff]  ;;  %964 = vst [vmem:[%s923_s20] sm:$0xff] %v963_v21 }
  0x76   : > { %966 = vst [vmem:[%s923_s20 + $0x8] sm:$0xff] %v965_v22 }
  0x77   : > { %968 = vst [vmem:[%s923_s20 + $0x10] sm:$0xff] %v967_v23 }
  0x78 PF: > { %974 = sbr.rel (!%p3518_p10) target bundleno = 130 (0x82), region = 332  ;;  %s976_s24 = sand.u32 (%p3518_p10), 1, %s3304_s19  }
  0x79   : > { %s3128_s30 = smul.u32 (%p3518_p10), 24, %s976_s24 }
  0x7a   : > { %s3296_s18 = smul.u32 (%p3518_p10), 48, %s3336_s27 }
  0x7b   : > { %s978_s14 = scalar_lea.vmem (%p3518_p10), [#allocation14], %s3128_s30 }
  0x7c   : > { %s3290_s13 = sadd.s32 (%p3518_p10), 8, %s3296_s18 }
  0x7d   : > { %s985_s22 = scalar_lea.vmem %s4182_s8, %s3290_s13 }
  0x7e   : > { %v1018_v24 = vld [vmem:[%s985_s22] sm:$0xff]  ;;  %v1020_v25 = vld [vmem:[%s985_s22 + $0x10] sm:$0xff] }
  0x7f   : > { %v1022_v26 = vld [vmem:[%s985_s22 + $0x20] sm:$0xff]  ;;  %1019 = vst [vmem:[%s978_s14] sm:$0xff] %v1018_v24 }
  0x80   : > { %1021 = vst [vmem:[%s978_s14 + $0x8] sm:$0xff] %v1020_v25 }
  0x81   : > { %1023 = vst [vmem:[%s978_s14 + $0x10] sm:$0xff] %v1022_v26 }
  0x82 PF: > { %1029 = sbr.rel (!%p3491_p3) target bundleno = 140 (0x8c), region = 370  ;;  %s1031_s17 = sand.u32 (%p3491_p3), 1, %s3320_s23  }
  0x83   : > { %s3131_s28 = smul.u32 (%p3491_p3), 6, %s3336_s27 }
  0x84   : > { %s3130_s20 = smul.u32 (%p3491_p3), 24, %s1031_s17 }
  0x85   : > { %s1035_s24 = sadd.s32 (%p3491_p3), %s3332_s26, %s3131_s28 }
  0x86   : > { %s3078_s18 = sshll.u32 (%p3491_p3), %s1035_s24, 3  ;;  %s1033_s30 = scalar_lea.vmem (%p3491_p3), [#allocation15], %s3130_s20 }
  0x87   : > { %s1037_s25 = scalar_lea.vmem %s4183_s9, %s3078_s18 }
  0x88   : > { %v1070_v27 = vld [vmem:[%s1037_s25] sm:$0xff]  ;;  %v1072_v28 = vld [vmem:[%s1037_s25 + $0x10] sm:$0xff] }
  0x89   : > { %v1074_v29 = vld [vmem:[%s1037_s25 + $0x20] sm:$0xff]  ;;  %1071 = vst [vmem:[%s1033_s30] sm:$0xff] %v1070_v27 }
  0x8a   : > { %1073 = vst [vmem:[%s1033_s30 + $0x8] sm:$0xff] %v1072_v28 }
  0x8b   : > { %1075 = vst [vmem:[%s1033_s30 + $0x10] sm:$0xff] %v1074_v29 }
  0x8c PF: > { %1081 = sbr.rel (!%p3507_p7) target bundleno = 149 (0x95), region = 408  ;;  %s1083_s15 = sand.u32 (%p3507_p7), 1, %s3312_s21  }
  0x8d   : > { %s3132_s22 = smul.u32 (%p3507_p7), 24, %s1083_s15 }
  0x8e   : > { %s3291_s14 = smul.u32 (%p3507_p7), 48, %s3336_s27 }
  0x8f   : > { %s1085_s20 = scalar_lea.vmem (%p3507_p7), [#allocation16], %s3132_s22 }
  0x90   : > { %s1092_s24 = scalar_lea.vmem (%p3507_p7), %s4184_s10, %s3291_s14 }
  0x91   : > { %v1125_v30 = vld [vmem:[%s1092_s24] sm:$0xff]  ;;  %v1127_v31 = vld [vmem:[%s1092_s24 + $0x10] sm:$0xff] }
  0x92   : > { %v1129_v32 = vld [vmem:[%s1092_s24 + $0x20] sm:$0xff]  ;;  %1126 = vst [vmem:[%s1085_s20] sm:$0xff] %v1125_v30 }
  0x93   : > { %1128 = vst [vmem:[%s1085_s20 + $0x8] sm:$0xff] %v1127_v31 }
  0x94   : > { %1130 = vst [vmem:[%s1085_s20 + $0x10] sm:$0xff] %v1129_v32 }
  0x95 PF: > { %1136 = sbr.rel (!%p3518_p10) target bundleno = 159 (0x9f), region = 446  ;;  %s1138_s29 = sand.u32 (%p3518_p10), 1, %s3304_s19  }
  0x96   : > { %s3134_s18 = smul.u32 (%p3518_p10), 24, %s1138_s29 }
  0x97   : > { %s3297_s13 = smul.u32 (%p3518_p10), 48, %s3336_s27 }
  0x98   : > { %s1140_s22 = scalar_lea.vmem (%p3518_p10), [#allocation17], %s3134_s18 }
  0x99   : > { %s3293_s16 = sadd.s32 (%p3518_p10), 8, %s3297_s13 }
  0x9a   : > { %s1147_s15 = scalar_lea.vmem %s4185_s11, %s3293_s16 }
  0x9b   : > { %v1180_v33 = vld [vmem:[%s1147_s15] sm:$0xff]  ;;  %v1182_v34 = vld [vmem:[%s1147_s15 + $0x10] sm:$0xff] }
  0x9c   : > { %v1184_v35 = vld [vmem:[%s1147_s15 + $0x20] sm:$0xff]  ;;  %1181 = vst [vmem:[%s1140_s22] sm:$0xff] %v1180_v33 }
  0x9d   : > { %1183 = vst [vmem:[%s1140_s22 + $0x8] sm:$0xff] %v1182_v34 }
  0x9e   : > { %1185 = vst [vmem:[%s1140_s22 + $0x10] sm:$0xff] %v1184_v35 }
  0x9f PF: > { %s4223_s12 = sld [smem:[#allocation23_spill]] }
  0xa5   : > { %p3082_p12 = scmp.ge.s32.totalorder %s4223_s12, 1  ;;  %p1190_p13 = scmp.lt.s32.totalorder %s4223_s12, 5 }
  0xa7   : > { %p1191_p0 = pnand %p3082_p12, %p1190_p13 }
  0xa8   : > { %s4224_s28 = sld [smem:[#allocation31_spill]] (!%p1191_p0) }
  0xa9   : > { %1194 = sbr.rel (%p1191_p0) target bundleno = 495 (0x1ef), region = 484  ;;  %s4226_s24 = sld [smem:[#allocation20_spill]] (!%p1191_p0) }
  0xaa   : > { %s4227_s20 = sld [smem:[#allocation19_spill]] (!%p1191_p0) }
  0xab   : > { %s4228_s13 = sld [smem:[#allocation18_spill]] (!%p1191_p0) }
  0xac   : > { %s4229_s16 = sld [smem:[#allocation21_spill]] (!%p1191_p0) }
  0xad   : > { %s4230_s1 = sld [smem:[#allocation32_spill]] (!%p1191_p0) }
  0xae   : > { %s4225_s29 = smov %s4224_s28  ;;  %v1540_v36 = vld [vmem:[%s4224_s28 + $0x8] sm:$0xff]  ;;  %vm1429_vm0 = vcmask 130048   ;;  %vm1561_vm1 = vcmask 1046528   ;;  %vm1607_vm2 = vcmask 1044480   ;;  %vm1638_vm3 = vcmask 1043456   ;;  %s4236_s0 = sld [smem:[#allocation33_spill]] }
  0xaf   : > { %v1539_v37 = vld [vmem:[%s4225_s29] sm:$0xff]  ;;  %s1197_s30 = sand.u32 1, %s4226_s24   ;;  %1696 = vmatpush.msra.mxu0 %v1540_v36  ;;  %3110 = vmatpush.msra.mxu3 %v1540_v36  ;;  %vm1666_vm4 = vcmask 1041408   ;;  %vm2498_vm5 = vcmask 1045504   ;;  %vm2532_vm6 = vcmask 1040384  }
  0xb0   : > { %s1204_s15 = sand.u32 1, %s4227_s20   ;;  %s3625_s22 = smul.u32 24, %s1197_s30  ;;  %2027 = vmatpush.msra.mxu2 %v1540_v36  ;;  %1857 = vmatpush.msra.mxu1 %v1540_v36 }
  0xb1   : > { %s1211_s12 = sand.u32 1, %s4228_s13   ;;  %s3628_s14 = smul.u32 24, %s1204_s15  ;;  %1697 = vmatpush.msra.mxu0 %v1539_v37  ;;  %3111 = vmatpush.msra.mxu3 %v1539_v37 }
  0xb2   : > { %p1402_p1 = scmp.lt.s32.totalorder %s4229_s16, 1  ;;  %s3631_s17 = smul.u32 24, %s1211_s12  ;;  %2028 = vmatpush.msra.mxu2 %v1539_v37  ;;  %1858 = vmatpush.msra.mxu1 %v1539_v37 }
  0xb3   : > { %p1416_p2 = scmp.gt.s32.totalorder %s4229_s16, 0  ;;  %s1199_s28 = scalar_lea.vmem [#allocation6], %s3625_s22  ;;  %2379 = vmatpush.msrb.mxu0 %v1540_v36  ;;  %2203 = vmatpush.msrb.mxu3 %v1540_v36  ;;  %v1542_v48 = vld [vmem:[%s4230_s1 + $0x8] sm:$0xff] }
  0xb4   : > { %v1433_v38 = vld [vmem:[%s1199_s28] sm:$0xff]  ;;  %v1434_v39 = vld [vmem:[%s1199_s28 + $0x8] sm:$0xff]  ;;  %v1435_v40 = vld [vmem:[%s1199_s28 + $0x10] sm:$0xff]  ;;  %s3638_s20 = scalar_lea.vmem [#allocation9], %s3625_s22  ;;  %s1206_s25 = scalar_lea.vmem [#allocation7], %s3628_s14  ;;  %2663 = vmatpush.msrb.mxu2 %v1542_v48  ;;  %2562 = vmatpush.msrb.mxu1 %v1542_v48 }
  0xb5   : > { %1436 = vst.msk [vmem:[#allocation2 + $0x8] sm:$0xff] %vm1429_vm0, %v1433_v38  ;;  %s1417_s24 = scalar_select %p1416_p2, 1, 0  ;;  %v1458_v41 = vld [vmem:[%s3638_s20] sm:$0xff]  ;;  %2380 = vmatpush.msrb.mxu0 %v1539_v37  ;;  %2204 = vmatpush.msrb.mxu3 %v1539_v37  ;;  %v1423_v43 = vld [vmem:[%s1206_s25 + $0x8] sm:$0xff]  ;;  %v1424_v50 = vld [vmem:[%s1206_s25 + $0x10] sm:$0xff] }
  0xb6   : > { %1437 = vst.msk [vmem:[#allocation2 + $0x20] sm:$0xff] %vm1429_vm0, %v1434_v39  ;;  %s1420_s13 = scalar_select %p1402_p1, 1, 0  ;;  %v1422_v42 = vld [vmem:[%s1206_s25] sm:$0xff] }
  0xb7   : > { %1461 = vst.msk [vmem:[#allocation3 + $0x8] sm:$0xff] %vm1429_vm0, %v1458_v41  ;;  %s1418_s18 = scvt.s32.f32 %s1417_s24  ;;  %s1213_s15 = scalar_lea.vmem [#allocation8], %s3631_s17 }
  0xb8   : > { %1438 = vst.msk [vmem:[#allocation2 + $0x38] sm:$0xff] %vm1429_vm0, %v1435_v40  ;;  %s1421_s30 = scvt.s32.f32 %s1420_s13  ;;  %v1439_v44 = vld [vmem:[%s1213_s15] sm:$0xff]  ;;  %v1440_v45 = vld [vmem:[%s1213_s15 + $0x8] sm:$0xff]  ;;  %s3648_s12 = scalar_lea.vmem [#allocation10], %s3628_s14  ;;  %v1441_v54 = vld [vmem:[%s1213_s15 + $0x10] sm:$0xff] }
  0xb9   : > { %v1449_v46 = vld [vmem:[%s3648_s12] sm:$0xff]  ;;  %v3651_v47 = vstv %s1418_s18  ;;  %s3657_s24 = scalar_lea.vmem [#allocation11], %s3631_s17  ;;  %s3944_s18 = scalar_lea.vmem [#allocation12], %s3625_s22 }
  0xba   : > { %v1464_v49 = vld [vmem:[%s3657_s24] sm:$0xff]  ;;  %v1426_v51 = vmul.f32 %v3651_v47, %v1422_v42  ;;  %v3661_v52 = vstv %s1421_s30  ;;  %v1427_v53 = vmul.f32 %v3651_v47, %v1423_v43  ;;  %v1452_v58 = vmul.f32 %v1449_v46, %v3651_v47  ;;  %s4004_s25 = scalar_lea.vmem [#allocation17], %s3631_s17  ;;  %s4020_s30 = scalar_lea.vmem [#allocation13], %s3628_s14 }
  0xbb   : > { %v1443_v55 = vmul.f32 %v3661_v52, %v1439_v44  ;;  %v1444_v57 = vmul.f32 %v3661_v52, %v1440_v45  ;;  %v1467_v62 = vmul.f32 %v1464_v49, %v3661_v52  ;;  %v1428_v63 = vmul.f32 %v3651_v47, %v1424_v50  ;;  %s4027_s15 = scalar_lea.vmem [#allocation14], %s3631_s17  ;;  %s4263_s16 = smov (!%p1402_p1, %s4229_s16), 1 }
  0xbc   : > { %v1522_v56 = vld [vmem:[#allocation2 + $0x8] sm:$0xff]  ;;  %1430 = vst.msk [vmem:[#allocation2] sm:$0xff] %vm1429_vm0, %v1426_v51  ;;  %v1445_v4 = vmul.f32 %v3661_v52, %v1441_v54 }
  0xbd   : > { %v3668_v59 = vmul.f32 0.12007838, %v1522_v56  ;;  %v3670_v60 = vmul.f32 0.23388074, %v1522_v56  ;;  %v3672_v61 = vld [vmem:[#allocation2 + $0x20] sm:$0xff]  ;;  %1446 = vst.msk [vmem:[#allocation2 + $0x10] sm:$0xff] %vm1429_vm0, %v1443_v55  ;;  %v1870_v2 = vmul.f32 %v1522_v56, %v1522_v56 }
  0xbe   : > { %v3677_v0 = vmul.f32 0.2920817, %v1522_v56  ;;  %v3680_v1 = vmul.f32 0.12007838, %v3672_v61  ;;  %v3682_v3 = vld [vmem:[#allocation3 + $0x8] sm:$0xff]  ;;  %1431 = vst.msk [vmem:[#allocation2 + $0x18] sm:$0xff] %vm1429_vm0, %v1427_v53  ;;  %v3715_v20 = vmul.f32 %v3672_v61, %v3672_v61 }
  0xbf   : > { %v1563_v5 = vrot.slane %v3670_v60, 1  ;;  %v1608_v6 = vrot.slane %v3670_v60, 3  ;;  %v1639_v7 = vrot.slane %v3668_v59, 4  ;;  %v3690_v8 = vmul.f32 0.23388074, %v3672_v61  ;;  %1447 = vst.msk [vmem:[#allocation2 + $0x28] sm:$0xff] %vm1429_vm0, %v1444_v57 }
  0xc0   : > { %v1589_v9 = vrot.slane %v3677_v0, 2  ;;  %v3695_v10 = vmul.f32 0.2920817, %v3672_v61  ;;  %v1642_v11 = vrot.slane %v3680_v1, 4  ;;  %v3699_v12 = vmul.f32 %v3682_v3, %v1522_v56  ;;  %1455 = vst.msk [vmem:[#allocation3] sm:$0xff] %vm1429_vm0, %v1452_v58 }
  0xc1   : > { %v1578_v13 = vadd.f32 %v1563_v5, %v3668_v59  ;;  %v1566_v14 = vrot.slane %v3690_v8, 1  ;;  %v1611_v15 = vrot.slane %v3690_v8, 3  ;;  %v3704_v16 = vmul.f32 0.12007838, %v1870_v2  ;;  %1470 = vst.msk [vmem:[#allocation3 + $0x10] sm:$0xff] %vm1429_vm0, %v1467_v62 }
  0xc2   : > { %v1590_v17 = vrot.slane %v3695_v10, 2  ;;  %v3708_v18 = vmul.f32 0.23388074, %v1870_v2  ;;  %v3710_v19 = vmul.f32 0.2920817, %v1870_v2  ;;  %1432 = vst.msk [vmem:[#allocation2 + $0x30] sm:$0xff] %vm1429_vm0, %v1428_v63 }
  0xc3   : > { %v1596_v21 = vadd.f32 %v1589_v9, %v1578_v13  ;;  %v1580_v22 = vadd.f32 %v1566_v14, %v3680_v1  ;;  %v1971_v23 = vrot.slane %v3704_v16, 4  ;;  %v3720_v24 = vmul.f32 0.12007838, %v3682_v3  ;;  %v3723_v25 = vld [vmem:[#allocation2] sm:$0xff]  ;;  %1448 = vst.msk [vmem:[#allocation2 + $0x40] sm:$0xff] %vm1429_vm0, %v1445_v4 }
  0xc4   : > { %v1897_v26 = vrot.slane %v3708_v18, 1  ;;  %v1923_v27 = vrot.slane %v3710_v19, 2  ;;  %v1941_v28 = vrot.slane %v3708_v18, 3  ;;  %v3729_v29 = vmul.f32 0.23388074, %v3682_v3  ;;  %v3731_v30 = vld [vmem:[#allocation2 + $0x10] sm:$0xff] }
  0xc5   : > { %v1543_v31 = vmul.f32 0.12007838, %v3723_v25  ;;  %v1549_v32 = vmul.f32 0.23388074, %v3723_v25  ;;  %v1598_v33 = vadd.f32 %v1590_v17, %v1580_v22  ;;  %v1869_v34 = vmul.f32 %v3723_v25, %v3723_v25  ;;  %v3740_v37 = vld [vmem:[#allocation2 + $0x18] sm:$0xff] }
  0xc6   : > { %v1601_v35 = vmul.f32 0.23388074, %v3731_v30  ;;  %v1629_v36 = vmul.f32 0.12007838, %v3731_v30  ;;  %v1871_v38 = vmul.f32 %v3731_v30, %v3731_v30  ;;  %v1912_v39 = vadd.f32 %v1897_v26, %v3704_v16  ;;  %v3745_v41 = vld [vmem:[#allocation2 + $0x28] sm:$0xff] }
  0xc7   : > { %v1562_v40 = vrot.slane %v1549_v32, 1  ;;  %v1545_v42 = vmul.f32 0.12007838, %v3740_v37  ;;  %v1551_v43 = vmul.f32 0.23388074, %v3740_v37  ;;  %v3751_v44 = vmul.f32 %v3740_v37, %v3740_v37 }
  0xc8   : > { %v1609_v45 = vrot.slane %v1601_v35, 3  ;;  %v1640_v46 = vrot.slane %v1629_v36, 4  ;;  %v1602_v48 = vmul.f32 0.23388074, %v3745_v41  ;;  %v1630_v49 = vmul.f32 0.12007838, %v3745_v41 }
  0xc9   : > { %v1564_v50 = vsel %vm1561_vm1, %v1562_v40, %v1563_v5  ;;  %v1565_v51 = vrot.slane %v1551_v43, 1  ;;  %v1878_v53 = vmul.f32 0.12007838, %v1869_v34  ;;  %v1884_v54 = vmul.f32 0.23388074, %v1869_v34  ;;  %v3772_v35 = vld [vmem:[#allocation3] sm:$0xff] }
  0xca   : > { %v1577_v55 = vadd.f32 %v1564_v50, %v1543_v31  ;;  %v1610_v56 = vsel %vm1607_vm2, %v1608_v6, %v1609_v45  ;;  %v1641_v57 = vsel %vm1638_vm3, %v1639_v7, %v1640_v46  ;;  %v1612_v58 = vrot.slane %v1602_v48, 3  ;;  %v3790_v8 = vld [vmem:[#allocation3 + $0x10] sm:$0xff] }
  0xcb   : > { %v1624_v62 = vadd.f32 %v1610_v56, %v1596_v21  ;;  %v1567_v63 = vsel %vm1561_vm1, %v1565_v51, %v1566_v14  ;;  %v1643_v0 = vrot.slane %v1630_v49, 4  ;;  %v1896_v2 = vrot.slane %v1884_v54, 1 }
  0xcc   : > { %v1595_v4 = vadd.f32 %v1589_v9, %v1577_v55  ;;  %v1579_v5 = vadd.f32 %v1567_v63, %v1545_v42  ;;  %v1613_v10 = vsel %vm1607_vm2, %v1611_v15, %v1612_v58  ;;  %v1930_v13 = vadd.f32 %v1923_v27, %v1912_v39 }
  0xcd   : > { %v1655_v19 = vadd.f32 %v1641_v57, %v1624_v62  ;;  %v1626_v22 = vadd.f32 %v1613_v10, %v1598_v33  ;;  %v1644_v31 = vsel %vm1638_vm3, %v1642_v11, %v1643_v0  ;;  %v1898_v21 = vsel %vm1561_vm1, %v1896_v2, %v1897_v26  ;;  %v1459_v33 = vld [vmem:[%s3638_s20 + $0x8] sm:$0xff] }
  0xce   : > { %v1623_v14 = vadd.f32 %v1608_v6, %v1595_v4  ;;  %v1597_v32 = vadd.f32 %v1590_v17, %v1579_v5  ;;  %v1911_v9 = vadd.f32 %v1898_v21, %v1878_v53  ;;  %v1935_v34 = vmul.f32 0.23388074, %v1871_v38  ;;  %1462 = vst.msk [vmem:[#allocation3 + $0x20] sm:$0xff] %vm1429_vm0, %v1459_v33  ;;  %v3805_v0 = vld [vmem:[#allocation2 + $0x30] sm:$0xff]  ;;  %v3810_v5 = vld [vmem:[#allocation2 + $0x38] sm:$0xff] }
  0xcf   : > { %v1668_v36 = vrot.slane %v1655_v19, 6  ;;  %v1657_v40 = vadd.f32 %v1644_v31, %v1626_v22  ;;  %v1962_v42 = vmul.f32 0.12007838, %v1871_v38  ;;  %v1708_v39 = vmul.f32 0.12007838, %v3772_v35 }
  0xd0   : > { %v1654_v43 = vadd.f32 %v1639_v7, %v1623_v14  ;;  %v1625_v26 = vadd.f32 %v1611_v15, %v1597_v32  ;;  %v1929_v45 = vadd.f32 %v1923_v27, %v1911_v9  ;;  %v1942_v60 = vrot.slane %v1935_v34, 3 }
  0xd1   : > { %v1671_v6 = vrot.slane %v1657_v40, 6  ;;  %v1972_v17 = vrot.slane %v1962_v42, 4  ;;  %v1714_v46 = vmul.f32 0.23388074, %v3772_v35  ;;  %v1727_v48 = vrot.slane %v3729_v29, 1 }
  0xd2   : > { %v1667_v38 = vrot.slane %v1654_v43, 6  ;;  %v1656_v49 = vadd.f32 %v1642_v11, %v1625_v26  ;;  %v1943_v59 = vsel %vm1607_vm2, %v1941_v28, %v1942_v60  ;;  %v1956_v7 = vadd.f32 %v1941_v28, %v1929_v45 }
  0xd3   : > { %v1957_v15 = vadd.f32 %v1943_v59, %v1930_v13  ;;  %v1973_v27 = vsel %vm1638_vm3, %v1971_v23, %v1972_v17  ;;  %v1726_v50 = vrot.slane %v1714_v46, 1  ;;  %v1742_v51 = vadd.f32 %v1727_v48, %v3720_v24 }
  0xd4   : > { %v1669_v1 = vsel %vm1666_vm4, %v1667_v38, %v1668_v36  ;;  %v1670_v11 = vrot.slane %v1656_v49, 6  ;;  %v1986_v53 = vadd.f32 %v1971_v23, %v1956_v7  ;;  %v1747_v54 = vmul.f32 0.2920817, %v3682_v3 }
  0xd5   : > { %3087 = vmatmul.msk.f32.vlgmr.msra.gmra.mxu0 %vm1429_vm0, %v1669_v1  ;;  %v1987_v18 = vadd.f32 %v1973_v27, %v1957_v15  ;;  %v1728_v28 = vsel %vm1561_vm1, %v1726_v50, %v1727_v48  ;;  %v1765_v55 = vmul.f32 0.23388074, %v3790_v8  ;;  %v1771_v56 = vrot.slane %v3729_v29, 3  ;;  %v3812_v29 = vld [vmem:[#allocation2 + $0x40] sm:$0xff] }
  0xd6   : > { %v1672_v57 = vsel %vm1666_vm4, %v1670_v11, %v1671_v6  ;;  %v1998_v58 = vrot.slane %v1986_v53, 6  ;;  %v1741_v62 = vadd.f32 %v1728_v28, %v1708_v39  ;;  %v1753_v63 = vrot.slane %v1747_v54, 2 }
  0xd7   : > { %3088 = vmatmul.msk.f32.vlgmr.msra.gmra.mxu3 %vm1429_vm0, %v1672_v57  ;;  %v1999_v16 = vrot.slane %v1987_v18, 6  ;;  %v1772_v23 = vrot.slane %v1765_v55, 3  ;;  %v1792_v2 = vmul.f32 0.12007838, %v3790_v8  ;;  %v1801_v4 = vrot.slane %v3720_v24, 4 }
  0xd8   : > { %v1759_v10 = vadd.f32 %v1753_v63, %v1741_v62  ;;  %v1760_v13 = vadd.f32 %v1753_v63, %v1742_v51  ;;  %v1547_v19 = vmul.f32 0.12007838, %v3805_v0  ;;  %v1548_v22 = vmul.f32 0.12007838, %v3810_v5 }
  0xd9   : > { %v2000_v31 = vsel %vm1666_vm4, %v1998_v58, %v1999_v16  ;;  %v1773_v21 = vsel %vm1607_vm2, %v1771_v56, %v1772_v23  ;;  %v1802_v14 = vrot.slane %v1792_v2, 4  ;;  %v1553_v32 = vmul.f32 0.23388074, %v3805_v0 }
  0xda   : > { %3093 = vmatmul.msk.f32.vlgmr.msra.gmra.mxu2 %vm1429_vm0, %v2000_v31  ;;  %v1786_v24 = vadd.f32 %v1771_v56, %v1759_v10  ;;  %v1787_v9 = vadd.f32 %v1773_v21, %v1760_v13  ;;  %v1554_v34 = vmul.f32 0.23388074, %v3810_v5  ;;  %v1585_v36 = vmul.f32 0.2920817, %v3810_v5 }
  0xdb   : > { %v1803_v40 = vsel %vm1638_vm3, %v1801_v4, %v1802_v14  ;;  %v1568_v42 = vrot.slane %v1553_v32, 1  ;;  %v1603_v39 = vmul.f32 0.23388074, %v3812_v29  ;;  %v1631_v33 = vmul.f32 0.12007838, %v3812_v29 }
  0xdc   : > { %v1816_v43 = vadd.f32 %v1801_v4, %v1786_v24  ;;  %v1817_v26 = vadd.f32 %v1803_v40, %v1787_v9  ;;  %v1569_v45 = vrot.slane %v1554_v34, 1  ;;  %v1591_v60 = vrot.slane %v1585_v36, 2 }
  0xdd   : > { %v1614_v6 = vrot.slane %v1554_v34, 3  ;;  %v1615_v17 = vrot.slane %v1603_v39, 3  ;;  %v1645_v46 = vrot.slane %v1548_v22, 4  ;;  %v1646_v48 = vrot.slane %v1631_v33, 4 }
  0xde   : > { %v1828_v38 = vrot.slane %v1816_v43, 6  ;;  %v1829_v49 = vrot.slane %v1817_v26, 6  ;;  %v1570_v59 = vsel %vm1561_vm1, %v1568_v42, %v1569_v45  ;;  %v1582_v7 = vadd.f32 %v1569_v45, %v1548_v22 }
  0xdf   : > { %v1581_v15 = vadd.f32 %v1570_v59, %v1547_v19  ;;  %v1616_v27 = vsel %vm1607_vm2, %v1614_v6, %v1615_v17  ;;  %v1647_v50 = vsel %vm1638_vm3, %v1645_v46, %v1646_v48  ;;  %v2221_v51 = vmul.f32 %v3772_v35, %v3723_v25  ;;  %v1541_v17 = vld [vmem:[%s4230_s1] sm:$0xff] }
  0xe0   : > { %v1830_v1 = vsel %vm1666_vm4, %v1828_v38, %v1829_v49  ;;  %v1600_v11 = vadd.f32 %v1591_v60, %v1582_v7  ;;  %v2223_v53 = vmul.f32 %v3790_v8, %v3731_v30  ;;  %v2231_v54 = vmul.f32 0.12007838, %v3699_v12  ;;  %2664 = vmatpush.msrb.mxu2 %v1541_v17  ;;  %2563 = vmatpush.msrb.mxu1 %v1541_v17 }
  0xe1   : > { %3090 = vmatmul.msk.f32.vlgmr.msra.gmra.mxu1 %vm1429_vm0, %v1830_v1  ;;  %v1599_v18 = vadd.f32 %v1591_v60, %v1581_v15  ;;  %v2230_v28 = vmul.f32 0.12007838, %v2221_v51  ;;  %v2236_v55 = vmul.f32 0.23388074, %v2221_v51  ;;  %v2237_v56 = vmul.f32 0.23388074, %v3699_v12 }
  0xe2   : > { %v1628_v57 = vadd.f32 %v1616_v27, %v1600_v11  ;;  %v2269_v58 = vmul.f32 0.2920817, %v3699_v12  ;;  %v2287_v62 = vmul.f32 0.23388074, %v2223_v53  ;;  %v2314_v25 = vmul.f32 0.12007838, %v2223_v53 }
  0xe3   : > { %v1627_v63 = vadd.f32 %v1614_v6, %v1599_v18  ;;  %v2248_v16 = vrot.slane %v2236_v55, 1  ;;  %v2249_v23 = vrot.slane %v2237_v56, 1  ;;  %v2293_v2 = vrot.slane %v2237_v56, 3  ;;  %v1450_v27 = vld [vmem:[%s3648_s12 + $0x8] sm:$0xff] }
  0xe4   : > { %v1659_v4 = vadd.f32 %v1647_v50, %v1628_v57  ;;  %v2275_v30 = vrot.slane %v2269_v58, 2  ;;  %v2294_v10 = vrot.slane %v2287_v62, 3  ;;  %v2323_v13 = vrot.slane %v2231_v54, 4  ;;  %v1465_v50 = vld [vmem:[%s3657_s24 + $0x8] sm:$0xff] }
  0xe5   : > { %v1658_v19 = vadd.f32 %v1645_v46, %v1627_v63  ;;  %v2250_v22 = vsel %vm1561_vm1, %v2248_v16, %v2249_v23  ;;  %v2264_v31 = vadd.f32 %v2249_v23, %v2231_v54  ;;  %v2324_v21 = vrot.slane %v2314_v25, 4  ;;  %v1460_v46 = vld [vmem:[%s3638_s20 + $0x10] sm:$0xff]  ;;  %v3857_v54 = vld [vmem:[#allocation3 + $0x20] sm:$0xff]  ;;  %s3916_s20 = scalar_lea.vmem [#allocation15], %s3625_s22  ;;  %s3996_s22 = scalar_lea.vmem [#allocation16], %s3628_s14 }
  0xe6   : > { %v1674_v14 = vrot.slane %v1659_v4, 6  ;;  %v2263_v32 = vadd.f32 %v2250_v22, %v2230_v28  ;;  %v2295_v12 = vsel %vm1607_vm2, %v2293_v2, %v2294_v10  ;;  %v1874_v24 = vmul.f32 %v3745_v41, %v3745_v41  ;;  %1463 = vst.msk [vmem:[#allocation3 + $0x38] sm:$0xff] %vm1429_vm0, %v1460_v46  ;;  %s4233_s14 = sld [smem:[#allocation22_spill]] }
  0xe7   : > { %v1673_v9 = vrot.slane %v1658_v19, 6  ;;  %v2282_v34 = vadd.f32 %v2275_v30, %v2264_v31  ;;  %v2325_v36 = vsel %vm1638_vm3, %v2323_v13, %v2324_v21  ;;  %v1880_v40 = vmul.f32 0.12007838, %v3751_v44 }
  0xe8   : > { %v2281_v42 = vadd.f32 %v2275_v30, %v2263_v32  ;;  %v1881_v39 = vmul.f32 0.12007838, %v3715_v20  ;;  %v1886_v33 = vmul.f32 0.23388074, %v3751_v44  ;;  %v1887_v43 = vmul.f32 0.23388074, %v3715_v20 }
  0xe9   : > { %v1675_v26 = vsel %vm1666_vm4, %v1673_v9, %v1674_v14  ;;  %v2309_v45 = vadd.f32 %v2295_v12, %v2282_v34  ;;  %v1918_v60 = vmul.f32 0.2920817, %v3715_v20  ;;  %v1936_v6 = vmul.f32 0.23388074, %v1874_v24 }
  0xea   : > { %3089 = vmatmul.msk.f32.gmra.mxu3 %vm1429_vm0, %v1675_v26  ;;  %v2308_v48 = vadd.f32 %v2293_v2, %v2281_v42  ;;  %v1899_v38 = vrot.slane %v1886_v33, 1  ;;  %v1900_v44 = vrot.slane %v1887_v43, 1  ;;  %v1944_v49 = vrot.slane %v1887_v43, 3 }
  0xeb   : > { %v2339_v59 = vadd.f32 %v2325_v36, %v2309_v45  ;;  %v1924_v7 = vrot.slane %v1918_v60, 2  ;;  %v1945_v15 = vrot.slane %v1936_v6, 3  ;;  %v1963_v20 = vmul.f32 0.12007838, %v1874_v24 }
  0xec   : > { %v2338_v51 = vadd.f32 %v2323_v13, %v2308_v48  ;;  %v1901_v1 = vsel %vm1561_vm1, %v1899_v38, %v1900_v44  ;;  %v1914_v11 = vadd.f32 %v1900_v44, %v1881_v39  ;;  %v1974_v53 = vrot.slane %v1881_v39, 4  ;;  %p1400_p3 = scmp.lt.s32.totalorder %s4233_s14, 1 }
  0xed   : > { %v2351_v18 = vrot.slane %v2339_v59, 6  ;;  %v1913_v28 = vadd.f32 %v1901_v1, %v1880_v40  ;;  %v1946_v55 = vsel %vm1607_vm2, %v1944_v49, %v1945_v15  ;;  %v1975_v56 = vrot.slane %v1963_v20, 4 }
  0xee   : > { %v2350_v57 = vrot.slane %v2338_v51, 6  ;;  %v1932_v58 = vadd.f32 %v1924_v7, %v1914_v11  ;;  %v1453_v62 = vmul.f32 %v1450_v27, %v3651_v47  ;;  %v1468_v25 = vmul.f32 %v1465_v50, %v3661_v52  ;;  %s4261_s14 = smov (!%p1400_p3, %s4233_s14), 1 }
  0xef   : > { %v1931_v63 = vadd.f32 %v1924_v7, %v1913_v28  ;;  %v1976_v16 = vsel %vm1638_vm3, %v1974_v53, %v1975_v56  ;;  %v3864_v23 = vmul.f32 0.12007838, %v3857_v54  ;;  %v3867_v2 = vmul.f32 0.23388074, %v3857_v54  ;;  %s3083_s17 = sshll.u32 %s4261_s14, 1 }
  0xf0   : > { %v2352_v4 = vsel %vm1666_vm4, %v2350_v57, %v2351_v18  ;;  %v1959_v30 = vadd.f32 %v1946_v55, %v1932_v58  ;;  %1456 = vst.msk [vmem:[#allocation3 + $0x18] sm:$0xff] %vm1429_vm0, %v1453_v62  ;;  %v3872_v10 = vmul.f32 0.2920817, %v3857_v54  ;;  %v2045_v13 = vmul.f32 %v3772_v35, %v3772_v35 }
  0xf1   : > { %3099 = vmatmul.msk.f32.vlgmr.msrb.gmra.mxu0 %vm1429_vm0, %v2352_v4  ;;  %v1958_v19 = vadd.f32 %v1944_v49, %v1931_v63  ;;  %1471 = vst.msk [vmem:[#allocation3 + $0x28] sm:$0xff] %vm1429_vm0, %v1468_v25  ;;  %v1730_v22 = vrot.slane %v3867_v2, 1  ;;  %v1774_v31 = vrot.slane %v3867_v2, 3  ;;  %v1804_v21 = vrot.slane %v3864_v23, 4 }
  0xf2   : > { %v1989_v14 = vadd.f32 %v1976_v16, %v1959_v30  ;;  %v1754_v32 = vrot.slane %v3872_v10, 2  ;;  %v2046_v12 = vmul.f32 %v3682_v3, %v3682_v3  ;;  %v2047_v35 = vmul.f32 %v3790_v8, %v3790_v8 }
  0xf3   : > { %v1988_v24 = vadd.f32 %v1974_v53, %v1958_v19  ;;  %v1744_v9 = vadd.f32 %v1730_v22, %v3864_v23  ;;  %v2054_v34 = vmul.f32 0.12007838, %v2045_v13  ;;  %v2060_v36 = vmul.f32 0.23388074, %v2045_v13 }
  0xf4   : > { %v2002_v40 = vrot.slane %v1989_v14, 6  ;;  %v2055_v42 = vmul.f32 0.12007838, %v2046_v12  ;;  %v2061_v39 = vmul.f32 0.23388074, %v2046_v12  ;;  %v2225_v33 = vmul.f32 %v3857_v54, %v3672_v61 }
  0xf5   : > { %v2001_v43 = vrot.slane %v1988_v24, 6  ;;  %v1762_v26 = vadd.f32 %v1754_v32, %v1744_v9  ;;  %v2072_v45 = vrot.slane %v2060_v36, 1  ;;  %v2093_v60 = vmul.f32 0.2920817, %v2046_v12  ;;  %v1506_v12 = vld [vmem:[%s3916_s20] sm:$0xff] }
  0xf6   : > { %v2073_v6 = vrot.slane %v2061_v39, 1  ;;  %v2111_v3 = vmul.f32 0.23388074, %v2047_v35  ;;  %v2117_v17 = vrot.slane %v2061_v39, 3  ;;  %v2138_v46 = vmul.f32 0.12007838, %v2047_v35 }
  0xf7   : > { %v2003_v8 = vsel %vm1666_vm4, %v2001_v43, %v2002_v40  ;;  %v3890_v48 = vld [vmem:[#allocation3 + $0x18] sm:$0xff]  ;;  %v2099_v38 = vrot.slane %v2093_v60, 2  ;;  %v2147_v44 = vrot.slane %v2055_v42, 4  ;;  %v3892_v49 = vmul.f32 0.12007838, %v2225_v33  ;;  %1509 = vst.msk [vmem:[#allocation5 + $0x8] sm:$0xff] %vm1429_vm0, %v1506_v12 }
  0xf8   : > { %3094 = vmatmul.msk.f32.gmra.mxu2 %vm1429_vm0, %v2003_v8  ;;  %v3895_v59 = vld [vmem:[#allocation3 + $0x28] sm:$0xff]  ;;  %v1710_v61 = vmul.f32 0.12007838, %v3890_v48  ;;  %v1716_v7 = vmul.f32 0.23388074, %v3890_v48  ;;  %v2074_v15 = vsel %vm1561_vm1, %v2072_v45, %v2073_v6  ;;  %v2088_v20 = vadd.f32 %v2073_v6, %v2055_v42  ;;  %v3947_v12 = vld [vmem:[#allocation3 + $0x38] sm:$0xff] }
  0xf9   : > { %v1766_v27 = vmul.f32 0.23388074, %v3895_v59  ;;  %v1793_v50 = vmul.f32 0.12007838, %v3895_v59  ;;  %v2087_v51 = vadd.f32 %v2074_v15, %v2054_v34  ;;  %v2118_v1 = vrot.slane %v2111_v3, 3 }
  0xfa   : > { %v1729_v11 = vrot.slane %v1716_v7, 1  ;;  %v2106_v53 = vadd.f32 %v2099_v38, %v2088_v20  ;;  %v2148_v18 = vrot.slane %v2138_v46, 4  ;;  %v2224_v28 = vmul.f32 %v3890_v48, %v3740_v37 }
  0xfb   : > { %v1775_v55 = vrot.slane %v1766_v27, 3  ;;  %v1805_v56 = vrot.slane %v1793_v50, 4  ;;  %v2105_v57 = vadd.f32 %v2099_v38, %v2087_v51  ;;  %v2119_v58 = vsel %vm1607_vm2, %v2117_v17, %v2118_v1  ;;  %v1451_v38 = vld [vmem:[%s3648_s12 + $0x10] sm:$0xff]  ;;  %s1405_s12 = sadd.s32 %s3083_s17, %s4263_s16 }
  0xfc   : > { %v1731_v62 = vsel %vm1561_vm1, %v1729_v11, %v1730_v22  ;;  %v2133_v25 = vadd.f32 %v2119_v58, %v2106_v53  ;;  %v2149_v63 = vsel %vm1638_vm3, %v2147_v44, %v2148_v18  ;;  %v2226_v16 = vmul.f32 %v3895_v59, %v3745_v41  ;;  %v1466_v18 = vld [vmem:[%s3657_s24 + $0x10] sm:$0xff]  ;;  %s3084_s28 = sshll.u32 %s1405_s12, 3 }
  0xfd   : > { %v1743_v4 = vadd.f32 %v1731_v62, %v1710_v61  ;;  %v1776_v30 = vsel %vm1607_vm2, %v1774_v31, %v1775_v55  ;;  %v1806_v37 = vsel %vm1638_vm3, %v1804_v21, %v1805_v56  ;;  %v2132_v10 = vadd.f32 %v2117_v17, %v2105_v57  ;;  %s1407_s13 = scalar_lea.vmem %s4236_s0, %s3084_s28 }
  0xfe   : > { %v1789_v13 = vadd.f32 %v1776_v30, %v1762_v26  ;;  %v2163_v19 = vadd.f32 %v2149_v63, %v2133_v25  ;;  %v2232_v14 = vmul.f32 0.12007838, %v2224_v28  ;;  %v2238_v22 = vmul.f32 0.23388074, %v2224_v28 }
  0xff   : > { %v1761_v35 = vadd.f32 %v1754_v32, %v1743_v4  ;;  %v2162_v41 = vadd.f32 %v2147_v44, %v2132_v10  ;;  %v2239_v24 = vmul.f32 0.23388074, %v2225_v33  ;;  %v2270_v9 = vmul.f32 0.2920817, %v2225_v33  ;;  %v1482_v10 = vld [vmem:[%s3944_s18] sm:$0xff] }
 0x100   : > { %v1819_v34 = vadd.f32 %v1806_v37, %v1789_v13  ;;  %v2175_v36 = vrot.slane %v2163_v19, 6  ;;  %v2251_v40 = vrot.slane %v2238_v22, 1  ;;  %v2288_v42 = vmul.f32 0.23388074, %v2226_v16  ;;  %1485 = vst.msk [vmem:[#allocation4 + $0x8] sm:$0xff] %vm1429_vm0, %v1482_v10 }
 0x101   : > { %v1788_v39 = vadd.f32 %v1774_v31, %v1761_v35  ;;  %v2174_v43 = vrot.slane %v2162_v41, 6  ;;  %v2252_v26 = vrot.slane %v2239_v24, 1  ;;  %v2276_v45 = vrot.slane %v2270_v9, 2 }
 0x102   : > { %v1832_v60 = vrot.slane %v1819_v34, 6  ;;  %v2296_v6 = vrot.slane %v2239_v24, 3  ;;  %v2297_v3 = vrot.slane %v2288_v42, 3  ;;  %v2315_v32 = vmul.f32 0.12007838, %v2226_v16 }
 0x103   : > { %v1818_v33 = vadd.f32 %v1804_v21, %v1788_v39  ;;  %v2176_v17 = vsel %vm1666_vm4, %v2174_v43, %v2175_v36  ;;  %v2253_v46 = vsel %vm1561_vm1, %v2251_v40, %v2252_v26  ;;  %v2266_v8 = vadd.f32 %v2252_v26, %v3892_v49 }
 0x104   : > { %3096 = vmatmul.msk.f32.vlgmr.msrb.gmra.mxu3 %vm1429_vm0, %v2176_v17  ;;  %v2265_v2 = vadd.f32 %v2253_v46, %v2232_v14  ;;  %v2298_v31 = vsel %vm1607_vm2, %v2296_v6, %v2297_v3  ;;  %v2326_v44 = vrot.slane %v3892_v49, 4  ;;  %v2327_v61 = vrot.slane %v2315_v32, 4 }
 0x105   : > { %v1831_v7 = vrot.slane %v1818_v33, 6  ;;  %v2284_v15 = vadd.f32 %v2276_v45, %v2266_v8  ;;  %v1875_v23 = vmul.f32 %v3805_v0, %v3805_v0  ;;  %v1876_v21 = vmul.f32 %v3810_v5, %v3810_v5 }
 0x106   : > { %v2283_v20 = vadd.f32 %v2276_v45, %v2265_v2  ;;  %v2328_v27 = vsel %vm1638_vm3, %v2326_v44, %v2327_v61  ;;  %v1877_v50 = vmul.f32 %v3812_v29, %v3812_v29  ;;  %v1454_v51 = vmul.f32 %v1451_v38, %v3651_v47  ;;  %v1507_v2 = vld [vmem:[%s3916_s20 + $0x8] sm:$0xff] }
 0x107   : > { %v1833_v1 = vsel %vm1666_vm4, %v1831_v7, %v1832_v60  ;;  %v2311_v49 = vadd.f32 %v2298_v31, %v2284_v15  ;;  %v1882_v11 = vmul.f32 0.12007838, %v1875_v23  ;;  %v1883_v53 = vmul.f32 0.12007838, %v1876_v21  ;;  %1510 = vst.msk [vmem:[#allocation5 + $0x20] sm:$0xff] %vm1429_vm0, %v1507_v2 }
 0x108   : > { %3091 = vmatmul.msk.f32.gmra.mxu1 %vm1429_vm0, %v1833_v1  ;;  %v2310_v28 = vadd.f32 %v2296_v6, %v2283_v20  ;;  %v1888_v55 = vmul.f32 0.23388074, %v1875_v23  ;;  %v1889_v56 = vmul.f32 0.23388074, %v1876_v21  ;;  %v1919_v57 = vmul.f32 0.2920817, %v1876_v21 }
 0x109   : > { %v2341_v58 = vadd.f32 %v2328_v27, %v2311_v49  ;;  %v1937_v62 = vmul.f32 0.23388074, %v1877_v50  ;;  %v1964_v25 = vmul.f32 0.12007838, %v1877_v50  ;;  %v1977_v63 = vrot.slane %v1883_v53, 4  ;;  %1457 = vst.msk [vmem:[#allocation3 + $0x30] sm:$0xff] %vm1429_vm0, %v1454_v51 }
 0x10a   : > { %v2340_v16 = vadd.f32 %v2326_v44, %v2310_v28  ;;  %v1902_v4 = vrot.slane %v1888_v55, 1  ;;  %v1903_v30 = vrot.slane %v1889_v56, 1  ;;  %v1925_v37 = vrot.slane %v1919_v57, 2 }
 0x10b   : > { %v2354_v13 = vrot.slane %v2341_v58, 6  ;;  %v1947_v19 = vrot.slane %v1889_v56, 3  ;;  %v1948_v14 = vrot.slane %v1937_v62, 3  ;;  %v1978_v22 = vrot.slane %v1964_v25, 4 }
 0x10c   : > { %v2353_v35 = vrot.slane %v2340_v16, 6  ;;  %v1904_v41 = vsel %vm1561_vm1, %v1902_v4, %v1903_v30  ;;  %v1916_v24 = vadd.f32 %v1903_v30, %v1883_v53  ;;  %v1469_v9 = vmul.f32 %v1466_v18, %v3661_v52 }
 0x10d   : > { %v1915_v34 = vadd.f32 %v1904_v41, %v1882_v11  ;;  %v1949_v36 = vsel %vm1607_vm2, %v1947_v19, %v1948_v14  ;;  %v1979_v40 = vsel %vm1638_vm3, %v1977_v63, %v1978_v22  ;;  %v3955_v42 = vmul.f32 0.12007838, %v3947_v12 }
 0x10e   : > { %v2355_v39 = vsel %vm1666_vm4, %v2353_v35, %v2354_v13  ;;  %v1934_v43 = vadd.f32 %v1925_v37, %v1916_v24  ;;  %1472 = vst.msk [vmem:[#allocation3 + $0x40] sm:$0xff] %vm1429_vm0, %v1469_v9  ;;  %v1719_v26 = vmul.f32 0.23388074, %v3947_v12  ;;  %v1749_v45 = vmul.f32 0.2920817, %v3947_v12 }
 0x10f   : > { %3100 = vmatmul.msk.f32.gmra.mxu0 %vm1429_vm0, %v2355_v39  ;;  %v1933_v60 = vadd.f32 %v1925_v37, %v1915_v34  ;;  %v1807_v6 = vrot.slane %v3955_v42, 4  ;;  %v2048_v3 = vmul.f32 %v3890_v48, %v3890_v48  ;;  %v2049_v32 = vmul.f32 %v3857_v54, %v3857_v54 }
 0x110   : > { %v1961_v33 = vadd.f32 %v1949_v36, %v1934_v43  ;;  %v3967_v17 = vld [vmem:[#allocation3 + $0x30] sm:$0xff]  ;;  %v1733_v46 = vrot.slane %v1719_v26, 1  ;;  %v1755_v8 = vrot.slane %v1749_v45, 2  ;;  %v1777_v38 = vrot.slane %v1719_v26, 3 }
 0x111   : > { %v1960_v31 = vadd.f32 %v1947_v19, %v1933_v60  ;;  %v1712_v44 = vmul.f32 0.12007838, %v3967_v17  ;;  %v1718_v61 = vmul.f32 0.23388074, %v3967_v17  ;;  %v2050_v7 = vmul.f32 %v3895_v59, %v3895_v59  ;;  %v1483_v19 = vld [vmem:[%s3944_s18 + $0x8] sm:$0xff] }
 0x112   : > { %v1991_v48 = vadd.f32 %v1979_v40, %v1961_v33  ;;  %v1746_v54 = vadd.f32 %v1733_v46, %v3955_v42  ;;  %v2056_v15 = vmul.f32 0.12007838, %v2048_v3  ;;  %v2057_v23 = vmul.f32 0.12007838, %v2049_v32  ;;  %1486 = vst.msk [vmem:[#allocation4 + $0x20] sm:$0xff] %vm1429_vm0, %v1483_v19  ;;  %v1508_v40 = vld [vmem:[%s3916_s20 + $0x10] sm:$0xff] }
 0x113   : > { %v1990_v21 = vadd.f32 %v1977_v63, %v1960_v31  ;;  %v1732_v20 = vrot.slane %v1718_v61, 1  ;;  %v2062_v27 = vmul.f32 0.23388074, %v2048_v3  ;;  %v2063_v50 = vmul.f32 0.23388074, %v2049_v32  ;;  %1511 = vst.msk [vmem:[#allocation5 + $0x38] sm:$0xff] %vm1429_vm0, %v1508_v40 }
 0x114   : > { %v2005_v51 = vrot.slane %v1991_v48, 6  ;;  %v1764_v1 = vadd.f32 %v1755_v8, %v1746_v54  ;;  %v2094_v49 = vmul.f32 0.2920817, %v2049_v32  ;;  %v2112_v11 = vmul.f32 0.23388074, %v2050_v7  ;;  %v1497_v33 = vld [vmem:[%s3996_s22] sm:$0xff] }
 0x115   : > { %v2004_v53 = vrot.slane %v1990_v21, 6  ;;  %v3976_v18 = vld [vmem:[#allocation3 + $0x40] sm:$0xff]  ;;  %v1734_v59 = vsel %vm1561_vm1, %v1732_v20, %v1733_v46  ;;  %v2075_v28 = vrot.slane %v2062_v27, 1  ;;  %v2076_v55 = vrot.slane %v2063_v50, 1 }
 0x116   : > { %v1745_v56 = vadd.f32 %v1734_v59, %v1712_v44  ;;  %v1767_v57 = vmul.f32 0.23388074, %v3976_v18  ;;  %v1794_v58 = vmul.f32 0.12007838, %v3976_v18  ;;  %v2100_v62 = vrot.slane %v2094_v49, 2  ;;  %v1512_v54 = vld [vmem:[%s4004_s25] sm:$0xff] }
 0x117   : > { %v2006_v25 = vsel %vm1666_vm4, %v2004_v53, %v2005_v51  ;;  %v2077_v63 = vsel %vm1561_vm1, %v2075_v28, %v2076_v55  ;;  %v2090_v16 = vadd.f32 %v2076_v55, %v2057_v23  ;;  %v2120_v4 = vrot.slane %v2063_v50, 3  ;;  %v4011_v59 = vld [vmem:[#allocation5 + $0x8] sm:$0xff]  ;;  %v1484_v28 = vld [vmem:[%s3944_s18 + $0x10] sm:$0xff] }
 0x118   : > { %3095 = vmatmul.msk.f32.gmra.mxu2 %vm1429_vm0, %v2006_v25  ;;  %v1763_v30 = vadd.f32 %v1755_v8, %v1745_v56  ;;  %v1778_v37 = vrot.slane %v1767_v57, 3  ;;  %v1808_v10 = vrot.slane %v1794_v58, 4  ;;  %v2089_v13 = vadd.f32 %v2077_v63, %v2056_v15  ;;  %1487 = vst.msk [vmem:[#allocation4 + $0x38] sm:$0xff] %vm1429_vm0, %v1484_v28 }
 0x119   : > { %v2108_v14 = vadd.f32 %v2100_v62, %v2090_v16  ;;  %v2121_v22 = vrot.slane %v2112_v11, 3  ;;  %v2139_v35 = vmul.f32 0.12007838, %v2050_v7  ;;  %v2150_v41 = vrot.slane %v2057_v23, 4  ;;  %v1473_v16 = vld [vmem:[%s4020_s30] sm:$0xff] }
 0x11a   : > { %v1779_v24 = vsel %vm1607_vm2, %v1777_v38, %v1778_v37  ;;  %v1790_v9 = vadd.f32 %v1777_v38, %v1763_v30  ;;  %v1809_v34 = vsel %vm1638_vm3, %v1807_v6, %v1808_v10  ;;  %v2107_v36 = vadd.f32 %v2100_v62, %v2089_v13  ;;  %v1488_v10 = vld [vmem:[%s4027_s15] sm:$0xff] }
 0x11b   : > { %v1791_v42 = vadd.f32 %v1779_v24, %v1764_v1  ;;  %v2122_v39 = vsel %vm1607_vm2, %v2120_v4, %v2121_v22  ;;  %v2151_v43 = vrot.slane %v2139_v35, 4  ;;  %v2227_v26 = vmul.f32 %v3967_v17, %v3805_v0 }
 0x11c   : > { %v1820_v45 = vadd.f32 %v1807_v6, %v1790_v9  ;;  %v2134_v60 = vadd.f32 %v2120_v4, %v2107_v36  ;;  %v2135_v3 = vadd.f32 %v2122_v39, %v2108_v14  ;;  %v2228_v32 = vmul.f32 %v3947_v12, %v3810_v5 }
 0x11d   : > { %v1821_v46 = vadd.f32 %v1809_v34, %v1791_v42  ;;  %v2152_v8 = vsel %vm1638_vm3, %v2150_v41, %v2151_v43  ;;  %v2229_v38 = vmul.f32 %v3976_v18, %v3812_v29  ;;  %v2234_v0 = vmul.f32 0.12007838, %v2227_v26 }
 0x11e   : > { %v1834_v2 = vrot.slane %v1820_v45, 6  ;;  %v2164_v31 = vadd.f32 %v2150_v41, %v2134_v60  ;;  %v2165_v6 = vadd.f32 %v2152_v8, %v2135_v3  ;;  %v2235_v44 = vmul.f32 0.12007838, %v2228_v32 }
 0x11f   : > { %v1835_v61 = vrot.slane %v1821_v46, 6  ;;  %v2240_v7 = vmul.f32 0.23388074, %v2227_v26  ;;  %v2241_v48 = vmul.f32 0.23388074, %v2228_v32  ;;  %v1500_v5 = vmul.f32 %v1497_v33, %v3651_v47 }
 0x120   : > { %v2177_v15 = vrot.slane %v2164_v31, 6  ;;  %v2178_v23 = vrot.slane %v2165_v6, 6  ;;  %v2271_v21 = vmul.f32 0.2920817, %v2228_v32  ;;  %v2289_v20 = vmul.f32 0.23388074, %v2229_v38 }
 0x121   : > { %v1836_v29 = vsel %vm1666_vm4, %v1834_v2, %v1835_v61  ;;  %v2254_v27 = vrot.slane %v2240_v7, 1  ;;  %v2255_v50 = vrot.slane %v2241_v48, 1  ;;  %v2299_v51 = vrot.slane %v2241_v48, 3  ;;  %1503 = vst.msk [vmem:[#allocation5] sm:$0xff] %vm1429_vm0, %v1500_v5  ;;  %v2472_v5 = vld [vmem:[#allocation4 + $0x8] sm:$0xff] }
 0x122   : > { %3092 = vmatmul.msk.f32.gmra.mxu1 %vm1429_vm0, %v1836_v29  ;;  %v2179_v1 = vsel %vm1666_vm4, %v2177_v15, %v2178_v23  ;;  %v2277_v49 = vrot.slane %v2271_v21, 2  ;;  %v2300_v11 = vrot.slane %v2289_v20, 3  ;;  %v2316_v53 = vmul.f32 0.12007838, %v2229_v38  ;;  %v1498_v20 = vld [vmem:[%s3996_s22 + $0x8] sm:$0xff]  ;;  %v1513_v29 = vld [vmem:[%s4004_s25 + $0x8] sm:$0xff] }
 0x123   : > { %3097 = vmatmul.msk.f32.gmra.mxu3 %vm1429_vm0, %v2179_v1  ;;  %v2256_v55 = vsel %vm1561_vm1, %v2254_v27, %v2255_v50  ;;  %v2268_v56 = vadd.f32 %v2255_v50, %v2235_v44  ;;  %v2329_v57 = vrot.slane %v2235_v44, 4  ;;  %v1515_v58 = vmul.f32 %v1512_v54, %v3661_v52 }
 0x124   : > { %v2267_v62 = vadd.f32 %v2256_v55, %v2234_v0  ;;  %v2301_v25 = vsel %vm1607_vm2, %v2299_v51, %v2300_v11  ;;  %v2330_v63 = vrot.slane %v2316_v53, 4  ;;  %v2586_v30 = vrot.slane %v4011_v59, 1 }
 0x125   : > { %v2286_v4 = vadd.f32 %v2277_v49, %v2268_v56  ;;  %1518 = vst.msk [vmem:[#allocation5 + $0x10] sm:$0xff] %vm1429_vm0, %v1515_v58  ;;  %v2601_v37 = vrot.slane %v4011_v59, 2  ;;  %v2051_v14 = vmul.f32 %v3967_v17, %v3967_v17  ;;  %v2052_v22 = vmul.f32 %v3947_v12, %v3947_v12 }
 0x126   : > { %v2285_v13 = vadd.f32 %v2277_v49, %v2267_v62  ;;  %v2331_v19 = vsel %vm1638_vm3, %v2329_v57, %v2330_v63  ;;  %v2593_v41 = vadd.f32 %v2586_v30, %v4011_v59  ;;  %v2053_v24 = vmul.f32 %v3976_v18, %v3976_v18  ;;  %v1474_v62 = vld [vmem:[%s4020_s30 + $0x8] sm:$0xff] }
 0x127   : > { %v2313_v35 = vadd.f32 %v2301_v25, %v2286_v4  ;;  %v1476_v9 = vmul.f32 %v1473_v16, %v3651_v47  ;;  %v2058_v40 = vmul.f32 0.12007838, %v2051_v14  ;;  %v2059_v42 = vmul.f32 0.12007838, %v2052_v22 }
 0x128   : > { %v2312_v34 = vadd.f32 %v2299_v51, %v2285_v13  ;;  %v2574_v36 = vld [vmem:[#allocation5] sm:$0xff]  ;;  %v1491_v39 = vmul.f32 %v1488_v10, %v3661_v52  ;;  %v2064_v17 = vmul.f32 0.23388074, %v2051_v14  ;;  %v2065_v45 = vmul.f32 0.23388074, %v2052_v22 }
 0x129   : > { %v2343_v43 = vadd.f32 %v2331_v19, %v2313_v35  ;;  %v2592_v26 = vadd.f32 %v2586_v30, %v2574_v36  ;;  %1479 = vst.msk [vmem:[#allocation4] sm:$0xff] %vm1429_vm0, %v1476_v9  ;;  %v2095_v60 = vmul.f32 0.2920817, %v2052_v22  ;;  %v2113_v3 = vmul.f32 0.23388074, %v2053_v24  ;;  %v2578_v35 = vld [vmem:[#allocation5 + $0x20] sm:$0xff] }
 0x12a   : > { %v2342_v12 = vadd.f32 %v2329_v57, %v2312_v34  ;;  %v2140_v32 = vmul.f32 0.12007838, %v2053_v24  ;;  %v2078_v46 = vrot.slane %v2064_v17, 1  ;;  %v2079_v8 = vrot.slane %v2065_v45, 1  ;;  %1494 = vst.msk [vmem:[#allocation4 + $0x10] sm:$0xff] %vm1429_vm0, %v1491_v39  ;;  %v1499_v24 = vld [vmem:[%s3996_s22 + $0x10] sm:$0xff] }
 0x12b   : > { %v2357_v33 = vrot.slane %v2343_v43, 6  ;;  %v2616_v18 = vadd.f32 %v2601_v37, %v2592_v26  ;;  %v2101_v2 = vrot.slane %v2095_v60, 2  ;;  %v2123_v31 = vrot.slane %v2065_v45, 3  ;;  %v1514_v9 = vld [vmem:[%s4004_s25 + $0x10] sm:$0xff]  ;;  %v1490_v45 = vld [vmem:[%s4027_s15 + $0x10] sm:$0xff]  ;;  %s4237_s22 = sld [smem:[#allocation34_spill]] }
 0x12c   : > { %v2356_v38 = vrot.slane %v2342_v12, 6  ;;  %v2576_v0 = vld [vmem:[#allocation5 + $0x10] sm:$0xff]  ;;  %v2124_v6 = vrot.slane %v2113_v3, 3  ;;  %v2080_v7 = vsel %vm1561_vm1, %v2078_v46, %v2079_v8  ;;  %v2092_v48 = vadd.f32 %v2079_v8, %v2059_v42  ;;  %v1475_v17 = vld [vmem:[%s4020_s30 + $0x10] sm:$0xff]  ;;  %v2475_v60 = vld [vmem:[#allocation4 + $0x20] sm:$0xff] }
 0x12d   : > { %v2602_v44 = vrot.slane %v2576_v0, 2  ;;  %v2622_v61 = vmul.f32 0.33333334, %v2616_v18  ;;  %v2091_v15 = vadd.f32 %v2080_v7, %v2058_v40  ;;  %v2153_v21 = vrot.slane %v2059_v42, 4 }
 0x12e   : > { %v2358_v54 = vsel %vm1666_vm4, %v2356_v38, %v2357_v33  ;;  %v2125_v23 = vsel %vm1607_vm2, %v2123_v31, %v2124_v6  ;;  %v2110_v51 = vadd.f32 %v2101_v2, %v2092_v48  ;;  %v2154_v1 = vrot.slane %v2140_v32, 4  ;;  %v2581_v38 = vld [vmem:[#allocation5 + $0x38] sm:$0xff] }
 0x12f   : > { %3101 = vmatmul.msk.f32.gmra.mxu0 %vm1429_vm0, %v2358_v54  ;;  %v2603_v27 = vsel %vm2498_vm5, %v2601_v37, %v2602_v44  ;;  %v2634_v50 = vrot.slane %v2622_v61, 7  ;;  %v2109_v11 = vadd.f32 %v2101_v2, %v2091_v15  ;;  %v2483_v59 = vrot.slane %v2472_v5, 1  ;;  %v1489_v37 = vld [vmem:[%s4027_s15 + $0x8] sm:$0xff] }
 0x130   : > { %v2617_v49 = vadd.f32 %v2603_v27, %v2593_v41  ;;  %v2471_v53 = vld [vmem:[#allocation4] sm:$0xff]  ;;  %v2499_v28 = vrot.slane %v2472_v5, 2  ;;  %v2137_v55 = vadd.f32 %v2125_v23, %v2110_v51  ;;  %v2155_v56 = vsel %vm1638_vm3, %v2153_v21, %v2154_v1 }
 0x131   : > { %v1501_v57 = vmul.f32 %v1498_v20, %v3651_v47  ;;  %v1516_v58 = vmul.f32 %v1513_v29, %v3661_v52  ;;  %v2136_v63 = vadd.f32 %v2123_v31, %v2109_v11  ;;  %v2473_v16 = vld [vmem:[#allocation4 + $0x10] sm:$0xff]  ;;  %v2489_v4 = vadd.f32 %v2483_v59, %v2471_v53  ;;  %s1415_s25 = scalar_lea.vmem %s4237_s22, %s3084_s28 }
 0x132   : > { %v2623_v25 = vmul.f32 0.33333334, %v2617_v49  ;;  %v2490_v30 = vadd.f32 %v2483_v59, %v2472_v5  ;;  %v2167_v10 = vadd.f32 %v2155_v56, %v2137_v55  ;;  %v2500_v13 = vrot.slane %v2473_v16, 2 }
 0x133   : > { %1504 = vst.msk [vmem:[#allocation5 + $0x18] sm:$0xff] %vm1429_vm0, %v1501_v57  ;;  %v2166_v14 = vadd.f32 %v2153_v21, %v2136_v63  ;;  %v2514_v22 = vadd.f32 %v2499_v28, %v2489_v4  ;;  %v1477_v41 = vmul.f32 %v1474_v62, %v3651_v47  ;;  %v1492_v40 = vmul.f32 %v1489_v37, %v3661_v52 }
 0x134   : > { %v2635_v19 = vrot.slane %v2623_v25, 7  ;;  %1519 = vst.msk [vmem:[#allocation5 + $0x28] sm:$0xff] %vm1429_vm0, %v1516_v58  ;;  %v2181_v34 = vrot.slane %v2167_v10, 6  ;;  %v2501_v36 = vsel %vm2498_vm5, %v2499_v28, %v2500_v13  ;;  %v2587_v12 = vrot.slane %v2578_v35, 1 }
 0x135   : > { %v2180_v39 = vrot.slane %v2166_v14, 6  ;;  %v2515_v43 = vadd.f32 %v2501_v36, %v2490_v30  ;;  %v2520_v26 = vmul.f32 0.33333334, %v2514_v22  ;;  %1480 = vst.msk [vmem:[#allocation4 + $0x18] sm:$0xff] %vm1429_vm0, %v1477_v41  ;;  %v1502_v3 = vmul.f32 %v1499_v24, %v3651_v47 }
 0x136   : > { %v2636_v42 = vsel %vm2532_vm6, %v2634_v50, %v2635_v19  ;;  %1495 = vst.msk [vmem:[#allocation4 + $0x28] sm:$0xff] %vm1429_vm0, %v1492_v40  ;;  %v1517_v32 = vmul.f32 %v1514_v9, %v3661_v52  ;;  %v2604_v8 = vrot.slane %v2578_v35, 2  ;;  %v1478_v0 = vmul.f32 %v1475_v17, %v3651_v47  ;;  %v2478_v47 = vld [vmem:[#allocation4 + $0x38] sm:$0xff] }
 0x137   : > { %3105 = vmatmul.msk.f32.vlgmr.msrb.gmra.mxu2 %vm1429_vm0, %v2636_v42  ;;  %v2182_v33 = vsel %vm1666_vm4, %v2180_v39, %v2181_v34  ;;  %v2521_v18 = vmul.f32 0.33333334, %v2515_v43  ;;  %v2533_v46 = vrot.slane %v2520_v26, 7  ;;  %1505 = vst.msk [vmem:[#allocation5 + $0x30] sm:$0xff] %vm1429_vm0, %v1502_v3  ;;  %v1493_v2 = vmul.f32 %v1490_v45, %v3661_v52 }
 0x138   : > { %3098 = vmatmul.msk.f32.gmra.mxu3 %vm1429_vm0, %v2182_v33  ;;  %v2484_v44 = vrot.slane %v2475_v60, 1  ;;  %1520 = vst.msk [vmem:[#allocation5 + $0x40] sm:$0xff] %vm1429_vm0, %v1517_v32  ;;  %v2595_v48 = vadd.f32 %v2587_v12, %v2578_v35  ;;  %v2502_v15 = vrot.slane %v2475_v60, 2  ;;  %v2588_v23 = vrot.slane %v2581_v38, 1 }
 0x139   : > { %v2534_v31 = vrot.slane %v2521_v18, 7  ;;  %1481 = vst.msk [vmem:[#allocation4 + $0x30] sm:$0xff] %vm1429_vm0, %v1478_v0  ;;  %v2607_v51 = vrot.slane %v2581_v38, 2  ;;  %v2485_v53 = vrot.slane %v2478_v47, 1  ;;  %v2505_v56 = vrot.slane %v2478_v47, 2 }
 0x13a   : > { %v2577_v6 = vld [vmem:[#allocation5 + $0x18] sm:$0xff]  ;;  %1496 = vst.msk [vmem:[#allocation4 + $0x40] sm:$0xff] %vm1429_vm0, %v1493_v2  ;;  %v2492_v50 = vadd.f32 %v2484_v44, %v2475_v60  ;;  %v2597_v55 = vadd.f32 %v2588_v23, %v2581_v38 }
 0x13b   : > { %v2579_v61 = vld [vmem:[#allocation5 + $0x28] sm:$0xff]  ;;  %v2594_v7 = vadd.f32 %v2587_v12, %v2577_v6  ;;  %v2535_v5 = vsel %vm2532_vm6, %v2533_v46, %v2534_v31  ;;  %v2494_v22 = vadd.f32 %v2485_v53, %v2478_v47 }
 0x13c   : > { %v2605_v54 = vrot.slane %v2579_v61, 2  ;;  %3102 = vmatmul.msk.f32.vlgmr.msrb.gmra.mxu1 %vm1429_vm0, %v2535_v5  ;;  %v2474_v21 = vld [vmem:[#allocation4 + $0x18] sm:$0xff] }
 0x13d   : > { %v2618_v52 = vadd.f32 %v2604_v8, %v2594_v7  ;;  %v2476_v29 = vld [vmem:[#allocation4 + $0x28] sm:$0xff]  ;;  %v2491_v27 = vadd.f32 %v2484_v44, %v2474_v21 }
 0x13e   : > { %v2606_v20 = vsel %vm2498_vm5, %v2604_v8, %v2605_v54  ;;  %v2503_v11 = vrot.slane %v2476_v29, 2  ;;  %v2580_v28 = vld [vmem:[#allocation5 + $0x30] sm:$0xff] }
 0x13f   : > { %v2619_v1 = vadd.f32 %v2606_v20, %v2595_v48  ;;  %v2624_v49 = vmul.f32 0.33333334, %v2618_v52  ;;  %v2516_v59 = vadd.f32 %v2502_v15, %v2491_v27  ;;  %v2582_v25 = vld [vmem:[#allocation5 + $0x40] sm:$0xff]  ;;  %v2596_v63 = vadd.f32 %v2588_v23, %v2580_v28 }
 0x140   : > { %v2504_v62 = vsel %vm2498_vm5, %v2502_v15, %v2503_v11  ;;  %v2608_v30 = vrot.slane %v2582_v25, 2  ;;  %v2477_v37 = vld [vmem:[#allocation4 + $0x30] sm:$0xff] }
 0x141   : > { %v2625_v57 = vmul.f32 0.33333334, %v2619_v1  ;;  %v2637_v58 = vrot.slane %v2624_v49, 7  ;;  %v2517_v16 = vadd.f32 %v2504_v62, %v2492_v50  ;;  %v2522_v4 = vmul.f32 0.33333334, %v2516_v59  ;;  %v2479_v19 = vld [vmem:[#allocation4 + $0x40] sm:$0xff] }
 0x142   : > { %v2620_v13 = vadd.f32 %v2607_v51, %v2596_v63  ;;  %v2493_v14 = vadd.f32 %v2485_v53, %v2477_v37  ;;  %v2609_v24 = vsel %vm2498_vm5, %v2607_v51, %v2608_v30  ;;  %v2506_v9 = vrot.slane %v2479_v19, 2 }
 0x143   : > { %v2638_v10 = vrot.slane %v2625_v57, 7  ;;  %v2523_v35 = vmul.f32 0.33333334, %v2517_v16  ;;  %v2536_v41 = vrot.slane %v2522_v4, 7  ;;  %v2621_v36 = vadd.f32 %v2609_v24, %v2597_v55 }
 0x144   : > { %v2626_v40 = vmul.f32 0.33333334, %v2620_v13  ;;  %v2518_v42 = vadd.f32 %v2505_v56, %v2493_v14  ;;  %v2507_v43 = vsel %vm2498_vm5, %v2505_v56, %v2506_v9 }
 0x145   : > { %v2639_v34 = vsel %vm2532_vm6, %v2637_v58, %v2638_v10  ;;  %v2537_v39 = vrot.slane %v2523_v35, 7  ;;  %v2627_v26 = vmul.f32 0.33333334, %v2621_v36  ;;  %v2519_v45 = vadd.f32 %v2507_v43, %v2494_v22 }
 0x146   : > { %3106 = vmatmul.msk.f32.gmra.mxu2 %vm1429_vm0, %v2639_v34  ;;  %v2640_v17 = vrot.slane %v2626_v40, 7  ;;  %v2524_v12 = vmul.f32 0.33333334, %v2518_v42  ;;  %v3342_v22 = vmov 3.0  }
 0x147   : > { %v2538_v60 = vsel %vm2532_vm6, %v2536_v41, %v2537_v39  ;;  %v2641_v3 = vrot.slane %v2627_v26, 7  ;;  %v2525_v32 = vmul.f32 0.33333334, %v2519_v45 }
 0x148   : > { %3103 = vmatmul.msk.f32.gmra.mxu1 %vm1429_vm0, %v2538_v60  ;;  %v2539_v33 = vrot.slane %v2524_v12, 7 }
 0x149   : > { %v2642_v18 = vsel %vm2532_vm6, %v2640_v17, %v2641_v3  ;;  %v2540_v46 = vrot.slane %v2525_v32, 7 }
 0x14b   : > { %v2541_v8 = vsel %vm2532_vm6, %v2539_v33, %v2540_v46 }
 0x14e   : > { %3107 = vmatmul.msk.f32.gmra.mxu2 %vm1429_vm0, %v2642_v18 }
 0x150   : > { %3104 = vmatmul.msk.f32.gmra.mxu1 %vm1429_vm0, %v2541_v8 }
 0x152   : > { %v1699_v44 = vpop.f32.mrf.mxu0 }
 0x153   : > { %v2039_v61 = vmul.f32 %v1699_v44, %v1699_v44 }
 0x15a   : > { %v1702_v38 = vpop.f32.mrf.mxu3 }
 0x15b   : > { %v2040_v23 = vmul.f32 %v1702_v38, %v1702_v38 }
 0x15d   : > { %v2030_v31 = vpop.f32.mrf.mxu2 }
 0x15e   : > { %v1860_v2 = vpop.f32.mrf.mxu1  ;;  %v2042_v5 = vsub.f32 %v2030_v31, %v2039_v61 }
 0x15f   : > { %v2215_v7 = vmul.f32 %v1860_v2, %v1860_v2  ;;  %v2391_v37 = vmul.f32 %v1860_v2, %v1699_v44 }
 0x16d   : > { %v4091_v0 = vpop.f32.mrf.mxu3 }
 0x16e   : > { %v2382_v1 = vpop.f32.mrf.mxu0  ;;  %v2041_v57 = vmul.f32 %v4091_v0, %v4091_v0 }
 0x16f   : > { %v2394_v24 = vsub.f32 %v2382_v1, %v2391_v37 }
 0x171   : > { %v2397_v33 = vmul.f32 2.0, %v2394_v24 }
 0x17b   : > { %v2033_v15 = vpop.f32.mrf.mxu2 }
 0x17c   : > { %v2043_v20 = vsub.f32 %v2033_v15, %v2040_v23 }
 0x185   : > { %v1863_v54 = vpop.f32.mrf.mxu1 }
 0x186   : > { %v2216_v47 = vmul.f32 %v1863_v54, %v1863_v54  ;;  %v2392_v35 = vmul.f32 %v1863_v54, %v1702_v38  ;;  %v2400_v54 = vadd.f32 0.0009, %v2397_v33 }
 0x187   : > { %v2206_v6 = vpop.f32.mrf.mxu3 }
 0x188   : > { %v2218_v48 = vsub.f32 %v2206_v6, %v2215_v7 }
 0x18a   : > { %v2403_v52 = vadd.f32 %v2218_v48, %v2042_v5 }
 0x18c   : > { %v2406_v50 = vadd.f32 0.0009, %v2403_v52  ;;  %v2385_v58 = vpop.f32.mrf.mxu0 }
 0x18d   : > { %v2395_v9 = vsub.f32 %v2385_v58, %v2392_v35 }
 0x18e   : > { %v2420_v42 = vand.u32 2147483648, %v2406_v50  ;;  %vm2414_vm10 = vweird.f32 %v2406_v50  ;;  %v2418_v26 = vand.u32 2147483647, %v2406_v50 }
 0x18f   : > { %v2398_v45 = vmul.f32 2.0, %v2395_v9 }
 0x190   : > { %v2421_v38 = vor.u32 1.1754944e-38, %v2420_v42  ;;  %vm2419_vm14 = vcmp.eq.f32.partialorder %v2418_v26, 8.507059e+37 }
 0x191   : > { %v2401_v7 = vadd.f32 0.0009, %v2398_v45 }
 0x19b   : > { %v2036_v59 = vpop.f32.mrf.mxu2 }
 0x19c   : > { %v2044_v4 = vsub.f32 %v2036_v59, %v2041_v57 }
 0x19f   : > { %v1866_v53 = vpop.f32.mrf.mxu1 }
 0x1a0   : > { %v2217_v62 = vmul.f32 %v1866_v53, %v1866_v53  ;;  %v2393_v18 = vmul.f32 %v1866_v53, %v4091_v0 }
 0x1a6   : > { %v2209_v21 = vpop.f32.mrf.mxu3 }
 0x1a7   : > { %v2219_v29 = vsub.f32 %v2209_v21, %v2216_v47 }
 0x1a9   : > { %v2404_v27 = vadd.f32 %v2219_v29, %v2043_v20 }
 0x1ab   : > { %v2407_v51 = vadd.f32 0.0009, %v2404_v27 }
 0x1ac   : > { %v2388_v60 = vpop.f32.mrf.mxu0 }
 0x1ad   : > { %3228 = vrcp.f32 %v2407_v51  ;;  %v2435_v40 = vand.u32 2147483648, %v2407_v51  ;;  %vm2429_vm9 = vweird.f32 %v2407_v51  ;;  %v2433_v39 = vand.u32 2147483647, %v2407_v51 }
 0x1ae   : > { %3230 = vrcp.f32 %v2406_v50  ;;  %v2396_v6 = vsub.f32 %v2388_v60, %v2393_v18 }
 0x1af   : > { %3232 = vrcp.f32 %v3342_v22  ;;  %v2436_v8 = vor.u32 1.1754944e-38, %v2435_v40  ;;  %vm2434_vm13 = vcmp.eq.f32.partialorder %v2433_v39, 8.507059e+37 }
 0x1b0   : > { %v2399_v20 = vmul.f32 2.0, %v2396_v6 }
 0x1b3   : > { %v3229_v49 = vpop.eup %3228 }
 0x1b4   : > { %v3231_v11 = vpop.eup %3230  ;;  %v2425_v28 = vmul.f32 %v3229_v49, %v2407_v51  ;;  %vm2430_vm7 = vweird.f32 %v3229_v49 }
 0x1b5   : > { %v2410_v55 = vmul.f32 %v3231_v11, %v2406_v50  ;;  %vm2415_vm8 = vweird.f32 %v3231_v11  ;;  %v4098_v43 = vpop.eup %3232  ;;  %vm4100_vm11 = vmor %vm2429_vm9, %vm2430_vm7 }
 0x1b6   : > { %v2426_v56 = vsub.f32 1.0, %v2425_v28  ;;  %vm4104_vm12 = vmor %vm2414_vm10, %vm2415_vm8  ;;  %v2463_v2 = vmul.f32 3.0, %v4098_v43  ;;  %vm2467_vm4 = vweird.f32 %v4098_v43 }
 0x1b7   : > { %v2411_v25 = vsub.f32 1.0, %v2410_v55  ;;  %v2402_v55 = vadd.f32 0.0009, %v2399_v20 }
 0x1b8   : > { %v2427_v10 = vmul.f32 %v3229_v49, %v2426_v56  ;;  %v2464_v52 = vsub.f32 1.0, %v2463_v2 }
 0x1b9   : > { %v2565_v63 = vpop.f32.mrf.mxu1  ;;  %v2412_v13 = vmul.f32 %v3231_v11, %v2411_v25 }
 0x1ba   : > { %v2666_v19 = vpop.f32.mrf.mxu2  ;;  %v2428_v34 = vadd.f32 %v3229_v49, %v2427_v10  ;;  %v2465_v59 = vmul.f32 %v4098_v43, %v2464_v52 }
 0x1bb   : > { %v2212_v16 = vpop.f32.mrf.mxu3  ;;  %v2413_v36 = vadd.f32 %v3231_v11, %v2412_v13  ;;  %v2675_v15 = vsub.f32 %v2565_v63, %v2666_v19 }
 0x1bc   : > { %v2220_v30 = vsub.f32 %v2212_v16, %v2217_v62  ;;  %v2432_v3 = vsel %vm4100_vm11, %v3229_v49, %v2428_v34  ;;  %v2466_v37 = vadd.f32 %v4098_v43, %v2465_v59 }
 0x1bd   : > { %v2417_v46 = vsel %vm4104_vm12, %v3231_v11, %v2413_v36  ;;  %v2437_v44 = vsel %vm2434_vm13, %v2436_v8, %v2432_v3  ;;  %v2678_v1 = vmul.f32 %v2675_v15, %v2675_v15 }
 0x1be   : > { %v2405_v14 = vadd.f32 %v2220_v30, %v2044_v4  ;;  %v2422_v48 = vsel %vm2419_vm14, %v2421_v38, %v2417_v46  ;;  %v2438_v23 = vmul.f32 %v2437_v44, %v2401_v7  ;;  %v2468_v9 = vsel %vm2467_vm4, %v4098_v43, %v2466_v37 }
 0x1bf   : > { %v2423_v21 = vmul.f32 %v2422_v48, %v2400_v54  ;;  %v2681_v63 = vsel %vm1429_vm0, %v2678_v1, 0.0 }
 0x1c0   : > { %v4095_v41 = vadd.f32 0.0009, %v2405_v14  ;;  %v2455_v11 = vsub.f32 1.0, %v2438_v23 }
 0x1c1   : > { %v2454_v28 = vsub.f32 1.0, %v2423_v21 }
 0x1c2   : > { %3234 = vrcp.f32 %v4095_v41  ;;  %v2450_v29 = vand.u32 2147483648, %v4095_v41  ;;  %v2448_v50 = vand.u32 2147483647, %v4095_v41  ;;  %vm2444_vm1 = vweird.f32 %v4095_v41 }
 0x1c3   : > { %v2458_v4 = vsel %vm1429_vm0, %v2455_v11, 0.0  ;;  %v2457_v19 = vsel %vm1429_vm0, %v2454_v28, 0.0 }
 0x1c4   : > { %v2451_v56 = vor.u32 1.1754944e-38, %v2450_v29  ;;  %vm2449_vm3 = vcmp.eq.f32.partialorder %v2448_v50, 8.507059e+37  ;;  %v2459_v35 = vadd.f32 %v2458_v4, %v2457_v19 }
 0x1c5   : > { %v2568_v32 = vpop.f32.mrf.mxu1 }
 0x1c8   : > { %v3235_v31 = vpop.eup %3234 }
 0x1c9   : > { %v2669_v61 = vpop.f32.mrf.mxu2  ;;  %v2440_v5 = vmul.f32 %v3235_v31, %v4095_v41  ;;  %vm2445_vm15 = vweird.f32 %v3235_v31 }
 0x1ca   : > { %v2676_v0 = vsub.f32 %v2568_v32, %v2669_v61  ;;  %vm2446_vm2 = vmor %vm2444_vm1, %vm2445_vm15 }
 0x1cb   : > { %v2441_v47 = vsub.f32 1.0, %v2440_v5 }
 0x1cc   : > { %v2679_v51 = vmul.f32 %v2676_v0, %v2676_v0 }
 0x1cd   : > { %v2442_v27 = vmul.f32 %v3235_v31, %v2441_v47  ;;  %v2571_v49 = vpop.f32.mrf.mxu1 }
 0x1ce   : > { %v2682_v62 = vsel %vm1429_vm0, %v2679_v51, 0.0 }
 0x1cf   : > { %v2443_v53 = vadd.f32 %v3235_v31, %v2442_v27  ;;  %v2683_v13 = vadd.f32 %v2682_v62, %v2681_v63 }
 0x1d1   : > { %v2672_v57 = vpop.f32.mrf.mxu2  ;;  %v2447_v58 = vsel %vm2446_vm2, %v3235_v31, %v2443_v53 }
 0x1d2   : > { %v2677_v25 = vsub.f32 %v2571_v49, %v2672_v57  ;;  %v2452_v16 = vsel %vm2449_vm3, %v2451_v56, %v2447_v58 }
 0x1d3   : > { %v2453_v30 = vmul.f32 %v2452_v16, %v2402_v55 }
 0x1d4   : > { %v2680_v10 = vmul.f32 %v2677_v25, %v2677_v25 }
 0x1d5   : > { %v2456_v14 = vsub.f32 1.0, %v2453_v30 }
 0x1d6   : > { %v2684_v22 = vsel %vm1429_vm0, %v2680_v10, 0.0 }
 0x1d7   : > { %v2685_v41 = vadd.f32 %v2684_v22, %v2683_v13  ;;  %v2460_v24 = vsel %vm1429_vm0, %v2456_v14, 0.0 }
 0x1d8   : > { %v2461_v34 = vadd.f32 %v2460_v24, %v2459_v35 }
 0x1d9   : > { %3236 = vrsqrt.f32 %v2685_v41  ;;  %vm2693_vm5 = vcmp.eq.f32.partialorder %v2685_v41, inf  ;;  %v2696_v43 = vand.u32 2147483648, %v2685_v41  ;;  %vm2695_vm6 = vcmp.eq.f32.partialorder %v2685_v41, 0.0 }
 0x1da   : > { %v2469_v36 = vmul.f32 %v2468_v9, %v2461_v34 }
 0x1dc   : > { %2470 = vst.msk [vmem:[%s1407_s13] sm:$0xff] %vm1429_vm0, %v2469_v36 }
 0x1df   : > { %v3237_v40 = vpop.eup %3236 }
 0x1e0   : > { %v2687_v42 = vmul.f32 %v3237_v40, %v2685_v41 }
 0x1e2   : > { %v2688_v39 = vmul.f32 %v3237_v40, %v2687_v42 }
 0x1e4   : > { %v2689_v26 = vmul.f32 0.5, %v2688_v39 }
 0x1e6   : > { %v2690_v17 = vsub.f32 1.5, %v2689_v26 }
 0x1e8   : > { %v2691_v45 = vmul.f32 %v3237_v40, %v2690_v17 }
 0x1ea   : > { %v2692_v12 = vmul.f32 %v2691_v45, %v2685_v41 }
 0x1ec   : > { %v2694_v60 = vsel %vm2693_vm5, %v2685_v41, %v2692_v12 }
 0x1ed   : > { %v2697_v3 = vsel %vm2695_vm6, %v2696_v43, %v2694_v60 }
 0x1ee   : > { %2698 = vst.msk [vmem:[%s1415_s25] sm:$0xff] %vm1429_vm0, %v2697_v3 }
 0x1ef PF: > { %s4238_s30 = sld [smem:[#allocation23_spill]]  ;;  %s4244_s18 = smov %s3304_s19 }
 0x1f0   : > { %s4239_s15 = sld [smem:[#allocation28_spill]]  ;;  %s4246_s20 = smov %s3312_s21 }
 0x1f1   : > { %s4240_s14 = sld [smem:[#allocation27_spill]]  ;;  %s4248_s22 = smov %s3320_s23 }
 0x1f2   : > { %s4241_s17 = sld [smem:[#allocation26_spill]]  ;;  %s4250_s24 = smov %s3332_s26 }
 0x1f3   : > { %s4242_s12 = sld [smem:[#allocation24_spill]]  ;;  %s4251_s25 = smov %s3336_s27 }
 0x1f4   : > { %s4243_s16 = sld [smem:[#allocation25_spill]] }
 0x1f5   : > { %s26_s28 = sadd.s32 1, %s4238_s30  }
 0x1f6   : > { %p23_p4 = scmp.ge.s32.totalorder %s26_s28, 6   ;;  %s4245_s19 = smov %s4239_s15 }
 0x1f7   : > { %s4247_s21 = smov %s4240_s14 }
 0x1f8   : > { %s4249_s23 = smov %s4241_s17  ;;  %25 = sbr.rel (!%p23_p4) target bundleno = 13 (0xd), region = 667 }
 0x1f9   : > { %s4252_s26 = smov %s4242_s12 }
 0x1fa   : > { %s4253_s27 = smov %s4243_s16 }

</bundles_post_ra>
